<compile_context>
chip_gen: v7x
topology: tpu7x:2x2x1
jax: 0.10.0
libtpu: 0.0.40
codegen_flags: <defaults>
</compile_context>

<pallas_src>
import jax
import jax.numpy as jnp
from jax import lax
from jax.experimental import pallas as pl
from jax.experimental.pallas import tpu as pltpu


def _round_up(x: int, m: int) -> int:
    return (x + m - 1) // m * m


def _pick_tile(dim: int, pref: int, align: int) -> int:
    """Largest tile <= ~pref that minimizes ragged overhang of `dim`.

    Splits `dim` into ceil(dim / pref) blocks, each rounded up to `align`
    (8 for sublane dims, 128 for lane dims) so block shapes satisfy the TPU
    (8, 128) constraint.
    """
    nblocks = max(1, -(-dim // pref))   # ceil(dim / pref)
    tile = -(-dim // nblocks)           # ceil(dim / nblocks)
    return _round_up(tile, align)


def _vmem_capacity_bytes() -> int:
    try:
        return int(pltpu.get_tpu_info().vmem_capacity_bytes)
    except Exception:
        return 64 << 20   # conservative fallback (v7x-sized VMEM)


def _make_matmul_kernel(k_valid, tk, use_bf16x3):
    """Build the kernel.  `k_valid` is the true K if the K grid is ragged,
    else None (no masking code emitted)."""

    def kernel(a_ref, b_ref, o_ref):
        # Zero the resident f32 output block at the start of the K reduction,
        # then accumulate MXU partial products directly into it (output
        # index_map is k-invariant, so it stays resident in VMEM).
        @pl.when(pl.program_id(2) == 0)
        def _():
            o_ref[...] = jnp.zeros_like(o_ref)

        a = a_ref[...]
        b = b_ref[...]

        if k_valid is not None:
            # Ragged K: out-of-bounds K data is stale VMEM garbage and would
            # be accumulated into EVERY valid output element -- zero it out on
            # both operands (only the last k block actually has invalid lanes).
            limit = k_valid - pl.program_id(2) * tk
            ka = lax.broadcasted_iota(jnp.int32, a.shape, 1)
            kb = lax.broadcasted_iota(jnp.int32, b.shape, 0)
            a = jnp.where(ka < limit, a, 0.0)
            b = jnp.where(kb < limit, b, 0.0)

        if use_bf16x3:
            # hi/lo bf16 split: a ~= a_hi + a_lo (each bf16), same for b.
            # a@b ~= a_hi@b_hi + a_hi@b_lo + a_lo@b_hi  (drop lo*lo, ~2^-16
            # relative error -- far better than the 1e-2 tolerances in use),
            # with all three products accumulated in f32 on the MXU's fast
            # bf16 path.
            a_hi = a.astype(jnp.bfloat16)
            a_lo = (a - a_hi.astype(jnp.float32)).astype(jnp.bfloat16)
            b_hi = b.astype(jnp.bfloat16)
            b_lo = (b - b_hi.astype(jnp.float32)).astype(jnp.bfloat16)
            acc = jnp.dot(a_hi, b_lo, preferred_element_type=jnp.float32)
            acc = acc + jnp.dot(a_lo, b_hi, preferred_element_type=jnp.float32)
            acc = acc + jnp.dot(a_hi, b_hi, preferred_element_type=jnp.float32)
        else:
            acc = jnp.dot(a, b, preferred_element_type=jnp.float32)

        o_ref[...] += acc

    return kernel


def matmul_pallas(A: jax.Array, B: jax.Array, *, tm: int = 512, tn: int = 1024,
                  tk: int = 512, use_bf16x3: bool = True) -> jax.Array:
    M, K = A.shape
    K2, N = B.shape
    assert K == K2, "inner dimensions must match"

    # Reference semantics are float32 (CUDA kernel is float-only).
    if A.dtype != jnp.float32:
        A = A.astype(jnp.float32)
    if B.dtype != jnp.float32:
        B = B.astype(jnp.float32)

    # Tile sizes adapted to the problem, respecting the (8, 128) constraint.
    tm_t = _pick_tile(M, tm, 8)     # sublane dim of A / C
    tn_t = _pick_tile(N, tn, 128)   # lane dim of B / C
    tk_t = _pick_tile(K, tk, 128)   # lane dim of A, sublane dim of B

    # Make sure at least one "parallel" axis has >= 2 blocks so the second
    # TensorCore on v7x gets work (harmless on single-core v5e/v6e).
    if pl.cdiv(M, tm_t) == 1 and pl.cdiv(N, tn_t) == 1:
        if N >= 256:
            tn_t = _round_up(-(-N // 2), 128)
        elif M >= 16:
            tm_t = _round_up(-(-M // 2), 8)

    grid = (pl.cdiv(M, tm_t), pl.cdiv(N, tn_t), pl.cdiv(K, tk_t))

    # K masking is only needed (and only emitted) if K is not tile-aligned.
    k_valid = K if (K % tk_t) != 0 else None

    # VMEM budget: double-buffered A/B input blocks + resident output block
    # (counted twice for headroom), f32, plus slack; cap per generation.
    need = 4 * (2 * tm_t * tk_t + 2 * tk_t * tn_t + 2 * tm_t * tn_t) + (16 << 20)
    cap = (96 << 20) if _vmem_capacity_bytes() >= (100 << 20) else (48 << 20)
    vmem_limit = int(min(max(need, 32 << 20), cap))

    flops = 2 * M * N * K * (3 if use_bf16x3 else 1)
    cost = pl.CostEstimate(
        flops=flops,
        transcendentals=0,
        bytes_accessed=4 * (M * K + K * N + M * N),
    )

    return pl.pallas_call(
        _make_matmul_kernel(k_valid, tk_t, use_bf16x3),
        out_shape=jax.ShapeDtypeStruct((M, N), jnp.float32),
        grid_spec=pltpu.PrefetchScalarGridSpec(
            num_scalar_prefetch=0,
            grid=grid,
            in_specs=[
                pl.BlockSpec((tm_t, tk_t), lambda i, j, k: (i, k)),
                pl.BlockSpec((tk_t, tn_t), lambda i, j, k: (k, j)),
            ],
            out_specs=pl.BlockSpec((tm_t, tn_t), lambda i, j, k: (i, j)),
        ),
        compiler_params=pltpu.CompilerParams(
            dimension_semantics=("parallel", "parallel", "arbitrary"),
            vmem_limit_bytes=vmem_limit,
        ),
        cost_estimate=cost,
    )(A, B)


if __name__ == "__main__":
    key = jax.random.PRNGKey(0)
    k_a, k_b = jax.random.split(key)

    # Small, tile-aligned shapes consistent with the module (generic M, K, N).
    M, K, N = 256, 512, 512
    A = jax.random.normal(k_a, (M, K), dtype=jnp.float32)
    B = jax.random.normal(k_b, (K, N), dtype=jnp.float32)

    C = matmul_pallas(A, B)
    jax.block_until_ready(C)
    C_ref = jnp.dot(A, B, precision=lax.Precision.HIGHEST)
    assert jnp.allclose(C, C_ref, atol=1e-2, rtol=1e-2), "matmul mismatch"

    # Non-aligned shapes exercise the ragged-block / in-kernel K-mask path.
    M2, K2, N2 = 200, 300, 250
    A2 = jax.random.normal(k_a, (M2, K2), dtype=jnp.float32)
    B2 = jax.random.normal(k_b, (K2, N2), dtype=jnp.float32)
    C2 = matmul_pallas(A2, B2)
    jax.block_until_ready(C2)
    C2_ref = jnp.dot(A2, B2, precision=lax.Precision.HIGHEST)
    assert jnp.allclose(C2, C2_ref, atol=1e-2, rtol=1e-2), "ragged matmul mismatch"

    print("KERNEL_OK")
</pallas_src>

<mosaic_0001>
module attributes {stable_mosaic.version = 11 : i64} {
  func.func @kernel(%arg0: i32, %arg1: i32, %arg2: i32, %arg3: memref<256x512xf32, #tpu.memory_space<vmem>>, %arg4: memref<512x256xf32, #tpu.memory_space<vmem>>, %arg5: memref<256x256xf32, #tpu.memory_space<vmem>>) attributes {dimension_semantics = [#tpu.dimension_semantics<parallel>, #tpu.dimension_semantics<parallel>, #tpu.dimension_semantics<arbitrary>], iteration_bounds = array<i64: 1, 2, 1>, scalar_prefetch = 0 : i64, scratch_operands = 0 : i64, tpu.core_type = #tpu.core_type<tc>, window_params = [{transform_indices = @transform_0, window_bounds = array<i64: 256, 512>}, {transform_indices = @transform_1, window_bounds = array<i64: 512, 256>}, {transform_indices = @transform_2, window_bounds = array<i64: 256, 256>}]} {
    %c0_i32 = arith.constant 0 : i32
    %0 = arith.cmpi eq, %arg2, %c0_i32 : i32
    %1 = arith.extui %0 : i1 to i32
    %c0_i32_0 = arith.constant 0 : i32
    %2 = arith.cmpi ne, %1, %c0_i32_0 : i32
    scf.if %2 {
      %cst_10 = arith.constant 0.000000e+00 : f32
      %21 = vector.broadcast %cst_10 : f32 to vector<256x256xf32>
      %c0_11 = arith.constant 0 : index
      %c0_12 = arith.constant 0 : index
      %22 = vector.load %arg5[%c0_11, %c0_12] : memref<256x256xf32, #tpu.memory_space<vmem>>, vector<256x256xf32>
      tpu.vector_store %arg5[%c0_11, %c0_12], %21 {strides = array<i32>} : memref<256x256xf32, #tpu.memory_space<vmem>>, vector<256x256xf32>,
    } else {
    }
    %c0 = arith.constant 0 : index
    %c0_1 = arith.constant 0 : index
    %3 = vector.load %arg3[%c0, %c0_1] : memref<256x512xf32, #tpu.memory_space<vmem>>, vector<256x512xf32>
    %c0_2 = arith.constant 0 : index
    %c0_3 = arith.constant 0 : index
    %4 = vector.load %arg4[%c0_2, %c0_3] : memref<512x256xf32, #tpu.memory_space<vmem>>, vector<512x256xf32>
    %5 = arith.truncf %3 : vector<256x512xf32> to vector<256x512xbf16>
    %6 = arith.extf %5 : vector<256x512xbf16> to vector<256x512xf32>
    %7 = arith.subf %3, %6 : vector<256x512xf32>
    %8 = arith.truncf %7 : vector<256x512xf32> to vector<256x512xbf16>
    %9 = arith.truncf %4 : vector<512x256xf32> to vector<512x256xbf16>
    %10 = arith.extf %9 : vector<512x256xbf16> to vector<512x256xf32>
    %11 = arith.subf %4, %10 : vector<512x256xf32>
    %12 = arith.truncf %11 : vector<512x256xf32> to vector<512x256xbf16>
    %cst = arith.constant dense<0.000000e+00> : vector<256x256xf32>
    %13 = tpu.matmul %5, %12, %cst {dimension_numbers = #tpu.dot_dimension_numbers<[1], [0], [0], [1], [0, 0, 1, 1], [], []>} : vector<256x512xbf16>, vector<512x256xbf16>, vector<256x256xf32> -> vector<256x256xf32>
    %cst_4 = arith.constant dense<0.000000e+00> : vector<256x256xf32>
    %14 = tpu.matmul %8, %9, %cst_4 {dimension_numbers = #tpu.dot_dimension_numbers<[1], [0], [0], [1], [0, 0, 1, 1], [], []>} : vector<256x512xbf16>, vector<512x256xbf16>, vector<256x256xf32> -> vector<256x256xf32>
    %15 = arith.addf %13, %14 : vector<256x256xf32>
    %cst_5 = arith.constant dense<0.000000e+00> : vector<256x256xf32>
    %16 = tpu.matmul %5, %9, %cst_5 {dimension_numbers = #tpu.dot_dimension_numbers<[1], [0], [0], [1], [0, 0, 1, 1], [], []>} : vector<256x512xbf16>, vector<512x256xbf16>, vector<256x256xf32> -> vector<256x256xf32>
    %17 = arith.addf %15, %16 : vector<256x256xf32>
    %c0_6 = arith.constant 0 : index
    %c0_7 = arith.constant 0 : index
    %18 = vector.load %arg5[%c0_6, %c0_7] : memref<256x256xf32, #tpu.memory_space<vmem>>, vector<256x256xf32>
    %19 = arith.addf %18, %17 : vector<256x256xf32>
    %c0_8 = arith.constant 0 : index
    %c0_9 = arith.constant 0 : index
    %20 = vector.load %arg5[%c0_8, %c0_9] : memref<256x256xf32, #tpu.memory_space<vmem>>, vector<256x256xf32>
    tpu.vector_store %arg5[%c0_8, %c0_9], %19 {strides = array<i32>} : memref<256x256xf32, #tpu.memory_space<vmem>>, vector<256x256xf32>,
    return
  }
  func.func @transform_0(%arg0: i32, %arg1: i32, %arg2: i32) -> (i32, i32) {
    %c0_i32 = arith.constant 0 : i32
    return %arg0, %arg2 : i32, i32
  }
  func.func @transform_1(%arg0: i32, %arg1: i32, %arg2: i32) -> (i32, i32) {
    %c0_i32 = arith.constant 0 : i32
    return %arg2, %arg1 : i32, i32
  }
  func.func @transform_2(%arg0: i32, %arg1: i32, %arg2: i32) -> (i32, i32) {
    %c0_i32 = arith.constant 0 : i32
    return %arg0, %arg1 : i32, i32
  }
}

</mosaic_0001>

<bundles_post_ra>
// kernel: tpu_custom_call.1
= control target key start
LH: loop header
LB: loop body
LE: loop exit
PB: predicated region body
PF: predicated region fallthrough
CT: control target
= control target key end

     0   :  { %7 = vsyncpa [#allocation3], 0  ;;  %s5217_s0 = inlined_call_operand.hbm [shape: f32[256,512], index: 0, kind: input, shape index: {}]   ;;  %s5218_s1 = inlined_call_operand.hbm [shape: f32[512,512], index: 1, kind: input, shape index: {}]   ;;  %s5219_s2 = inlined_call_operand.hbm [shape: f32[256,512], index: 2, kind: output, shape index: {}]  }
   0x1   :  { %8 = vsyncpa [#allocation6], 0 }
   0x2   :  { %10 = vsyncpa [#allocation6 + $0x1], 0 }
   0x3   :  { %11 = vsyncpa [#allocation4], 0 }
   0x4   :  { %13 = vsyncpa [#allocation4 + $0x1], 0  ;;  %s3507_s9 = smov 0   ;;  %s3509_s10 = smov 0  }
   0x5   :  { %s3511_s11 = smov 0   ;;  %s3513_s12 = smov 0  }
   0x6   :  { %s3515_s13 = smov 0   ;;  %s3517_s14 = smov 0  }
   0x7 LB: > { %s2852_s15 = sadd.s32 4294967295, %s3480_s14   ;;  %s2853_s16 = sadd.s32 4294967294, %s3480_s14   ;;  %s3480_s14 = sphi %s3517_s14, %s19_s14   ;;  %s3476_s13 = sphi %s3515_s13, %s5888_s13   ;;  %s3472_s12 = sphi %s3513_s12, %s5887_s12   ;;  %s3468_s11 = sphi %s3511_s11, %s5886_s11   ;;  %s3464_s10 = sphi %s3509_s10, %s5885_s10   ;;  %s3460_s9 = sphi %s3507_s9, %s5884_s9  }
   0x8   : > { %p82_p0 = scmp.ne.s32.totalorder %s3468_s11, %s3464_s10  ;;  %p83_p1 = scmp.eq.s32.totalorder %s3480_s14, 0 }
   0x9   : > { %p88_p2 = scmp.ne.s32.totalorder %s3464_s10, %s3460_s9  ;;  %p3544_p3 = scmp.eq.s32.totalorder %s2852_s15, 0 }
   0xa   : > { %p3548_p4 = por %p83_p1, %p82_p0  ;;  %p114_p5 = scmp.eq.s32.totalorder %s2852_s15, 1 }
   0xb   : > { %s5487_s17 = scalar_select %p3544_p3, 1, 0 }
   0xc   : > { %p3554_p6 = por %p3544_p3, %p88_p2  ;;  %p120_p7 = scmp.eq.s32.totalorder %s2853_s16, 1 }
   0xd   : > { %p3558_p8 = por %p114_p5, %p82_p0  ;;  %p2854_p9 = scmp.ge.s32.totalorder %s3480_s14, 1 }
   0xe   : > { %s5489_s19 = scalar_select %p3554_p6, 1, 0 }
   0xf   : > { %s5490_s20 = scalar_select %p3558_p8, 1, 0 }
  0x10   : > { %p3563_p10 = por %p120_p7, %p88_p2  ;;  %p127_p11 = scmp.lt.s32.totalorder %s3480_s14, 3 }
  0x11   : > { %s3482_s23 = smov [#allocation2]   ;;  %p3212_p1 = scmp.lt.s32.totalorder %s3480_s14, 2 }
  0x12   : > { %s5491_s21 = scalar_select %p3563_p10, 1, 0 }
  0x13   : > { %p3568_p12 = pnand %p2854_p9, %p127_p11  ;;  %s145_s24 = sshll.u32 %s3482_s23, 4  ;;  %s3572_s24 = int_to_ptr.vmem [resolvable:$true] %s145_s24 }
  0x14   : > { %p3586_p2 = pnand %p3212_p1, %p3548_p4  ;;  %s34_s27 = sadd.s32 1, %s3476_s13 }
  0x15   : > { %s5492_s22 = scalar_select %p3568_p12, 1, 0 }
  0x16   : > { %p3199_p13 = pneg %p3568_p12  ;;  %s3336_s30 = scalar_lea.hbm %s5217_s0, 16384 }
  0x17   : > { %s5494_s26 = scalar_select %p3586_p2, 1, 0 }
  0x18   : > { %p3580_p5 = pnand %p3199_p13, %p3544_p3  ;;  %p3337_p7 = scmp.ne.s32.totalorder %s5217_s0, %s3336_s30 }
  0x19   : > { %p3343_p4 = scmp.lt.u32.totalorder %s3336_s30, %s5217_s0 }
  0x1a   : > { %p3338_p9 = pneg %p3580_p5 }
  0x1c   : > { %p3339_p11 = pnand %p3338_p9, %p3337_p7 }
  0x1e   : > { %p3340_p13 = pneg %p3339_p11 }
  0x20   : > { %p3345_p1 = pnand %p3343_p4, %p3340_p13 }
  0x22   : > { %3348 = shalt.err (!%p3345_p1)
}
  0x23   : > { %s3349_s7 = scalar_lea.vmem %s3572_s24, 16384  ;;  %p3357_p6 = scmp.lt.s32.totalorder %s3572_s24, %s3572_s24 }
  0x24   : > { %p3350_p0 = scmp.ne.s32.totalorder %s3572_s24, %s3349_s7  ;;  %p3358_p3 = scmp.lt.s32.totalorder %s3349_s7, %s3349_s7 }
  0x26   : > { %p3352_p10 = pnand %p3350_p0, %p3338_p9  ;;  %p3359_p12 = por %p3358_p3, %p3357_p6 }
  0x28   : > { %p3353_p8 = pneg %p3352_p10 }
  0x2a   : > { %p3360_p2 = pnand %p3359_p12, %p3353_p8 }
  0x2c   : > { %3363 = shalt.err (!%p3360_p2)
}
  0x2d   : > { %s3483_s8 = smov 512   ;;  %s3484_s15 = smov 32  }
  0x2e   : > { %3202 = dma.hbm_to_vmem [thread:$0]  (!%p3580_p5), %s5217_s0, 16384, %s3572_s24, [#allocation3], %s3483_s8, %s3483_s8, %s3484_s15  }
  0x2f   : > { %p36_p10 = scmp.ge.s32.totalorder %s34_s27, 2  ;;  %s75_s23 = sadd.s32 1, %s3468_s11 }
  0x30   : > { %s159_s28 = sand.u32 1, %s3468_s11   ;;  %s2869_s3 = sshll.u32 %s3476_s13, 8 }
  0x31   : > { %s5890_s27 = smov (%p36_p10, %s34_s27), 0  ;;  %s2857_s29 = sshll.u32 %s159_s28, 10 }
  0x32   : > { %s71_s30 = ssub.s32 %s3476_s13, %s5890_s27  ;;  %s3624_s5 = scalar_lea.hbm %s5218_s1, %s2869_s3 }
  0x33   : > { %p73_p3 = scmp.eq.s32.totalorder %s71_s30, 0  ;;  %s163_s24 = scalar_lea.vmem [#allocation5], %s2857_s29 }
  0x34   : > { %s173_s6 = sshll.u32 %s163_s24, 4  ;;  %s3631_s15 = scalar_lea.sflag [#allocation6], %s159_s28  ;;  %s3629_s6 = int_to_ptr.vmem [resolvable:$true] %s173_s6 }
  0x35   : > { %s3627_s7 = scalar_select %p73_p3, %s3468_s11, %s75_s23  }
  0x36   : > { %s3364_s16 = scalar_lea.hbm %s3624_s5, 16384  ;;  %p5495_p8 = scmp.ne.s32.totalorder %s5494_s26, 0 }
  0x37   : > { %p3365_p6 = scmp.ne.s32.totalorder %s3624_s5, %s3364_s16  ;;  %s3369_s3 = scalar_lea.hbm %s5218_s1, 32768 }
  0x38   : > { %p3366_p12 = pneg %p5495_p8  ;;  %p3370_p2 = scmp.lt.u32.totalorder %s3624_s5, %s5218_s1 }
  0x39   : > { %p3371_p7 = scmp.lt.u32.totalorder %s3369_s3, %s3364_s16  ;;  %p3373_p11 = scmp.lt.u32.totalorder %s3364_s16, %s3624_s5 }
  0x3a   : > { %p3367_p0 = pnand %p3366_p12, %p3365_p6 }
  0x3b   : > { %p3372_p9 = por %p3371_p7, %p3370_p2 }
  0x3c   : > { %p3368_p5 = pneg %p3367_p0 }
  0x3d   : > { %p3374_p13 = por %p3373_p11, %p3372_p9 }
  0x3f   : > { %p3375_p4 = pnand %p3374_p13, %p3368_p5 }
  0x41   : > { %3378 = shalt.err (!%p3375_p4)
}
  0x42   : > { %s3379_s23 = scalar_lea.vmem %s3629_s6, 16384  ;;  %s3485_s28 = smov [#allocation5]  }
  0x43   : > { %p3380_p1 = scmp.ne.s32.totalorder %s3629_s6, %s3379_s23  ;;  %s3384_s25 = sshll.u32 %s3485_s28, 4  ;;  %s3385_s25 = int_to_ptr.vmem [resolvable:$false] %s3384_s25 }
  0x44   : > { %s3386_s24 = scalar_lea.vmem %s3385_s25, 32768  ;;  %p3387_p6 = scmp.lt.s32.totalorder %s3629_s6, %s3385_s25 }
  0x45   : > { %p3382_p10 = pnand %p3380_p1, %p3366_p12  ;;  %p3388_p0 = scmp.lt.s32.totalorder %s3386_s24, %s3379_s23 }
  0x47   : > { %p3383_p3 = pneg %p3382_p10  ;;  %p3389_p2 = por %p3388_p0, %p3387_p6 }
  0x49   : > { %p3390_p7 = pnand %p3389_p2, %p3383_p3 }
  0x4b   : > { %3393 = shalt.err (!%p3390_p7)
}
  0x4c   : > { %s3486_s16 = smov 256   ;;  %s3487_s18 = smov 16  }
  0x4d   : > { %3206 = dma.hbm_to_vmem [thread:$0]  (!%p5495_p8), %s3624_s5, 16384, %s3629_s6, %s3631_s15, %s3483_s8, %s3486_s16, %s3487_s18  }
  0x4e   : > { %p5496_p12 = scmp.ne.s32.totalorder %s5492_s22, 0 }
  0x50   : > { %185 = sbr.rel (%p5496_p12) target bundleno = 781 (0x30d), region = 28 }
  0x57   : > { %p5497_p5 = scmp.ne.s32.totalorder %s5487_s17, 0 }
  0x59   : > { %3447 = dma.done.wait (%p5497_p5), [#allocation3], 16384  }
  0x5a   : > { %3449 = vsyncadd (%p5497_p5), [#allocation3], 4294950912  ;;  %s3667_s30 = sand.u32 1, %s3464_s10   ;;  %p5498_p8 = scmp.ne.s32.totalorder %s5489_s19, 0 }
  0x5b   : > { %s2862_s3 = sshll.u32 %s3667_s30, 10  ;;  %s192_s29 = scalar_lea.sflag [#allocation6], %s3667_s30 }
  0x5c   : > { %s3671_s26 = scalar_lea.vmem [#allocation5], %s2862_s3 }
  0x5d   : > { %3451 = dma.done.wait (%p5498_p8), %s192_s29, 16384  }
  0x5e   : > { %3453 = vsyncadd (%p5498_p8), %s192_s29, 4294950912  ;;  %v419_v0 = vld [vmem:[%s3671_s26 + $0x8] sm:$0xff]  ;;  %v421_v1 = vld [vmem:[%s3671_s26 + $0x18] sm:$0xff]  ;;  %s2863_s17 = sshll.u32 %s3667_s30, 9  ;;  %s2870_s22 = sshll.u32 %s3472_s12, 8 }
  0x5f   : > { %v418_v2 = vld [vmem:[%s3671_s26] sm:$0xff]  ;;  %v3680_v3 = vpack.c.bf16 %v421_v1, %v419_v0  ;;  %v420_v4 = vld [vmem:[%s3671_s26 + $0x10] sm:$0xff]  ;;  %v423_v5 = vld [vmem:[%s3671_s26 + $0x28] sm:$0xff]  ;;  %s5095_s19 = scalar_lea.vmem [#allocation7], %s2863_s17  ;;  %s5162_s15 = scalar_lea.hbm %s5219_s2, %s2870_s22 }
  0x60   : > { %v425_v6 = vld [vmem:[%s3671_s26 + $0x38] sm:$0xff]  ;;  %v3685_v7 = vpack.c.bf16 %v420_v4, %v418_v2  ;;  %v422_v9 = vld [vmem:[%s3671_s26 + $0x20] sm:$0xff]  ;;  %v424_v10 = vld [vmem:[%s3671_s26 + $0x30] sm:$0xff]  ;;  %s2745_s8 = sshll.u32 %s5095_s19, 4  ;;  %s2729_s12 = scalar_lea.sflag [#allocation4], %s3667_s30  ;;  %s5165_s8 = int_to_ptr.vmem [resolvable:$true] %s2745_s8 }
  0x61   : > { %v3687_v8 = vpack.c.bf16 %v425_v6, %v423_v5  ;;  %v483_v11 = vld [vmem:[%s3671_s26 + $0x208] sm:$0xff]  ;;  %1314 = vmatprep.subr.bf16.mxu1 %v3680_v3  ;;  %v485_v12 = vld [vmem:[%s3671_s26 + $0x218] sm:$0xff]  ;;  %v482_v13 = vld [vmem:[%s3671_s26 + $0x200] sm:$0xff]  ;;  %v3697_v15 = vpack.c.bf16 %v424_v10, %v422_v9  ;;  %s3394_s4 = scalar_lea.vmem %s5165_s8, 8192  ;;  %p5881_p11 = scmp.ne.s32.totalorder %s5490_s20, 0 }
  0x62   : > { %5499 = vst [vmem:[#allocation11_spill] sm:$0xff] %v3685_v7  ;;  %v484_v14 = vld [vmem:[%s3671_s26 + $0x210] sm:$0xff]  ;;  %1315 = vmatpush1.bf16.msra.mxu1 %v3685_v7  ;;  %v3699_v16 = vpack.c.bf16 %v485_v12, %v483_v11  ;;  %v427_v18 = vld [vmem:[%s3671_s26 + $0x48] sm:$0xff]  ;;  %v429_v19 = vld [vmem:[%s3671_s26 + $0x58] sm:$0xff]  ;;  %p3395_p9 = scmp.ne.s32.totalorder %s5165_s8, %s3394_s4  ;;  %s3488_s23 = smov [#allocation7]  }
  0x63   : > { %5500 = vst [vmem:[#allocation12_spill] sm:$0xff] %v3687_v8  ;;  %5501 = vst [vmem:[#allocation13_spill] sm:$0xff] %v3697_v15  ;;  %v3701_v17 = vpack.c.bf16 %v484_v14, %v482_v13  ;;  %v426_v20 = vld [vmem:[%s3671_s26 + $0x40] sm:$0xff]  ;;  %1316 = vmatprep.subr.bf16.mxu1 %v3687_v8  ;;  %v3707_v21 = vpack.c.bf16 %v429_v19, %v427_v18  ;;  %v428_v22 = vld [vmem:[%s3671_s26 + $0x50] sm:$0xff]  ;;  %s3398_s28 = sshll.u32 %s3488_s23, 4  ;;  %s3399_s28 = int_to_ptr.vmem [resolvable:$false] %s3398_s28 }
  0x64   : > { %v487_v23 = vld [vmem:[%s3671_s26 + $0x228] sm:$0xff]  ;;  %v489_v24 = vld [vmem:[%s3671_s26 + $0x238] sm:$0xff]  ;;  %v1059_v25 = vunpack.c.l.bf16 %v3699_v16  ;;  %v1061_v26 = vunpack.c.h.bf16 %v3699_v16  ;;  %v486_v29 = vld [vmem:[%s3671_s26 + $0x220] sm:$0xff]  ;;  %v3719_v32 = vpack.c.bf16 %v428_v22, %v426_v20  ;;  %p3396_p13 = pnand %p3395_p9, %p5881_p11  ;;  %s3400_s25 = scalar_lea.vmem %s3399_s28, 16384 }
  0x65   : > { %5502 = vst [vmem:[#allocation14_spill] sm:$0xff] %v3701_v17  ;;  %5503 = vst [vmem:[#allocation15_spill] sm:$0xff] %v3707_v21  ;;  %v1058_v27 = vunpack.c.l.bf16 %v3701_v17  ;;  %v1060_v28 = vunpack.c.h.bf16 %v3701_v17  ;;  %v488_v30 = vld [vmem:[%s3671_s26 + $0x230] sm:$0xff]  ;;  %v431_v31 = vld [vmem:[%s3671_s26 + $0x68] sm:$0xff]  ;;  %v3721_v33 = vpack.c.bf16 %v489_v24, %v487_v23  ;;  %p3401_p1 = scmp.lt.s32.totalorder %s5165_s8, %s3399_s28  ;;  %p3402_p10 = scmp.lt.s32.totalorder %s3400_s25, %s3394_s4 }
  0x66   : > { %5504 = vst [vmem:[#allocation16_spill] sm:$0xff] %v3719_v32  ;;  %v3723_v34 = vpack.c.bf16 %v488_v30, %v486_v29  ;;  %v433_v35 = vld [vmem:[%s3671_s26 + $0x78] sm:$0xff]  ;;  %v430_v36 = vld [vmem:[%s3671_s26 + $0x60] sm:$0xff]  ;;  %v432_v37 = vld [vmem:[%s3671_s26 + $0x70] sm:$0xff]  ;;  %1317 = vmatpush1.bf16.msra.mxu1 %v3697_v15  ;;  %v1187_v38 = vsub.f32 %v483_v11, %v1059_v25  ;;  %v1189_v39 = vsub.f32 %v485_v12, %v1061_v26  ;;  %p3397_p4 = pneg %p3396_p13 }
  0x67   : > { %5505 = vst [vmem:[#allocation17_spill] sm:$0xff] %v3721_v33  ;;  %v1186_v40 = vsub.f32 %v482_v13, %v1058_v27  ;;  %v1188_v41 = vsub.f32 %v484_v14, %v1060_v28  ;;  %v491_v42 = vld [vmem:[%s3671_s26 + $0x248] sm:$0xff]  ;;  %v493_v43 = vld [vmem:[%s3671_s26 + $0x258] sm:$0xff]  ;;  %v490_v44 = vld [vmem:[%s3671_s26 + $0x240] sm:$0xff]  ;;  %1318 = vmatprep.subr.bf16.mxu1 %v3707_v21  ;;  %v1063_v45 = vunpack.c.l.bf16 %v3721_v33  ;;  %v1065_v46 = vunpack.c.h.bf16 %v3721_v33  ;;  %p3403_p3 = por %p3402_p10, %p3401_p1 }
  0x68   : > { %5506 = vst [vmem:[#allocation18_spill] sm:$0xff] %v3723_v34  ;;  %v1062_v47 = vunpack.c.l.bf16 %v3723_v34  ;;  %v1064_v48 = vunpack.c.h.bf16 %v3723_v34  ;;  %v492_v49 = vld [vmem:[%s3671_s26 + $0x250] sm:$0xff]  ;;  %v435_v50 = vld [vmem:[%s3671_s26 + $0x88] sm:$0xff]  ;;  %v437_v51 = vld [vmem:[%s3671_s26 + $0x98] sm:$0xff]  ;;  %v1283_v52 = vpack.c.bf16 %v1189_v39, %v1187_v38  ;;  %v3740_v54 = vpack.c.bf16 %v433_v35, %v431_v31 }
  0x69   : > { %v1282_v53 = vpack.c.bf16 %v1188_v41, %v1186_v40  ;;  %v3742_v55 = vpack.c.bf16 %v432_v37, %v430_v36  ;;  %v434_v56 = vld [vmem:[%s3671_s26 + $0x80] sm:$0xff]  ;;  %v436_v57 = vld [vmem:[%s3671_s26 + $0x90] sm:$0xff]  ;;  %v495_v58 = vld [vmem:[%s3671_s26 + $0x268] sm:$0xff]  ;;  %v1191_v59 = vsub.f32 %v487_v23, %v1063_v45  ;;  %v1193_v60 = vsub.f32 %v489_v24, %v1065_v46  ;;  %p3404_p6 = pnand %p3403_p3, %p3397_p4 }
  0x6a   : > { %5507 = vst [vmem:[#allocation19_spill] sm:$0xff] %v3740_v54  ;;  %v1190_v61 = vsub.f32 %v486_v29, %v1062_v47  ;;  %v1192_v62 = vsub.f32 %v488_v30, %v1064_v48  ;;  %v497_v63 = vld [vmem:[%s3671_s26 + $0x278] sm:$0xff]  ;;  %v494_v0 = vld [vmem:[%s3671_s26 + $0x260] sm:$0xff]  ;;  %v496_v1 = vld [vmem:[%s3671_s26 + $0x270] sm:$0xff]  ;;  %1893 = vmatprep.subr.bf16.mxu0 %v1283_v52  ;;  %1319 = vmatpush1.bf16.msra.mxu1 %v3719_v32 }
  0x6b   : > { %5508 = vst [vmem:[#allocation20_spill] sm:$0xff] %v3742_v55  ;;  %v3751_v2 = vpack.c.bf16 %v493_v43, %v491_v42  ;;  %v3753_v4 = vpack.c.bf16 %v492_v49, %v490_v44  ;;  %v3755_v5 = vpack.c.bf16 %v437_v51, %v435_v50  ;;  %v439_v6 = vld [vmem:[%s3671_s26 + $0xa8] sm:$0xff]  ;;  %v441_v9 = vld [vmem:[%s3671_s26 + $0xb8] sm:$0xff]  ;;  %v438_v10 = vld [vmem:[%s3671_s26 + $0xa0] sm:$0xff]  ;;  %1894 = vmatpush1.bf16.msra.mxu0 %v1282_v53 }
  0x6c   : > { %v1285_v11 = vpack.c.bf16 %v1193_v60, %v1191_v59  ;;  %v1284_v12 = vpack.c.bf16 %v1192_v62, %v1190_v61  ;;  %1320 = vmatprep.subr.bf16.mxu1 %v3740_v54  ;;  %v3761_v13 = vpack.c.bf16 %v436_v57, %v434_v56  ;;  %v440_v14 = vld [vmem:[%s3671_s26 + $0xb0] sm:$0xff]  ;;  %v499_v23 = vld [vmem:[%s3671_s26 + $0x288] sm:$0xff]  ;;  %v3769_v24 = vpack.c.bf16 %v497_v63, %v495_v58  ;;  %v501_v28 = vld [vmem:[%s3671_s26 + $0x298] sm:$0xff] }
  0x6d   : > { %5509 = vst [vmem:[#allocation21_spill] sm:$0xff] %v3751_v2  ;;  %5510 = vst [vmem:[#allocation22_spill] sm:$0xff] %v3753_v4  ;;  %v1067_v18 = vunpack.c.l.bf16 %v3751_v2  ;;  %v1069_v19 = vunpack.c.h.bf16 %v3751_v2  ;;  %v1066_v20 = vunpack.c.l.bf16 %v3753_v4  ;;  %v1068_v22 = vunpack.c.h.bf16 %v3753_v4  ;;  %v498_v29 = vld [vmem:[%s3671_s26 + $0x280] sm:$0xff]  ;;  %v500_v30 = vld [vmem:[%s3671_s26 + $0x290] sm:$0xff] }
  0x6e   : > { %5511 = vst [vmem:[#allocation23_spill] sm:$0xff] %v3755_v5  ;;  %5512 = vst [vmem:[#allocation24_spill] sm:$0xff] %v3761_v13  ;;  %1895 = vmatprep.subr.bf16.mxu0 %v1285_v11  ;;  %v3771_v25 = vpack.c.bf16 %v496_v1, %v494_v0  ;;  %v3773_v26 = vpack.c.bf16 %v441_v9, %v439_v6  ;;  %v3775_v27 = vpack.c.bf16 %v440_v14, %v438_v10  ;;  %v445_v47 = vld [vmem:[%s3671_s26 + $0xd8] sm:$0xff]  ;;  %v442_v48 = vld [vmem:[%s3671_s26 + $0xc0] sm:$0xff] }
  0x6f   : > { %5513 = vst [vmem:[#allocation25_spill] sm:$0xff] %v3769_v24  ;;  %1321 = vmatpush1.bf16.msra.mxu1 %v3742_v55  ;;  %v1195_v31 = vsub.f32 %v491_v42, %v1067_v18  ;;  %v1197_v35 = vsub.f32 %v493_v43, %v1069_v19  ;;  %v1194_v36 = vsub.f32 %v490_v44, %v1066_v20  ;;  %v1071_v38 = vunpack.c.l.bf16 %v3769_v24  ;;  %v443_v44 = vld [vmem:[%s3671_s26 + $0xc8] sm:$0xff]  ;;  %v444_v53 = vld [vmem:[%s3671_s26 + $0xd0] sm:$0xff]  ;;  %v505_v57 = vld [vmem:[%s3671_s26 + $0x2b8] sm:$0xff] }
  0x70   : > { %5514 = vst [vmem:[#allocation26_spill] sm:$0xff] %v3771_v25  ;;  %5515 = vst [vmem:[#allocation27_spill] sm:$0xff] %v3773_v26  ;;  %v1196_v37 = vsub.f32 %v492_v49, %v1068_v22  ;;  %1896 = vmatpush1.bf16.msra.mxu0 %v1284_v12  ;;  %1322 = vmatprep.subr.bf16.mxu1 %v3755_v5  ;;  %v1073_v39 = vunpack.c.h.bf16 %v3769_v24  ;;  %v1070_v40 = vunpack.c.l.bf16 %v3771_v25  ;;  %v1072_v41 = vunpack.c.h.bf16 %v3771_v25  ;;  %v503_v56 = vld [vmem:[%s3671_s26 + $0x2a8] sm:$0xff]  ;;  %v502_v62 = vld [vmem:[%s3671_s26 + $0x2a0] sm:$0xff] }
  0x71   : > { %5516 = vst [vmem:[#allocation28_spill] sm:$0xff] %v3775_v27  ;;  %v1287_v45 = vpack.c.bf16 %v1197_v35, %v1195_v31  ;;  %v3786_v46 = vpack.c.bf16 %v501_v28, %v499_v23  ;;  %v3788_v43 = vpack.c.bf16 %v500_v30, %v498_v29  ;;  %v1199_v49 = vsub.f32 %v495_v58, %v1071_v38  ;;  %v449_v10 = vld [vmem:[%s3671_s26 + $0xf8] sm:$0xff]  ;;  %v507_v11 = vld [vmem:[%s3671_s26 + $0x2c8] sm:$0xff]  ;;  %v446_v22 = vld [vmem:[%s3671_s26 + $0xe0] sm:$0xff] }
  0x72   : > { %v1286_v42 = vpack.c.bf16 %v1196_v37, %v1194_v36  ;;  %v1201_v50 = vsub.f32 %v497_v63, %v1073_v39  ;;  %v1198_v51 = vsub.f32 %v494_v0, %v1070_v40  ;;  %v1200_v52 = vsub.f32 %v496_v1, %v1072_v41  ;;  %v504_v63 = vld [vmem:[%s3671_s26 + $0x2b0] sm:$0xff]  ;;  %v447_v0 = vld [vmem:[%s3671_s26 + $0xe8] sm:$0xff]  ;;  %v509_v12 = vld [vmem:[%s3671_s26 + $0x2d8] sm:$0xff] }
  0x73   : > { %5517 = vst [vmem:[#allocation29_spill] sm:$0xff] %v3786_v46  ;;  %5518 = vst [vmem:[#allocation30_spill] sm:$0xff] %v3788_v43  ;;  %1897 = vmatprep.subr.bf16.mxu0 %v1287_v45  ;;  %1323 = vmatpush1.bf16.msra.mxu1 %v3761_v13  ;;  %v1075_v59 = vunpack.c.l.bf16 %v3786_v46  ;;  %v1077_v60 = vunpack.c.h.bf16 %v3786_v46  ;;  %v1074_v61 = vunpack.c.l.bf16 %v3788_v43  ;;  %v1076_v58 = vunpack.c.h.bf16 %v3788_v43  ;;  %v448_v37 = vld [vmem:[%s3671_s26 + $0xf0] sm:$0xff]  ;;  %v506_v38 = vld [vmem:[%s3671_s26 + $0x2c0] sm:$0xff] }
  0x74   : > { %1898 = vmatpush1.bf16.msra.mxu0 %v1286_v42  ;;  %v1289_v1 = vpack.c.bf16 %v1201_v50, %v1199_v49  ;;  %v1288_v6 = vpack.c.bf16 %v1200_v52, %v1198_v51  ;;  %1324 = vmatprep.subr.bf16.mxu1 %v3773_v26  ;;  %v3805_v9 = vpack.c.bf16 %v445_v47, %v443_v44  ;;  %v508_v39 = vld [vmem:[%s3671_s26 + $0x2d0] sm:$0xff]  ;;  %v451_v44 = vld [vmem:[%s3671_s26 + $0x108] sm:$0xff]  ;;  %v453_v47 = vld [vmem:[%s3671_s26 + $0x118] sm:$0xff] }
  0x75   : > { %v1203_v14 = vsub.f32 %v499_v23, %v1075_v59  ;;  %v1205_v18 = vsub.f32 %v501_v28, %v1077_v60  ;;  %v1202_v19 = vsub.f32 %v498_v29, %v1074_v61  ;;  %v1204_v20 = vsub.f32 %v500_v30, %v1076_v58  ;;  %v450_v52 = vld [vmem:[%s3671_s26 + $0x100] sm:$0xff]  ;;  %v511_v59 = vld [vmem:[%s3671_s26 + $0x2e8] sm:$0xff]  ;;  %v513_v60 = vld [vmem:[%s3671_s26 + $0x2f8] sm:$0xff] }
  0x76   : > { %5519 = vst [vmem:[#allocation31_spill] sm:$0xff] %v3805_v9  ;;  %1899 = vmatprep.subr.bf16.mxu0 %v1289_v1  ;;  %v3811_v31 = vpack.c.bf16 %v444_v53, %v442_v48  ;;  %v3813_v35 = vpack.c.bf16 %v505_v57, %v503_v56  ;;  %v3815_v36 = vpack.c.bf16 %v504_v63, %v502_v62  ;;  %v452_v53 = vld [vmem:[%s3671_s26 + $0x110] sm:$0xff]  ;;  %v523_v13 = vld [vmem:[%s3671_s26 + $0x348] sm:$0xff] }
  0x77   : > { %1325 = vmatpush1.bf16.msra.mxu1 %v3775_v27  ;;  %v1291_v40 = vpack.c.bf16 %v1205_v18, %v1203_v14  ;;  %v1290_v23 = vpack.c.bf16 %v1204_v20, %v1202_v19  ;;  %v3821_v28 = vpack.c.bf16 %v449_v10, %v447_v0  ;;  %v3823_v29 = vpack.c.bf16 %v509_v12, %v507_v11  ;;  %v512_v10 = vld [vmem:[%s3671_s26 + $0x2f0] sm:$0xff]  ;;  %v455_v14 = vld [vmem:[%s3671_s26 + $0x128] sm:$0xff] }
  0x78   : > { %5520 = vst [vmem:[#allocation32_spill] sm:$0xff] %v3811_v31  ;;  %5521 = vst [vmem:[#allocation33_spill] sm:$0xff] %v3813_v35  ;;  %1900 = vmatpush1.bf16.msra.mxu0 %v1288_v6  ;;  %1326 = vmatprep.subr.bf16.mxu1 %v3805_v9  ;;  %v1079_v30 = vunpack.c.l.bf16 %v3813_v35  ;;  %v1081_v41 = vunpack.c.h.bf16 %v3813_v35  ;;  %v1078_v45 = vunpack.c.l.bf16 %v3815_v36  ;;  %v1080_v42 = vunpack.c.h.bf16 %v3815_v36  ;;  %v510_v6 = vld [vmem:[%s3671_s26 + $0x2e0] sm:$0xff]  ;;  %v517_v9 = vld [vmem:[%s3671_s26 + $0x318] sm:$0xff] }
  0x79   : > { %5522 = vst [vmem:[#allocation34_spill] sm:$0xff] %v3815_v36  ;;  %5523 = vst [vmem:[#allocation35_spill] sm:$0xff] %v3821_v28  ;;  %1901 = vmatprep.subr.bf16.mxu0 %v1291_v40  ;;  %v3832_v48 = vpack.c.bf16 %v448_v37, %v446_v22  ;;  %v1083_v49 = vunpack.c.l.bf16 %v3823_v29  ;;  %v1085_v50 = vunpack.c.h.bf16 %v3823_v29  ;;  %v3836_v51 = vpack.c.bf16 %v508_v39, %v506_v38  ;;  %v457_v37 = vld [vmem:[%s3671_s26 + $0x138] sm:$0xff]  ;;  %v515_v40 = vld [vmem:[%s3671_s26 + $0x308] sm:$0xff] }
  0x7a   : > { %5524 = vst [vmem:[#allocation36_spill] sm:$0xff] %v3823_v29  ;;  %v1207_v61 = vsub.f32 %v503_v56, %v1079_v30  ;;  %v1209_v58 = vsub.f32 %v505_v57, %v1081_v41  ;;  %v1206_v0 = vsub.f32 %v502_v62, %v1078_v45  ;;  %v1208_v1 = vsub.f32 %v504_v63, %v1080_v42  ;;  %v514_v63 = vld [vmem:[%s3671_s26 + $0x300] sm:$0xff]  ;;  %v516_v30 = vld [vmem:[%s3671_s26 + $0x310] sm:$0xff] }
  0x7b   : > { %5525 = vst [vmem:[#allocation37_spill] sm:$0xff] %v3832_v48  ;;  %5526 = vst [vmem:[#allocation38_spill] sm:$0xff] %v3836_v51  ;;  %1327 = vmatpush1.bf16.msra.mxu1 %v3811_v31  ;;  %v1211_v18 = vsub.f32 %v507_v11, %v1083_v49  ;;  %v1213_v19 = vsub.f32 %v509_v12, %v1085_v50  ;;  %v1082_v20 = vunpack.c.l.bf16 %v3836_v51  ;;  %v1084_v22 = vunpack.c.h.bf16 %v3836_v51  ;;  %v454_v50 = vld [vmem:[%s3671_s26 + $0x120] sm:$0xff]  ;;  %v465_v31 = vld [vmem:[%s3671_s26 + $0x178] sm:$0xff] }
  0x7c   : > { %1902 = vmatpush1.bf16.msra.mxu0 %v1290_v23  ;;  %v1293_v56 = vpack.c.bf16 %v1209_v58, %v1207_v61  ;;  %v1292_v57 = vpack.c.bf16 %v1208_v1, %v1206_v0  ;;  %1328 = vmatprep.subr.bf16.mxu1 %v3821_v28  ;;  %v3852_v62 = vpack.c.bf16 %v453_v47, %v451_v44  ;;  %v459_v61 = vld [vmem:[%s3671_s26 + $0x148] sm:$0xff]  ;;  %v461_v58 = vld [vmem:[%s3671_s26 + $0x158] sm:$0xff]  ;;  %v462_v51 = vld [vmem:[%s3671_s26 + $0x160] sm:$0xff] }
  0x7d   : > { %v1295_v11 = vpack.c.bf16 %v1213_v19, %v1211_v18  ;;  %v1210_v12 = vsub.f32 %v506_v38, %v1082_v20  ;;  %v1212_v41 = vsub.f32 %v508_v39, %v1084_v22  ;;  %v3856_v45 = vpack.c.bf16 %v513_v60, %v511_v59  ;;  %v458_v19 = vld [vmem:[%s3671_s26 + $0x140] sm:$0xff]  ;;  %v460_v20 = vld [vmem:[%s3671_s26 + $0x150] sm:$0xff]  ;;  %v519_v22 = vld [vmem:[%s3671_s26 + $0x328] sm:$0xff] }
  0x7e   : > { %5527 = vst [vmem:[#allocation39_spill] sm:$0xff] %v3852_v62  ;;  %1903 = vmatprep.subr.bf16.mxu0 %v1293_v56  ;;  %v3858_v42 = vpack.c.bf16 %v452_v53, %v450_v52  ;;  %v3860_v23 = vpack.c.bf16 %v512_v10, %v510_v6  ;;  %v3862_v49 = vpack.c.bf16 %v457_v37, %v455_v14  ;;  %v456_v52 = vld [vmem:[%s3671_s26 + $0x130] sm:$0xff]  ;;  %v521_v37 = vld [vmem:[%s3671_s26 + $0x338] sm:$0xff]  ;;  %v518_v56 = vld [vmem:[%s3671_s26 + $0x320] sm:$0xff] }
  0x7f   : > { %5528 = vst [vmem:[#allocation40_spill] sm:$0xff] %v3856_v45  ;;  %v3865_v44 = vpack.c.bf16 %v517_v9, %v515_v40  ;;  %1329 = vmatpush1.bf16.msra.mxu1 %v3832_v48  ;;  %v1294_v38 = vpack.c.bf16 %v1212_v41, %v1210_v12  ;;  %v1087_v39 = vunpack.c.l.bf16 %v3856_v45  ;;  %v1089_v47 = vunpack.c.h.bf16 %v3856_v45  ;;  %v520_v48 = vld [vmem:[%s3671_s26 + $0x330] sm:$0xff]  ;;  %v463_v28 = vld [vmem:[%s3671_s26 + $0x168] sm:$0xff] }
  0x80   : > { %5529 = vst [vmem:[#allocation41_spill] sm:$0xff] %v3858_v42  ;;  %5530 = vst [vmem:[#allocation42_spill] sm:$0xff] %v3860_v23  ;;  %v3871_v53 = vpack.c.bf16 %v516_v30, %v514_v63  ;;  %1904 = vmatpush1.bf16.msra.mxu0 %v1292_v57  ;;  %1330 = vmatprep.subr.bf16.mxu1 %v3852_v62  ;;  %v1086_v0 = vunpack.c.l.bf16 %v3860_v23  ;;  %v1088_v1 = vunpack.c.h.bf16 %v3860_v23  ;;  %v464_v26 = vld [vmem:[%s3671_s26 + $0x170] sm:$0xff] }
  0x81   : > { %5531 = vst [vmem:[#allocation43_spill] sm:$0xff] %v3862_v49  ;;  %5532 = vst [vmem:[#allocation44_spill] sm:$0xff] %v3865_v44  ;;  %v1091_v14 = vunpack.c.l.bf16 %v3865_v44  ;;  %v1093_v18 = vunpack.c.h.bf16 %v3865_v44  ;;  %1905 = vmatprep.subr.bf16.mxu0 %v1295_v11  ;;  %v1215_v57 = vsub.f32 %v511_v59, %v1087_v39  ;;  %v1217_v12 = vsub.f32 %v513_v60, %v1089_v47  ;;  %v525_v47 = vld [vmem:[%s3671_s26 + $0x358] sm:$0xff]  ;;  %v524_v29 = vld [vmem:[%s3671_s26 + $0x350] sm:$0xff] }
  0x82   : > { %5533 = vst [vmem:[#allocation45_spill] sm:$0xff] %v3871_v53  ;;  %v1090_v41 = vunpack.c.l.bf16 %v3871_v53  ;;  %v1092_v62 = vunpack.c.h.bf16 %v3871_v53  ;;  %v1214_v44 = vsub.f32 %v510_v6, %v1086_v0  ;;  %v1216_v23 = vsub.f32 %v512_v10, %v1088_v1  ;;  %v522_v53 = vld [vmem:[%s3671_s26 + $0x340] sm:$0xff]  ;;  %v468_v1 = vld [vmem:[%s3671_s26 + $0x190] sm:$0xff] }
  0x83   : > { %v1219_v27 = vsub.f32 %v515_v40, %v1091_v14  ;;  %v1221_v45 = vsub.f32 %v517_v9, %v1093_v18  ;;  %1331 = vmatpush1.bf16.msra.mxu1 %v3858_v42  ;;  %v1297_v59 = vpack.c.bf16 %v1217_v12, %v1215_v57  ;;  %v3894_v60 = vpack.c.bf16 %v456_v52, %v454_v50  ;;  %v527_v14 = vld [vmem:[%s3671_s26 + $0x368] sm:$0xff]  ;;  %v529_v18 = vld [vmem:[%s3671_s26 + $0x378] sm:$0xff]  ;;  %v526_v12 = vld [vmem:[%s3671_s26 + $0x360] sm:$0xff] }
  0x84   : > { %v1218_v11 = vsub.f32 %v514_v63, %v1090_v41  ;;  %v1220_v39 = vsub.f32 %v516_v30, %v1092_v62  ;;  %1906 = vmatpush1.bf16.msra.mxu0 %v1294_v38  ;;  %v1296_v36 = vpack.c.bf16 %v1216_v23, %v1214_v44  ;;  %1332 = vmatprep.subr.bf16.mxu1 %v3862_v49  ;;  %v528_v41 = vld [vmem:[%s3671_s26 + $0x370] sm:$0xff]  ;;  %v470_v49 = vld [vmem:[%s3671_s26 + $0x1a0] sm:$0xff]  ;;  %v545_v42 = vld [vmem:[%s3671_s26 + $0x3f8] sm:$0xff] }
  0x85   : > { %5534 = vst [vmem:[#allocation46_spill] sm:$0xff] %v3894_v60  ;;  %v1299_v6 = vpack.c.bf16 %v1221_v45, %v1219_v27  ;;  %v3900_v9 = vpack.c.bf16 %v461_v58, %v459_v61  ;;  %1907 = vmatprep.subr.bf16.mxu0 %v1297_v59  ;;  %v3902_v40 = vpack.c.bf16 %v460_v20, %v458_v19  ;;  %v471_v59 = vld [vmem:[%s3671_s26 + $0x1a8] sm:$0xff] }
  0x86   : > { %v1298_v10 = vpack.c.bf16 %v1220_v39, %v1218_v11  ;;  %v3904_v50 = vpack.c.bf16 %v521_v37, %v519_v22  ;;  %v3906_v62 = vpack.c.bf16 %v520_v48, %v518_v56  ;;  %v3908_v63 = vpack.c.bf16 %v465_v31, %v463_v28  ;;  %v467_v28 = vld [vmem:[%s3671_s26 + $0x188] sm:$0xff] }
  0x87   : > { %5535 = vst [vmem:[#allocation47_spill] sm:$0xff] %v3900_v9  ;;  %5536 = vst [vmem:[#allocation48_spill] sm:$0xff] %v3902_v40  ;;  %v3910_v30 = vpack.c.bf16 %v464_v26, %v462_v51  ;;  %v3912_v23 = vpack.c.bf16 %v525_v47, %v523_v13  ;;  %v3914_v27 = vpack.c.bf16 %v524_v29, %v522_v53  ;;  %1333 = vmatpush1.bf16.msra.mxu1 %v3894_v60  ;;  %v469_v26 = vld [vmem:[%s3671_s26 + $0x198] sm:$0xff]  ;;  %v466_v51 = vld [vmem:[%s3671_s26 + $0x180] sm:$0xff] }
  0x88   : > { %5537 = vst [vmem:[#allocation49_spill] sm:$0xff] %v3904_v50  ;;  %5538 = vst [vmem:[#allocation50_spill] sm:$0xff] %v3906_v62  ;;  %v1095_v45 = vunpack.c.l.bf16 %v3904_v50  ;;  %v1097_v44 = vunpack.c.h.bf16 %v3904_v50  ;;  %v1094_v38 = vunpack.c.l.bf16 %v3906_v62  ;;  %v1096_v31 = vunpack.c.h.bf16 %v3906_v62  ;;  %1908 = vmatpush1.bf16.msra.mxu0 %v1296_v36  ;;  %1334 = vmatprep.subr.bf16.mxu1 %v3900_v9 }
  0x89   : > { %5539 = vst [vmem:[#allocation51_spill] sm:$0xff] %v3908_v63  ;;  %5540 = vst [vmem:[#allocation52_spill] sm:$0xff] %v3910_v30  ;;  %v1099_v52 = vunpack.c.l.bf16 %v3912_v23  ;;  %v1101_v61 = vunpack.c.h.bf16 %v3912_v23  ;;  %v1098_v58 = vunpack.c.l.bf16 %v3914_v27  ;;  %v1100_v0 = vunpack.c.h.bf16 %v3914_v27  ;;  %1909 = vmatprep.subr.bf16.mxu0 %v1299_v6 }
  0x8a   : > { %5541 = vst [vmem:[#allocation53_spill] sm:$0xff] %v3912_v23  ;;  %5542 = vst [vmem:[#allocation54_spill] sm:$0xff] %v3914_v27  ;;  %v1223_v19 = vsub.f32 %v519_v22, %v1095_v45  ;;  %v1225_v36 = vsub.f32 %v521_v37, %v1097_v44  ;;  %v1222_v20 = vsub.f32 %v518_v56, %v1094_v38  ;;  %v473_v27 = vld [vmem:[%s3671_s26 + $0x1b8] sm:$0xff]  ;;  %v531_v22 = vld [vmem:[%s3671_s26 + $0x388] sm:$0xff] }
  0x8b   : > { %v1224_v57 = vsub.f32 %v520_v48, %v1096_v31  ;;  %v1227_v11 = vsub.f32 %v523_v13, %v1099_v52  ;;  %v1229_v39 = vsub.f32 %v525_v47, %v1101_v61  ;;  %v3935_v9 = vsub.f32 %v522_v53, %v1098_v58  ;;  %1335 = vmatpush1.bf16.msra.mxu1 %v3902_v40  ;;  %v533_v13 = vld [vmem:[%s3671_s26 + $0x398] sm:$0xff]  ;;  %v530_v47 = vld [vmem:[%s3671_s26 + $0x380] sm:$0xff]  ;;  %v532_v53 = vld [vmem:[%s3671_s26 + $0x390] sm:$0xff] }
  0x8c   : > { %v3937_v60 = vsub.f32 %v524_v29, %v1100_v0  ;;  %v1301_v48 = vpack.c.bf16 %v1225_v36, %v1223_v19  ;;  %v3943_v56 = vpack.c.bf16 %v469_v26, %v467_v28  ;;  %v3945_v6 = vpack.c.bf16 %v529_v18, %v527_v14  ;;  %1910 = vmatpush1.bf16.msra.mxu0 %v1298_v10  ;;  %v472_v38 = vld [vmem:[%s3671_s26 + $0x1b0] sm:$0xff]  ;;  %v475_v31 = vld [vmem:[%s3671_s26 + $0x1c8] sm:$0xff]  ;;  %v477_v28 = vld [vmem:[%s3671_s26 + $0x1d8] sm:$0xff] }
  0x8d   : > { %v1300_v37 = vpack.c.bf16 %v1224_v57, %v1222_v20  ;;  %1336 = vmatprep.subr.bf16.mxu1 %v3908_v63  ;;  %v1303_v29 = vpack.c.bf16 %v1229_v39, %v1227_v11  ;;  %v3951_v45 = vpack.c.bf16 %v468_v1, %v466_v51  ;;  %v3953_v44 = vpack.c.bf16 %v528_v41, %v526_v12  ;;  %v474_v19 = vld [vmem:[%s3671_s26 + $0x1c0] sm:$0xff]  ;;  %v535_v36 = vld [vmem:[%s3671_s26 + $0x3a8] sm:$0xff]  ;;  %v536_v39 = vld [vmem:[%s3671_s26 + $0x3b0] sm:$0xff] }
  0x8e   : > { %5543 = vst [vmem:[#allocation55_spill] sm:$0xff] %v3943_v56  ;;  %5544 = vst [vmem:[#allocation56_spill] sm:$0xff] %v3945_v6  ;;  %1911 = vmatprep.subr.bf16.mxu0 %v1301_v48  ;;  %v1302_v26 = vpack.c.bf16 %v3937_v60, %v3935_v9  ;;  %v1103_v10 = vunpack.c.l.bf16 %v3945_v6  ;;  %v1105_v52 = vunpack.c.h.bf16 %v3945_v6  ;;  %v3962_v61 = vpack.c.bf16 %v473_v27, %v471_v59  ;;  %v537_v60 = vld [vmem:[%s3671_s26 + $0x3b8] sm:$0xff]  ;;  %v476_v59 = vld [vmem:[%s3671_s26 + $0x1d0] sm:$0xff] }
  0x8f   : > { %5545 = vst [vmem:[#allocation57_spill] sm:$0xff] %v3951_v45  ;;  %5546 = vst [vmem:[#allocation58_spill] sm:$0xff] %v3953_v44  ;;  %v1102_v51 = vunpack.c.l.bf16 %v3953_v44  ;;  %v1104_v58 = vunpack.c.h.bf16 %v3953_v44  ;;  %v3966_v0 = vpack.c.bf16 %v533_v13, %v531_v22  ;;  %v3968_v1 = vpack.c.bf16 %v532_v53, %v530_v47  ;;  %1337 = vmatpush1.bf16.msra.mxu1 %v3910_v30  ;;  %v534_v11 = vld [vmem:[%s3671_s26 + $0x3a0] sm:$0xff]  ;;  %v539_v30 = vld [vmem:[%s3671_s26 + $0x3c8] sm:$0xff] }
  0x90   : > { %5547 = vst [vmem:[#allocation59_spill] sm:$0xff] %v3962_v61  ;;  %v1231_v9 = vsub.f32 %v527_v14, %v1103_v10  ;;  %v1233_v20 = vsub.f32 %v529_v18, %v1105_v52  ;;  %v3974_v57 = vpack.c.bf16 %v472_v38, %v470_v49  ;;  %v3976_v27 = vpack.c.bf16 %v477_v28, %v475_v31  ;;  %v481_v10 = vld [vmem:[%s3671_s26 + $0x1f8] sm:$0xff]  ;;  %v295_v44 = vld [vmem:[#allocation2 + $0x28] sm:$0xff] }
  0x91   : > { %5548 = vst [vmem:[#allocation60_spill] sm:$0xff] %v3966_v0  ;;  %5549 = vst [vmem:[#allocation61_spill] sm:$0xff] %v3968_v1  ;;  %1912 = vmatpush1.bf16.msra.mxu0 %v1300_v37  ;;  %1338 = vmatprep.subr.bf16.mxu1 %v3943_v56  ;;  %v1230_v48 = vsub.f32 %v526_v12, %v1102_v51  ;;  %v1232_v63 = vsub.f32 %v528_v41, %v1104_v58  ;;  %v1107_v14 = vunpack.c.l.bf16 %v3966_v0  ;;  %v479_v37 = vld [vmem:[%s3671_s26 + $0x1e8] sm:$0xff]  ;;  %v478_v12 = vld [vmem:[%s3671_s26 + $0x1e0] sm:$0xff] }
  0x92   : > { %5550 = vst [vmem:[#allocation62_spill] sm:$0xff] %v3974_v57  ;;  %5551 = vst [vmem:[#allocation63_spill] sm:$0xff] %v3976_v27  ;;  %v1109_v49 = vunpack.c.h.bf16 %v3966_v0  ;;  %1913 = vmatprep.subr.bf16.mxu0 %v1303_v29  ;;  %v1305_v18 = vpack.c.bf16 %v1233_v20, %v1231_v9  ;;  %v1106_v38 = vunpack.c.l.bf16 %v3968_v1  ;;  %v1108_v31 = vunpack.c.h.bf16 %v3968_v1  ;;  %v480_v56 = vld [vmem:[%s3671_s26 + $0x1f0] sm:$0xff]  ;;  %v541_v29 = vld [vmem:[%s3671_s26 + $0x3d8] sm:$0xff] }
  0x93   : > { %v3986_v28 = vpack.c.bf16 %v537_v60, %v535_v36  ;;  %v1235_v52 = vsub.f32 %v531_v22, %v1107_v14  ;;  %v3991_v51 = vpack.c.bf16 %v476_v59, %v474_v19  ;;  %v3993_v58 = vpack.c.bf16 %v536_v39, %v534_v11  ;;  %1339 = vmatpush1.bf16.msra.mxu1 %v3951_v45  ;;  %v291_v0 = vld [vmem:[#allocation2 + $0x8] sm:$0xff]  ;;  %v538_v22 = vld [vmem:[%s3671_s26 + $0x3c0] sm:$0xff] }
  0x94   : > { %v1237_v41 = vsub.f32 %v533_v13, %v1109_v49  ;;  %v1234_v9 = vsub.f32 %v530_v47, %v1106_v38  ;;  %v1236_v20 = vsub.f32 %v532_v53, %v1108_v31  ;;  %v1304_v13 = vpack.c.bf16 %v1232_v63, %v1230_v48  ;;  %1340 = vmatprep.subr.bf16.mxu1 %v3962_v61  ;;  %v540_v47 = vld [vmem:[%s3671_s26 + $0x3d0] sm:$0xff]  ;;  %v290_v53 = vld [vmem:[#allocation2] sm:$0xff]  ;;  %v543_v6 = vld [vmem:[%s3671_s26 + $0x3e8] sm:$0xff] }
  0x95   : > { %5552 = vst [vmem:[#allocation64_spill] sm:$0xff] %v3986_v28  ;;  %5553 = vst [vmem:[#allocation65_spill] sm:$0xff] %v3993_v58  ;;  %v1111_v1 = vunpack.c.l.bf16 %v3986_v28  ;;  %v1113_v40 = vunpack.c.h.bf16 %v3986_v28  ;;  %1914 = vmatpush1.bf16.msra.mxu0 %v1302_v26  ;;  %v1110_v59 = vunpack.c.l.bf16 %v3993_v58  ;;  %v1112_v14 = vunpack.c.h.bf16 %v3993_v58  ;;  %v294_v49 = vld [vmem:[#allocation2 + $0x20] sm:$0xff]  ;;  %v299_v58 = vld [vmem:[#allocation2 + $0x48] sm:$0xff] }
  0x96   : > { %v1307_v19 = vpack.c.bf16 %v1237_v41, %v1235_v52  ;;  %1915 = vmatprep.subr.bf16.mxu0 %v1305_v18  ;;  %v1306_v38 = vpack.c.bf16 %v1236_v20, %v1234_v9  ;;  %v4006_v28 = vpack.c.bf16 %v481_v10, %v479_v37  ;;  %v4010_v63 = vpack.c.bf16 %v480_v56, %v478_v12  ;;  %v542_v10 = vld [vmem:[%s3671_s26 + $0x3e0] sm:$0xff] }
  0x97   : > { %v1239_v31 = vsub.f32 %v535_v36, %v1111_v1  ;;  %v1241_v45 = vsub.f32 %v537_v60, %v1113_v40  ;;  %v1238_v26 = vsub.f32 %v534_v11, %v1110_v59  ;;  %v4012_v48 = vpack.c.bf16 %v541_v29, %v539_v30  ;;  %1341 = vmatpush1.bf16.msra.mxu1 %v3974_v57  ;;  %v544_v59 = vld [vmem:[%s3671_s26 + $0x3f0] sm:$0xff] }
  0x98   : > { %5554 = vst [vmem:[#allocation66_spill] sm:$0xff] %v4006_v28  ;;  %5555 = vst [vmem:[#allocation67_spill] sm:$0xff] %v4010_v63  ;;  %v4014_v52 = vpack.c.bf16 %v295_v44, %v291_v0  ;;  %v1240_v61 = vsub.f32 %v536_v39, %v1112_v14  ;;  %v4017_v18 = vpack.c.bf16 %v540_v47, %v538_v22  ;;  %1342 = vmatprep.subr.bf16.mxu1 %v3976_v27  ;;  %v4034_v14 = vld [vmem:[#allocation2 + $0x18] sm:$0xff] }
  0x99   : > { %5556 = vst [vmem:[#allocation68_spill] sm:$0xff] %v4012_v48  ;;  %v1309_v41 = vpack.c.bf16 %v1241_v45, %v1239_v31  ;;  %v4019_v1 = vpack.c.bf16 %v294_v49, %v290_v53  ;;  %1916 = vmatpush1.bf16.msra.mxu0 %v1304_v13  ;;  %v1115_v40 = vunpack.c.l.bf16 %v4012_v48  ;;  %v1117_v56 = vunpack.c.h.bf16 %v4012_v48  ;;  %v4036_v31 = vld [vmem:[#allocation2 + $0x38] sm:$0xff]  ;;  %v296_v48 = vld [vmem:[#allocation2 + $0x30] sm:$0xff] }
  0x9a   : > { %5557 = vst [vmem:[#allocation69_spill] sm:$0xff] %v4014_v52  ;;  %5558 = vst [vmem:[#allocation70_spill] sm:$0xff] %v4017_v18  ;;  %v611_v36 = vunpack.c.l.bf16 %v4014_v52  ;;  %v4025_v60 = vpack.c.bf16 %v545_v42, %v543_v6  ;;  %1917 = vmatprep.subr.bf16.mxu0 %v1307_v19  ;;  %v615_v45 = vunpack.c.h.bf16 %v4014_v52  ;;  %v1114_v11 = vunpack.c.l.bf16 %v4017_v18 }
  0x9b   : > { %5559 = vst [vmem:[#allocation71_spill] sm:$0xff] %v4019_v1  ;;  %v1116_v39 = vunpack.c.h.bf16 %v4017_v18  ;;  %v610_v37 = vunpack.c.l.bf16 %v4019_v1  ;;  %v1243_v12 = vsub.f32 %v539_v30, %v1115_v40  ;;  %v1245_v9 = vsub.f32 %v541_v29, %v1117_v56  ;;  %1343 = vmatpush1.bf16.msra.mxu1 %v3991_v51  ;;  %v292_v18 = vld [vmem:[#allocation2 + $0x10] sm:$0xff]  ;;  %v303_v56 = vld [vmem:[#allocation2 + $0x68] sm:$0xff] }
  0x9c   : > { %5560 = vst [vmem:[#allocation72_spill] sm:$0xff] %v4025_v60  ;;  %v739_v20 = vsub.f32 %v291_v0, %v611_v36  ;;  %v614_v13 = vunpack.c.h.bf16 %v4019_v1  ;;  %v1308_v19 = vpack.c.bf16 %v1240_v61, %v1238_v26  ;;  %v743_v52 = vsub.f32 %v295_v44, %v615_v45  ;;  %1344 = vmatprep.subr.bf16.mxu1 %v4006_v28  ;;  %v298_v36 = vld [vmem:[#allocation2 + $0x40] sm:$0xff] }
  0x9d   : > { %v1242_v27 = vsub.f32 %v538_v22, %v1114_v11  ;;  %v738_v57 = vsub.f32 %v290_v53, %v610_v37  ;;  %1918 = vmatpush1.bf16.msra.mxu0 %v1306_v38  ;;  %v1244_v30 = vsub.f32 %v540_v47, %v1116_v39  ;;  %v1119_v29 = vunpack.c.l.bf16 %v4025_v60  ;;  %v302_v1 = vld [vmem:[#allocation2 + $0x60] sm:$0xff] }
  0x9e   : > { %v742_v0 = vsub.f32 %v294_v49, %v614_v13  ;;  %v1121_v40 = vunpack.c.h.bf16 %v4025_v60  ;;  %1919 = vmatprep.subr.bf16.mxu0 %v1309_v41  ;;  %v1311_v61 = vpack.c.bf16 %v1245_v9, %v1243_v12  ;;  %v867_v44 = vpack.c.bf16 %v743_v52, %v739_v20  ;;  %v307_v13 = vld [vmem:[#allocation2 + $0x88] sm:$0xff] }
  0x9f   : > { %v4042_v22 = vpack.c.bf16 %v544_v59, %v542_v10  ;;  %v4046_v53 = vpack.c.bf16 %v4036_v31, %v4034_v14  ;;  %v1247_v26 = vsub.f32 %v543_v6, %v1119_v29  ;;  %v4048_v49 = vpack.c.bf16 %v296_v48, %v292_v18  ;;  %1345 = vmatpush1.bf16.msra.mxu1 %v4010_v63  ;;  %v311_v29 = vld [vmem:[#allocation2 + $0xa8] sm:$0xff] }
  0xa0   : > { %v866_v38 = vpack.c.bf16 %v742_v0, %v738_v57  ;;  %v1249_v47 = vsub.f32 %v545_v42, %v1121_v40  ;;  %1346 = vmatprep.mubr.bf16.mxu1 %v867_v44  ;;  %v4053_v11 = vpack.c.bf16 %v303_v56, %v299_v58  ;;  %v4055_v52 = vpack.c.bf16 %v302_v1, %v298_v36  ;;  %v306_v40 = vld [vmem:[#allocation2 + $0x80] sm:$0xff] }
  0xa1   : > { %5561 = vst [vmem:[#allocation73_spill] sm:$0xff] %v4042_v22  ;;  %5562 = vst [vmem:[#allocation74_spill] sm:$0xff] %v4046_v53  ;;  %v1118_v45 = vunpack.c.l.bf16 %v4042_v22  ;;  %v1120_v41 = vunpack.c.h.bf16 %v4042_v22  ;;  %1920 = vmatpush1.bf16.msra.mxu0 %v1308_v19  ;;  %v1310_v39 = vpack.c.bf16 %v1244_v30, %v1242_v27  ;;  %1925 = vmatprep.mubr.bf16.mxu0 %v4046_v53  ;;  %v612_v42 = vunpack.c.l.bf16 %v4048_v49 }
  0xa2   : > { %5563 = vst [vmem:[#allocation75_spill] sm:$0xff] %v4048_v49  ;;  %5564 = vst [vmem:[#allocation76_spill] sm:$0xff] %v4053_v11  ;;  %v1313_v37 = vpack.c.bf16 %v1249_v47, %v1247_v26  ;;  %v616_v6 = vunpack.c.h.bf16 %v4048_v49  ;;  %1921 = vmatprep.subr.bf16.mxu0 %v1311_v61  ;;  %1507 = vmatprep.subr.bf16.mxu1 %v3699_v16  ;;  %v619_v9 = vunpack.c.l.bf16 %v4053_v11  ;;  %v623_v20 = vunpack.c.h.bf16 %v4053_v11  ;;  %v315_v26 = vld [vmem:[#allocation2 + $0xc8] sm:$0xff] }
  0xa3   : > { %5565 = vst [vmem:[#allocation77_spill] sm:$0xff] %v4055_v52  ;;  %v1246_v57 = vsub.f32 %v542_v10, %v1118_v45  ;;  %v1248_v12 = vsub.f32 %v544_v59, %v1120_v41  ;;  %1347 = vmatmul.mubr.bf16.vlgmr.msra.gmra.mrb[0].mxu1 %v866_v38  ;;  %v4063_v19 = vsub.f32 %v292_v18, %v612_v42  ;;  %v618_v30 = vunpack.c.l.bf16 %v4055_v52  ;;  %v310_v10 = vld [vmem:[#allocation2 + $0xa0] sm:$0xff]  ;;  %v319_v47 = vld [vmem:[#allocation2 + $0xe8] sm:$0xff]  ;;  %v4073_v41 = vld [vmem:[#allocation2 + $0x58] sm:$0xff] }
  0xa4   : > { %v4065_v27 = vsub.f32 %v296_v48, %v616_v6  ;;  %v622_v0 = vunpack.c.h.bf16 %v4055_v52  ;;  %v747_v61 = vsub.f32 %v299_v58, %v619_v9  ;;  %v751_v44 = vsub.f32 %v303_v56, %v623_v20  ;;  %1508 = vmatpush1.bf16.msra.mxu1 %v3701_v17  ;;  %v4075_v42 = vld [vmem:[#allocation2 + $0x78] sm:$0xff]  ;;  %v318_v9 = vld [vmem:[#allocation2 + $0xe0] sm:$0xff]  ;;  %v327_v18 = vld [vmem:[#allocation2 + $0x128] sm:$0xff] }
  0xa5   : > { %5566 = vst [vmem:[#allocation78_spill] sm:$0xff] %v4063_v19  ;;  %v1312_v59 = vpack.c.bf16 %v1248_v12, %v1246_v57  ;;  %1922 = vmatpush1.bf16.msra.mxu0 %v1310_v39  ;;  %v746_v48 = vsub.f32 %v298_v36, %v618_v30  ;;  %1509 = vmatprep.subr.bf16.mxu1 %v3721_v33  ;;  %v314_v12 = vld [vmem:[#allocation2 + $0xc0] sm:$0xff]  ;;  %v4172_v33 = vld [vmem:[#allocation2 + $0xf0] sm:$0xff] }
  0xa6   : > { %5567 = vst [vmem:[#allocation79_spill] sm:$0xff] %v4065_v27  ;;  %v750_v38 = vsub.f32 %v302_v1, %v622_v0  ;;  %1923 = vmatprep.subr.bf16.mxu0 %v1313_v37  ;;  %v871_v45 = vpack.c.bf16 %v751_v44, %v747_v61  ;;  %v4077_v58 = vpack.c.bf16 %v311_v29, %v307_v13  ;;  %v338_v17 = vld [vmem:[#allocation2 + $0x180] sm:$0xff] }
  0xa7   : > { %v4079_v56 = vpack.c.bf16 %v310_v10, %v306_v40  ;;  %v4081_v57 = vpack.c.bf16 %v319_v47, %v315_v26  ;;  %v4090_v20 = vpack.c.bf16 %v4075_v42, %v4073_v41 }
  0xa8   : > { %5568 = vst [vmem:[#allocation80_spill] sm:$0xff] %v4077_v58  ;;  %v870_v6 = vpack.c.bf16 %v750_v38, %v746_v48  ;;  %1356 = vmatprep.mubr.bf16.mxu1 %v871_v45  ;;  %v627_v39 = vunpack.c.l.bf16 %v4077_v58  ;;  %v631_v1 = vunpack.c.h.bf16 %v4077_v58  ;;  %1510 = vmatpush1.bf16.msra.mxu1 %v3723_v34  ;;  %v4096_v45 = vpack.c.bf16 %v318_v9, %v314_v12  ;;  %v4170_v34 = vld [vmem:[#allocation2 + $0xd0] sm:$0xff] }
  0xa9   : > { %5569 = vst [vmem:[#allocation81_spill] sm:$0xff] %v4079_v56  ;;  %5570 = vst [vmem:[#allocation82_spill] sm:$0xff] %v4081_v57  ;;  %v626_v36 = vunpack.c.l.bf16 %v4079_v56  ;;  %v630_v37 = vunpack.c.h.bf16 %v4079_v56  ;;  %1924 = vmatpush1.bf16.msra.mxu0 %v1312_v59  ;;  %1511 = vmatprep.subr.bf16.mxu1 %v3751_v2  ;;  %v635_v30 = vunpack.c.l.bf16 %v4081_v57  ;;  %v639_v0 = vunpack.c.h.bf16 %v4081_v57  ;;  %v323_v59 = vld [vmem:[#allocation2 + $0x108] sm:$0xff]  ;;  %v4136_v57 = vld [vmem:[#allocation2 + $0x90] sm:$0xff] }
  0xaa   : > { %5571 = vst [vmem:[#allocation83_spill] sm:$0xff] %v4090_v20  ;;  %2086 = vmatprep.subr.bf16.mxu0 %v3680_v3  ;;  %v755_v61 = vsub.f32 %v307_v13, %v627_v39  ;;  %v759_v44 = vsub.f32 %v311_v29, %v631_v1  ;;  %5572 = vst [vmem:[#allocation84_spill] sm:$0xff] %v4096_v45  ;;  %v4102_v13 = vld [vmem:[#allocation2 + $0x50] sm:$0xff]  ;;  %v638_v39 = vunpack.c.h.bf16 %v4096_v45 }
  0xab   : > { %1357 = vmatmul.mubr.bf16.gmra.mrb[4].mxu1 %v870_v6  ;;  %v754_v48 = vsub.f32 %v306_v40, %v626_v36  ;;  %v758_v38 = vsub.f32 %v310_v10, %v630_v37  ;;  %v763_v58 = vsub.f32 %v315_v26, %v635_v30  ;;  %v767_v52 = vsub.f32 %v319_v47, %v639_v0  ;;  %v4104_v29 = vld [vmem:[#allocation2 + $0x70] sm:$0xff]  ;;  %v4107_v40 = vld [vmem:[#allocation2 + $0x98] sm:$0xff]  ;;  %v322_v30 = vld [vmem:[#allocation2 + $0x100] sm:$0xff] }
  0xac   : > { %1926 = vmatmul.mubr.bf16.vlgmr.msra.gmra.mrb[0].mxu0 %v4048_v49  ;;  %v875_v56 = vpack.c.bf16 %v759_v44, %v755_v61  ;;  %1512 = vmatpush1.bf16.msra.mxu1 %v3753_v4  ;;  %v4109_v10 = vld [vmem:[#allocation2 + $0xb8] sm:$0xff]  ;;  %v4111_v6 = vpack.c.bf16 %v327_v18, %v323_v59  ;;  %v634_v47 = vunpack.c.l.bf16 %v4096_v45  ;;  %v4118_v1 = vpack.c.bf16 %v4104_v29, %v4102_v13  ;;  %v326_v0 = vld [vmem:[#allocation2 + $0x120] sm:$0xff]  ;;  %v331_v44 = vld [vmem:[#allocation2 + $0x148] sm:$0xff] }
  0xad   : > { %2087 = vmatpush1.bf16.msra.mxu0 %v3685_v7  ;;  %1935 = vmatprep.mubr.bf16.mxu0 %v4090_v20  ;;  %v874_v26 = vpack.c.bf16 %v758_v38, %v754_v48  ;;  %v879_v36 = vpack.c.bf16 %v767_v52, %v763_v58  ;;  %v4126_v61 = vpack.c.bf16 %v4109_v10, %v4107_v40  ;;  %v335_v48 = vld [vmem:[#allocation2 + $0x168] sm:$0xff]  ;;  %v4271_v7 = vld [vmem:[#allocation2 + $0x1b0] sm:$0xff] }
  0xae   : > { %2088 = vmatprep.subr.bf16.mxu0 %v3687_v8  ;;  %1366 = vmatprep.mubr.bf16.mxu1 %v875_v56  ;;  %5573 = vst [vmem:[#allocation85_spill] sm:$0xff] %v4111_v6  ;;  %5574 = vst [vmem:[#allocation86_spill] sm:$0xff] %v4118_v1  ;;  %v643_v56 = vunpack.c.l.bf16 %v4111_v6  ;;  %v647_v37 = vunpack.c.h.bf16 %v4111_v6  ;;  %v762_v52 = vsub.f32 %v314_v12, %v634_v47  ;;  %v4143_v12 = vld [vmem:[#allocation2 + $0xf8] sm:$0xff] }
  0xaf   : > { %1513 = vmatprep.subr.bf16.mxu1 %v3769_v24  ;;  %5575 = vst [vmem:[#allocation87_spill] sm:$0xff] %v4126_v61  ;;  %v766_v58 = vsub.f32 %v318_v9, %v638_v39  ;;  %v4130_v38 = vpack.c.bf16 %v326_v0, %v322_v30  ;;  %v4133_v45 = vpack.c.bf16 %v335_v48, %v331_v44  ;;  %5622 = vst [vmem:[#allocation114_spill] sm:$0xff] %v4271_v7 }
  0xb0   : > { %1514 = vmatpush1.bf16.msra.mxu1 %v3771_v25  ;;  %v771_v49 = vsub.f32 %v323_v59, %v643_v56  ;;  %v775_v6 = vsub.f32 %v327_v18, %v647_v37  ;;  %v330_v37 = vld [vmem:[#allocation2 + $0x140] sm:$0xff] }
  0xb1   : > { %2089 = vmatpush1.bf16.msra.mxu0 %v3697_v15  ;;  %1515 = vmatprep.subr.bf16.mxu1 %v3786_v46  ;;  %5576 = vst [vmem:[#allocation88_spill] sm:$0xff] %v4130_v38  ;;  %5577 = vst [vmem:[#allocation89_spill] sm:$0xff] %v4133_v45  ;;  %v4138_v46 = vld [vmem:[#allocation2 + $0xb0] sm:$0xff]  ;;  %v878_v9 = vpack.c.bf16 %v766_v58, %v762_v52  ;;  %v642_v18 = vunpack.c.l.bf16 %v4130_v38  ;;  %v646_v59 = vunpack.c.h.bf16 %v4130_v38  ;;  %v655_v56 = vunpack.c.h.bf16 %v4133_v45  ;;  %v334_v25 = vld [vmem:[#allocation2 + $0x160] sm:$0xff] }
  0xb2   : > { %2090 = vmatprep.subr.bf16.mxu0 %v3707_v21  ;;  %v4152_v47 = vpack.c.bf16 %v4138_v46, %v4136_v57  ;;  %v883_v39 = vpack.c.bf16 %v775_v6, %v771_v49  ;;  %v339_v58 = vld [vmem:[#allocation2 + $0x188] sm:$0xff] }
  0xb3   : > { %1367 = vmatmul.mubr.bf16.gmra.mrb[8].mxu1 %v874_v26  ;;  %v4141_v26 = vld [vmem:[#allocation2 + $0xd8] sm:$0xff]  ;;  %v343_v38 = vld [vmem:[#allocation2 + $0x1a8] sm:$0xff]  ;;  %v770_v49 = vsub.f32 %v322_v30, %v642_v18  ;;  %v774_v6 = vsub.f32 %v326_v0, %v646_v59  ;;  %v783_v4 = vsub.f32 %v335_v48, %v655_v56  ;;  %v5585_v18 = vld [vmem:[#allocation27_spill] sm:$0xff]  ;;  %v4186_v56 = vpack.c.bf16 %v4172_v33, %v4170_v34 }
  0xb4   : > { %1936 = vmatmul.mubr.bf16.gmra.mrb[4].mxu0 %v4118_v1  ;;  %1376 = vmatprep.mubr.bf16.mxu1 %v879_v36  ;;  %5578 = vst [vmem:[#allocation90_spill] sm:$0xff] %v4152_v47  ;;  %v651_v36 = vunpack.c.l.bf16 %v4133_v45  ;;  %v4158_v52 = vpack.c.bf16 %v4143_v12, %v4141_v26  ;;  %v5582_v45 = vld [vmem:[#allocation36_spill] sm:$0xff]  ;;  %v4167_v2 = vpack.c.bf16 %v343_v38, %v339_v58  ;;  %v4175_v30 = vld [vmem:[#allocation2 + $0x118] sm:$0xff] }
  0xb5   : > { %1945 = vmatprep.mubr.bf16.mxu0 %v4126_v61  ;;  %2091 = vmatpush1.bf16.msra.mxu0 %v3719_v32  ;;  %v4177_v0 = vld [vmem:[#allocation2 + $0x138] sm:$0xff]  ;;  %5588 = vst [vmem:[#allocation94_spill] sm:$0xff] %v4186_v56 }
  0xb6   : > { %2092 = vmatprep.subr.bf16.mxu0 %v3740_v54  ;;  %1516 = vmatpush1.bf16.msra.mxu1 %v3788_v43  ;;  %5579 = vst [vmem:[#allocation91_spill] sm:$0xff] %v4158_v52  ;;  %v4163_v43 = vpack.c.bf16 %v334_v25, %v330_v37  ;;  %v779_v24 = vsub.f32 %v331_v44, %v651_v36  ;;  %5583 = vst [vmem:[#allocation93_spill] sm:$0xff] %v4167_v2  ;;  %v5586_v59 = vld [vmem:[#allocation38_spill] sm:$0xff]  ;;  %v5587_v36 = vld [vmem:[#allocation40_spill] sm:$0xff]  ;;  %v663_v11 = vunpack.c.h.bf16 %v4167_v2 }
  0xb7   : > { %1517 = vmatprep.subr.bf16.mxu1 %v3813_v35  ;;  %v5580_v35 = vld [vmem:[#allocation34_spill] sm:$0xff]  ;;  %v882_v44 = vpack.c.bf16 %v774_v6, %v770_v49  ;;  %v4192_v49 = vpack.c.bf16 %v4177_v0, %v4175_v30  ;;  %v5590_v6 = vld [vmem:[#allocation28_spill] sm:$0xff] }
  0xb8   : > { %5581 = vst [vmem:[#allocation92_spill] sm:$0xff] %v4163_v43  ;;  %v650_v48 = vunpack.c.l.bf16 %v4163_v43  ;;  %v791_v54 = vsub.f32 %v343_v38, %v663_v11 }
  0xb9   : > { %2093 = vmatpush1.bf16.msra.mxu0 %v3742_v55  ;;  %5589 = vst [vmem:[#allocation95_spill] sm:$0xff] %v4192_v49 }
  0xba   : > { %2094 = vmatprep.subr.bf16.mxu0 %v3755_v5  ;;  %1518 = vmatpush1.bf16.msra.mxu1 %v5580_v35  ;;  %v659_v35 = vunpack.c.l.bf16 %v4167_v2  ;;  %v5594_v2 = vld [vmem:[#allocation44_spill] sm:$0xff] }
  0xbb   : > { %1377 = vmatmul.mubr.bf16.gmra.mrb[12].mxu1 %v878_v9  ;;  %1519 = vmatprep.subr.bf16.mxu1 %v5582_v45  ;;  %v5584_v9 = vld [vmem:[#allocation24_spill] sm:$0xff]  ;;  %v887_v45 = vpack.c.bf16 %v783_v4, %v779_v24  ;;  %v778_v4 = vsub.f32 %v330_v37, %v650_v48  ;;  %v4211_v37 = vld [vmem:[#allocation2 + $0x178] sm:$0xff]  ;;  %v5601_v48 = vld [vmem:[#allocation35_spill] sm:$0xff] }
  0xbc   : > { %1946 = vmatmul.mubr.bf16.gmra.mrb[8].mxu0 %v4152_v47  ;;  %1386 = vmatprep.mubr.bf16.mxu1 %v883_v39  ;;  %v654_v39 = vunpack.c.h.bf16 %v4163_v43  ;;  %v347_v43 = vld [vmem:[#allocation2 + $0x1c8] sm:$0xff]  ;;  %v787_v55 = vsub.f32 %v339_v58, %v659_v35  ;;  %5600 = vst [vmem:[#allocation101_spill] sm:$0xff] %v4211_v37 }
  0xbd   : > { %1955 = vmatprep.mubr.bf16.mxu0 %v4158_v52  ;;  %2095 = vmatpush1.bf16.msra.mxu0 %v5584_v9  ;;  %v5592_v9 = vld [vmem:[#allocation42_spill] sm:$0xff] }
  0xbe   : > { %2096 = vmatprep.subr.bf16.mxu0 %v5585_v18  ;;  %1520 = vmatpush1.bf16.msra.mxu1 %v5586_v59  ;;  %v342_v18 = vld [vmem:[#allocation2 + $0x1a0] sm:$0xff]  ;;  %v351_v59 = vld [vmem:[#allocation2 + $0x1e8] sm:$0xff]  ;;  %v782_v24 = vsub.f32 %v334_v25, %v654_v39  ;;  %v4209_v25 = vld [vmem:[#allocation2 + $0x158] sm:$0xff]  ;;  %v891_v58 = vpack.c.bf16 %v791_v54, %v787_v55 }
  0xbf   : > { %1521 = vmatprep.subr.bf16.mxu1 %v5587_v36  ;;  %v5591_v36 = vld [vmem:[#allocation31_spill] sm:$0xff]  ;;  %v4197_v5 = vpack.c.bf16 %v342_v18, %v338_v17  ;;  %v4201_v19 = vpack.c.bf16 %v351_v59, %v347_v43  ;;  %5599 = vst [vmem:[#allocation100_spill] sm:$0xff] %v4209_v25  ;;  %v5602_v39 = vld [vmem:[#allocation45_spill] sm:$0xff] }
  0xc0   : > { %v886_v35 = vpack.c.bf16 %v782_v24, %v778_v4  ;;  %v4226_v4 = vpack.c.bf16 %v4211_v37, %v4209_v25  ;;  %v355_v24 = vld [vmem:[#allocation2 + $0x208] sm:$0xff]  ;;  %v4285_v25 = vld [vmem:[#allocation2 + $0x1d0] sm:$0xff] }
  0xc1   : > { %2097 = vmatpush1.bf16.msra.mxu0 %v5590_v6  ;;  %5593 = vst [vmem:[#allocation96_spill] sm:$0xff] %v4197_v5  ;;  %5595 = vst [vmem:[#allocation97_spill] sm:$0xff] %v4201_v19  ;;  %v4204_v6 = vld [vmem:[#allocation2 + $0x110] sm:$0xff]  ;;  %v658_v11 = vunpack.c.l.bf16 %v4197_v5  ;;  %v5626_v37 = vld [vmem:[#allocation60_spill] sm:$0xff] }
  0xc2   : > { %2098 = vmatprep.subr.bf16.mxu0 %v5591_v36  ;;  %1522 = vmatpush1.bf16.msra.mxu1 %v5592_v9  ;;  %5596 = vst [vmem:[#allocation98_spill] sm:$0xff] %v4204_v6  ;;  %v4206_v36 = vld [vmem:[#allocation2 + $0x130] sm:$0xff]  ;;  %v671_v9 = vunpack.c.h.bf16 %v4201_v19  ;;  %5604 = vst [vmem:[#allocation103_spill] sm:$0xff] %v4226_v4 }
  0xc3   : > { %1387 = vmatmul.mubr.bf16.gmra.mrb[16].mxu1 %v882_v44  ;;  %1523 = vmatprep.subr.bf16.mxu1 %v5594_v2  ;;  %5597 = vst [vmem:[#allocation99_spill] sm:$0xff] %v4206_v36  ;;  %v5598_v44 = vld [vmem:[#allocation32_spill] sm:$0xff]  ;;  %v4220_v38 = vpack.c.bf16 %v4206_v36, %v4204_v6  ;;  %v667_v2 = vunpack.c.l.bf16 %v4201_v19  ;;  %v786_v54 = vsub.f32 %v338_v17, %v658_v11  ;;  %v5612_v17 = vld [vmem:[#allocation41_spill] sm:$0xff]  ;;  %v354_v11 = vld [vmem:[#allocation2 + $0x200] sm:$0xff] }
  0xc4   : > { %1956 = vmatmul.mubr.bf16.gmra.mrb[12].mxu0 %v4186_v56  ;;  %1396 = vmatprep.mubr.bf16.mxu1 %v887_v45  ;;  %v662_v45 = vunpack.c.h.bf16 %v4197_v5  ;;  %v5605_v5 = vld [vmem:[#allocation37_spill] sm:$0xff]  ;;  %v799_v32 = vsub.f32 %v351_v59, %v671_v9  ;;  %5628 = vst [vmem:[#allocation117_spill] sm:$0xff] %v4285_v25  ;;  %v4327_v6 = vld [vmem:[#allocation2 + $0x2a8] sm:$0xff] }
  0xc5   : > { %1965 = vmatprep.mubr.bf16.mxu0 %v4192_v49  ;;  %2099 = vmatpush1.bf16.msra.mxu0 %v5598_v44  ;;  %5603 = vst [vmem:[#allocation102_spill] sm:$0xff] %v4220_v38  ;;  %v346_v44 = vld [vmem:[#allocation2 + $0x1c0] sm:$0xff]  ;;  %v795_v19 = vsub.f32 %v347_v43, %v667_v2  ;;  %v5615_v2 = vld [vmem:[#allocation54_spill] sm:$0xff] }
  0xc6   : > { %2100 = vmatprep.subr.bf16.mxu0 %v5601_v48  ;;  %1524 = vmatpush1.bf16.msra.mxu1 %v5602_v39  ;;  %v350_v48 = vld [vmem:[#allocation2 + $0x1e0] sm:$0xff]  ;;  %v359_v39 = vld [vmem:[#allocation2 + $0x228] sm:$0xff]  ;;  %v790_v55 = vsub.f32 %v342_v18, %v662_v45  ;;  %v4245_v18 = vld [vmem:[#allocation2 + $0x1b8] sm:$0xff] }
  0xc7   : > { %1525 = vmatprep.subr.bf16.mxu1 %v3904_v50  ;;  %v5606_v50 = vld [vmem:[#allocation39_spill] sm:$0xff]  ;;  %v4231_v27 = vpack.c.bf16 %v350_v48, %v346_v44  ;;  %v4235_v21 = vpack.c.bf16 %v359_v39, %v355_v24  ;;  %5613 = vst [vmem:[#allocation109_spill] sm:$0xff] %v4245_v18 }
  0xc8   : > { %v358_v45 = vld [vmem:[#allocation2 + $0x220] sm:$0xff]  ;;  %v890_v43 = vpack.c.bf16 %v790_v55, %v786_v54  ;;  %v4264_v55 = vld [vmem:[#allocation2 + $0x248] sm:$0xff] }
  0xc9   : > { %2101 = vmatpush1.bf16.msra.mxu0 %v5605_v5  ;;  %5607 = vst [vmem:[#allocation104_spill] sm:$0xff] %v4231_v27  ;;  %5608 = vst [vmem:[#allocation105_spill] sm:$0xff] %v4235_v21  ;;  %v4238_v5 = vld [vmem:[#allocation2 + $0x150] sm:$0xff]  ;;  %v666_v9 = vunpack.c.l.bf16 %v4231_v27  ;;  %v670_v59 = vunpack.c.h.bf16 %v4231_v27  ;;  %v675_v15 = vunpack.c.l.bf16 %v4235_v21  ;;  %v679_v8 = vunpack.c.h.bf16 %v4235_v21  ;;  %v4266_v27 = vld [vmem:[#allocation2 + $0x268] sm:$0xff] }
  0xca   : > { %2102 = vmatprep.subr.bf16.mxu0 %v5606_v50  ;;  %1526 = vmatpush1.bf16.msra.mxu1 %v3906_v62  ;;  %5609 = vst [vmem:[#allocation106_spill] sm:$0xff] %v4238_v5  ;;  %v4240_v50 = vld [vmem:[#allocation2 + $0x170] sm:$0xff]  ;;  %v4262_v54 = vpack.c.bf16 %v358_v45, %v354_v11 }
  0xcb   : > { %1397 = vmatmul.mubr.bf16.gmra.mrb[20].mxu1 %v886_v35  ;;  %1527 = vmatprep.subr.bf16.mxu1 %v3912_v23  ;;  %5610 = vst [vmem:[#allocation107_spill] sm:$0xff] %v4240_v50  ;;  %v4242_v35 = vld [vmem:[#allocation2 + $0x198] sm:$0xff]  ;;  %v5614_v23 = vld [vmem:[#allocation43_spill] sm:$0xff]  ;;  %v4254_v62 = vpack.c.bf16 %v4240_v50, %v4238_v5  ;;  %v794_v21 = vsub.f32 %v346_v44, %v666_v9  ;;  %v613_v9 = vunpack.c.l.bf16 %v4046_v53 }
  0xcc   : > { %1966 = vmatmul.mubr.bf16.gmra.mrb[16].mxu0 %v4220_v38  ;;  %1406 = vmatprep.mubr.bf16.mxu1 %v891_v58  ;;  %5611 = vst [vmem:[#allocation108_spill] sm:$0xff] %v4242_v35  ;;  %v5616_v58 = vld [vmem:[#allocation56_spill] sm:$0xff]  ;;  %5619 = vst [vmem:[#allocation112_spill] sm:$0xff] %v4262_v54  ;;  %v4277_v50 = vld [vmem:[#allocation2 + $0x240] sm:$0xff]  ;;  %v807_v44 = vsub.f32 %v359_v39, %v679_v8 }
  0xcd   : > { %1975 = vmatprep.mubr.bf16.mxu0 %v4226_v4  ;;  %2103 = vmatpush1.bf16.msra.mxu0 %v5612_v17  ;;  %5617 = vst [vmem:[#allocation110_spill] sm:$0xff] %v4254_v62  ;;  %v895_v17 = vpack.c.bf16 %v799_v32, %v795_v19  ;;  %v5623_v32 = vld [vmem:[#allocation47_spill] sm:$0xff]  ;;  %v5624_v19 = vld [vmem:[#allocation58_spill] sm:$0xff] }
  0xce   : > { %2104 = vmatprep.subr.bf16.mxu0 %v5614_v23  ;;  %1528 = vmatpush1.bf16.msra.mxu1 %v5615_v2  ;;  %v4260_v23 = vpack.c.bf16 %v4245_v18, %v4242_v35  ;;  %v4269_v2 = vld [vmem:[#allocation2 + $0x190] sm:$0xff]  ;;  %v798_v18 = vsub.f32 %v350_v48, %v670_v59  ;;  %v4275_v35 = vld [vmem:[#allocation2 + $0x1d8] sm:$0xff]  ;;  %v4279_v5 = vld [vmem:[#allocation2 + $0x260] sm:$0xff]  ;;  %v4291_v48 = vpack.c.bf16 %v4266_v27, %v4264_v55  ;;  %v674_v59 = vunpack.c.l.bf16 %v4262_v54 }
  0xcf   : > { %1529 = vmatprep.subr.bf16.mxu1 %v5616_v58  ;;  %v5620_v58 = vld [vmem:[#allocation46_spill] sm:$0xff]  ;;  %5621 = vst [vmem:[#allocation113_spill] sm:$0xff] %v4269_v2  ;;  %5625 = vst [vmem:[#allocation115_spill] sm:$0xff] %v4275_v35  ;;  %v4304_v8 = vpack.c.bf16 %v4279_v5, %v4277_v50  ;;  %v5633_v39 = vld [vmem:[#allocation51_spill] sm:$0xff] }
  0xd0   : > { %5618 = vst [vmem:[#allocation111_spill] sm:$0xff] %v4260_v23  ;;  %5630 = vst [vmem:[#allocation119_spill] sm:$0xff] %v4291_v48  ;;  %v894_v4 = vpack.c.bf16 %v798_v18, %v794_v21  ;;  %v687_v21 = vunpack.c.h.bf16 %v4291_v48  ;;  %v620_v18 = vunpack.c.l.bf16 %v4118_v1 }
  0xd1   : > { %2105 = vmatpush1.bf16.msra.mxu0 %v5620_v58  ;;  %v4283_v58 = vld [vmem:[#allocation2 + $0x1f8] sm:$0xff]  ;;  %5632 = vst [vmem:[#allocation120_spill] sm:$0xff] %v4304_v8 }
  0xd2   : > { %2106 = vmatprep.subr.bf16.mxu0 %v5623_v32  ;;  %1530 = vmatpush1.bf16.msra.mxu1 %v5624_v19  ;;  %5627 = vst [vmem:[#allocation116_spill] sm:$0xff] %v4283_v58  ;;  %v4287_v32 = vld [vmem:[#allocation2 + $0x1f0] sm:$0xff]  ;;  %v617_v19 = vunpack.c.h.bf16 %v4046_v53  ;;  %v4313_v53 = vpack.c.bf16 %v4271_v7, %v4269_v2  ;;  %v4317_v36 = vpack.c.bf16 %v4283_v58, %v4275_v35  ;;  %v683_v7 = vunpack.c.l.bf16 %v4291_v48 }
  0xd3   : > { %1407 = vmatmul.mubr.bf16.gmra.mrb[24].mxu1 %v890_v43  ;;  %1531 = vmatprep.subr.bf16.mxu1 %v5626_v37  ;;  %5629 = vst [vmem:[#allocation118_spill] sm:$0xff] %v4287_v32  ;;  %v803_v43 = vsub.f32 %v355_v24, %v675_v15  ;;  %v5631_v37 = vld [vmem:[#allocation48_spill] sm:$0xff]  ;;  %v4300_v15 = vld [vmem:[#allocation2 + $0x218] sm:$0xff]  ;;  %v5634_v24 = vld [vmem:[#allocation61_spill] sm:$0xff]  ;;  %v802_v58 = vsub.f32 %v354_v11, %v674_v59 }
  0xd4   : > { %1976 = vmatmul.mubr.bf16.gmra.mrb[20].mxu0 %v4254_v62  ;;  %1416 = vmatprep.mubr.bf16.mxu1 %v895_v17  ;;  %v678_v17 = vunpack.c.h.bf16 %v4262_v54  ;;  %v995_v62 = vunpack.c.l.bf16 %v3680_v3  ;;  %v621_v54 = vunpack.c.l.bf16 %v4090_v20  ;;  %5635 = vst [vmem:[#allocation121_spill] sm:$0xff] %v4313_v53  ;;  %5636 = vst [vmem:[#allocation122_spill] sm:$0xff] %v4317_v36  ;;  %v4338_v2 = vsub.f32 %v4036_v31, %v617_v19  ;;  %v5641_v11 = vld [vmem:[#allocation55_spill] sm:$0xff]  ;;  %v5643_v19 = vld [vmem:[#allocation68_spill] sm:$0xff] }
  0xd5   : > { %1985 = vmatprep.mubr.bf16.mxu0 %v4260_v23  ;;  %2107 = vmatpush1.bf16.msra.mxu0 %v5631_v37  ;;  %v997_v23 = vunpack.c.h.bf16 %v3680_v3  ;;  %v625_v37 = vunpack.c.h.bf16 %v4090_v20  ;;  %v4325_v3 = vld [vmem:[#allocation2 + $0x288] sm:$0xff]  ;;  %v899_v38 = vpack.c.bf16 %v807_v44, %v803_v43  ;;  %v682_v44 = vunpack.c.l.bf16 %v4304_v8 }
  0xd6   : > { %2108 = vmatprep.subr.bf16.mxu0 %v5633_v39  ;;  %1532 = vmatpush1.bf16.msra.mxu1 %v5634_v24  ;;  %v4321_v39 = vpack.c.bf16 %v4287_v32, %v4285_v25  ;;  %v4323_v24 = vld [vmem:[#allocation2 + $0x238] sm:$0xff]  ;;  %v5637_v20 = vld [vmem:[#allocation64_spill] sm:$0xff]  ;;  %v806_v35 = vsub.f32 %v358_v45, %v678_v17  ;;  %v4335_v25 = vsub.f32 %v4034_v14, %v613_v9  ;;  %v5642_v45 = vld [vmem:[#allocation65_spill] sm:$0xff]  ;;  %v624_v14 = vunpack.c.h.bf16 %v4118_v1 }
  0xd7   : > { %1533 = vmatprep.subr.bf16.mxu1 %v5637_v20  ;;  %v5638_v32 = vld [vmem:[#allocation52_spill] sm:$0xff]  ;;  %v4342_v43 = vpack.c.bf16 %v4323_v24, %v4300_v15  ;;  %v4347_v48 = vpack.c.bf16 %v4327_v6, %v4325_v3  ;;  %v686_v31 = vunpack.c.h.bf16 %v4304_v8  ;;  %v3273_v20 = vld [vmem:[%s3671_s26 + $0x18] sm:$0xff]  ;;  %v633_v1 = vunpack.c.h.bf16 %v4126_v61 }
  0xd8   : > { %v3272_v59 = vld [vmem:[%s3671_s26 + $0x8] sm:$0xff]  ;;  %v898_v8 = vpack.c.bf16 %v806_v35, %v802_v58  ;;  %v4379_v35 = vld [vmem:[#allocation2 + $0x2a0] sm:$0xff] }
  0xd9   : > { %2109 = vmatpush1.bf16.msra.mxu0 %v5638_v32  ;;  %5639 = vst [vmem:[#allocation123_spill] sm:$0xff] %v4342_v43  ;;  %5640 = vst [vmem:[#allocation124_spill] sm:$0xff] %v4347_v48  ;;  %v1123_v17 = vsub.f32 %v3272_v59, %v995_v62  ;;  %v1125_v32 = vsub.f32 %v3273_v20, %v997_v23  ;;  %v4366_v62 = vsub.f32 %v4073_v41, %v621_v54  ;;  %v5645_v58 = vld [vmem:[#allocation59_spill] sm:$0xff]  ;;  %v5646_v41 = vld [vmem:[#allocation70_spill] sm:$0xff] }
  0xda   : > { %2110 = vmatprep.subr.bf16.mxu0 %v5641_v11  ;;  %1534 = vmatpush1.bf16.msra.mxu1 %v5642_v45  ;;  %v811_v11 = vsub.f32 %v4264_v55, %v683_v7  ;;  %v815_v45 = vsub.f32 %v4266_v27, %v687_v21  ;;  %v4369_v23 = vsub.f32 %v4075_v42, %v625_v37  ;;  %v628_v20 = vunpack.c.l.bf16 %v4152_v47  ;;  %v4377_v55 = vld [vmem:[#allocation2 + $0x280] sm:$0xff]  ;;  %v4384_v37 = vld [vmem:[#allocation2 + $0x2c8] sm:$0xff] }
  0xdb   : > { %1417 = vmatmul.mubr.bf16.gmra.mrb[28].mxu1 %v894_v4  ;;  %1535 = vmatprep.subr.bf16.mxu1 %v5643_v19  ;;  %v629_v4 = vunpack.c.l.bf16 %v4126_v61  ;;  %v5644_v19 = vld [vmem:[#allocation57_spill] sm:$0xff]  ;;  %v4373_v7 = vsub.f32 %v4277_v50, %v682_v44  ;;  %v691_v27 = vunpack.c.l.bf16 %v4347_v48  ;;  %v632_v42 = vunpack.c.h.bf16 %v4152_v47  ;;  %v4386_v54 = vld [vmem:[#allocation2 + $0x2e8] sm:$0xff] }
  0xdc   : > { %1986 = vmatmul.mubr.bf16.gmra.mrb[24].mxu0 %v4313_v53  ;;  %1426 = vmatprep.mubr.bf16.mxu1 %v899_v38  ;;  %v695_v38 = vunpack.c.h.bf16 %v4347_v48  ;;  %v1251_v50 = vpack.c.bf16 %v1125_v32, %v1123_v17  ;;  %v4392_v44 = vsub.f32 %v4102_v13, %v620_v18  ;;  %v4395_v59 = vsub.f32 %v4104_v29, %v624_v14  ;;  %v5648_v13 = vld [vmem:[#allocation62_spill] sm:$0xff]  ;;  %v4430_v14 = vld [vmem:[#allocation2 + $0x210] sm:$0xff] }
  0xdd   : > { %1995 = vmatprep.mubr.bf16.mxu0 %v4317_v36  ;;  %2111 = vmatpush1.bf16.msra.mxu0 %v5644_v19  ;;  %v903_v9 = vpack.c.bf16 %v815_v45, %v811_v11  ;;  %v4398_v61 = vsub.f32 %v4107_v40, %v629_v4  ;;  %v4401_v47 = vsub.f32 %v4109_v10, %v633_v1  ;;  %v637_v48 = vunpack.c.l.bf16 %v4158_v52  ;;  %v5650_v10 = vld [vmem:[#allocation63_spill] sm:$0xff]  ;;  %v4434_v4 = vld [vmem:[#allocation2 + $0x258] sm:$0xff] }
  0xde   : > { %2112 = vmatprep.subr.bf16.mxu0 %v5645_v58  ;;  %1536 = vmatpush1.bf16.msra.mxu1 %v5646_v41  ;;  %v814_v32 = vsub.f32 %v4279_v5, %v686_v31  ;;  %v4407_v17 = vpack.c.bf16 %v4379_v35, %v4377_v55  ;;  %v4413_v18 = vsub.f32 %v4136_v57, %v628_v20  ;;  %v641_v11 = vunpack.c.h.bf16 %v4158_v52  ;;  %v4432_v31 = vld [vmem:[#allocation2 + $0x230] sm:$0xff] }
  0xdf   : > { %1537 = vmatprep.subr.bf16.mxu1 %v4025_v60  ;;  %v4417_v40 = vpack.c.bf16 %v4386_v54, %v4384_v37  ;;  %v4424_v1 = vsub.f32 %v4138_v46, %v632_v42  ;;  %v819_v57 = vsub.f32 %v4325_v3, %v691_v27  ;;  %v823_v45 = vsub.f32 %v4327_v6, %v695_v38  ;;  %v4446_v3 = vld [vmem:[#allocation2 + $0x278] sm:$0xff]  ;;  %v4451_v38 = vld [vmem:[#allocation2 + $0x2e0] sm:$0xff] }
  0xe0   : > { %5647 = vst [vmem:[#allocation57_spill] sm:$0xff] %v4407_v17  ;;  %5651 = vst [vmem:[#allocation62_spill] sm:$0xff] %v4430_v14  ;;  %v4439_v20 = vsub.f32 %v4141_v26, %v637_v48  ;;  %v902_v6 = vpack.c.bf16 %v814_v32, %v4373_v7  ;;  %v690_v27 = vunpack.c.l.bf16 %v4407_v17  ;;  %v636_v26 = vunpack.c.l.bf16 %v4186_v56  ;;  %v4461_v32 = vld [vmem:[#allocation2 + $0x328] sm:$0xff] }
  0xe1   : > { %2113 = vmatpush1.bf16.msra.mxu0 %v5648_v13  ;;  %5649 = vst [vmem:[#allocation59_spill] sm:$0xff] %v4417_v40  ;;  %5652 = vst [vmem:[#allocation63_spill] sm:$0xff] %v4432_v31  ;;  %v640_v48 = vunpack.c.h.bf16 %v4186_v56  ;;  %v699_v42 = vunpack.c.l.bf16 %v4417_v40  ;;  %v703_v7 = vunpack.c.h.bf16 %v4417_v40  ;;  %v645_v29 = vunpack.c.l.bf16 %v4192_v49 }
  0xe2   : > { %2114 = vmatprep.subr.bf16.mxu0 %v5650_v10  ;;  %1538 = vmatpush1.bf16.msra.mxu1 %v4042_v22  ;;  %5653 = vst [vmem:[#allocation125_spill] sm:$0xff] %v4434_v4  ;;  %5654 = vst [vmem:[#allocation126_spill] sm:$0xff] %v4446_v3  ;;  %v4467_v46 = vsub.f32 %v4170_v34, %v636_v26  ;;  %v649_v21 = vunpack.c.h.bf16 %v4192_v49  ;;  %v4476_v56 = vpack.c.bf16 %v4432_v31, %v4430_v14 }
  0xe3   : > { %1427 = vmatmul.mubr.bf16.gmra.mrb[32].mxu1 %v898_v8  ;;  %1700 = vmatprep.subr.bf16.mxu1 %v1251_v50  ;;  %v4442_v8 = vsub.f32 %v4143_v12, %v641_v11  ;;  %v694_v12 = vunpack.c.h.bf16 %v4407_v17  ;;  %v4459_v50 = vld [vmem:[#allocation2 + $0x308] sm:$0xff]  ;;  %v4470_v5 = vsub.f32 %v4172_v33, %v640_v48  ;;  %v4480_v52 = vpack.c.bf16 %v4446_v3, %v4434_v4  ;;  %v5670_v4 = vld [vmem:[#allocation110_spill] sm:$0xff] }
  0xe4   : > { %1996 = vmatmul.mubr.bf16.gmra.mrb[28].mxu0 %v4321_v39  ;;  %1436 = vmatprep.mubr.bf16.mxu1 %v903_v9  ;;  %v4449_v9 = vld [vmem:[#allocation2 + $0x2c0] sm:$0xff]  ;;  %5655 = vst [vmem:[#allocation127_spill] sm:$0xff] %v4476_v56  ;;  %v907_v40 = vpack.c.bf16 %v823_v45, %v819_v57  ;;  %v4488_v33 = vpack.c.bf16 %v4461_v32, %v4459_v50  ;;  %v5659_v45 = vld [vmem:[#allocation102_spill] sm:$0xff]  ;;  %v652_v31 = vunpack.c.l.bf16 %v5670_v4  ;;  %v656_v14 = vunpack.c.h.bf16 %v5670_v4 }
  0xe5   : > { %2005 = vmatprep.mubr.bf16.mxu0 %v4342_v43  ;;  %2115 = vmatpush1.bf16.msra.mxu0 %v3991_v51  ;;  %5656 = vst [vmem:[#allocation128_spill] sm:$0xff] %v4480_v52  ;;  %v4484_v34 = vpack.c.bf16 %v4451_v38, %v4449_v9  ;;  %v4494_v48 = vsub.f32 %v4175_v30, %v645_v29  ;;  %v644_v49 = vunpack.c.l.bf16 %v5659_v45  ;;  %v648_v17 = vunpack.c.h.bf16 %v5659_v45  ;;  %v386_v30 = vld [vmem:[#allocation2 + $0x300] sm:$0xff] }
  0xe6   : > { %2116 = vmatprep.subr.bf16.mxu0 %v4006_v28  ;;  %5658 = vst [vmem:[#allocation130_spill] sm:$0xff] %v4488_v33  ;;  %v4497_v11 = vsub.f32 %v4177_v0, %v649_v21  ;;  %v818_v57 = vsub.f32 %v4377_v55, %v690_v27  ;;  %v822_v22 = vsub.f32 %v4379_v35, %v694_v12  ;;  %v4509_v0 = vld [vmem:[#allocation2 + $0x250] sm:$0xff]  ;;  %v5663_v21 = vld [vmem:[#allocation98_spill] sm:$0xff]  ;;  %v5664_v35 = vld [vmem:[#allocation99_spill] sm:$0xff] }
  0xe7   : > { %5657 = vst [vmem:[#allocation129_spill] sm:$0xff] %v4484_v34  ;;  %v827_v60 = vsub.f32 %v4384_v37, %v699_v42  ;;  %v831_v26 = vsub.f32 %v4386_v54, %v703_v7  ;;  %5660 = vst [vmem:[#allocation131_spill] sm:$0xff] %v4509_v0  ;;  %v4511_v55 = vld [vmem:[#allocation2 + $0x270] sm:$0xff]  ;;  %v4516_v29 = vsub.f32 %v5663_v21, %v644_v49  ;;  %v5665_v37 = vld [vmem:[#allocation103_spill] sm:$0xff]  ;;  %v698_v42 = vunpack.c.l.bf16 %v4484_v34 }
  0xe8   : > { %5661 = vst [vmem:[#allocation132_spill] sm:$0xff] %v4511_v55  ;;  %v653_v54 = vunpack.c.l.bf16 %v5665_v37  ;;  %v657_v27 = vunpack.c.h.bf16 %v5665_v37  ;;  %v4524_v12 = vld [vmem:[#allocation2 + $0x2b8] sm:$0xff]  ;;  %v707_v7 = vunpack.c.l.bf16 %v4488_v33  ;;  %v390_v49 = vld [vmem:[#allocation2 + $0x320] sm:$0xff]  ;;  %v711_v21 = vunpack.c.h.bf16 %v4488_v33  ;;  %v5668_v37 = vld [vmem:[#allocation101_spill] sm:$0xff] }
  0xe9   : > { %2117 = vmatpush1.bf16.msra.mxu0 %v4010_v63  ;;  %5666 = vst [vmem:[#allocation98_spill] sm:$0xff] %v4524_v12  ;;  %v4540_v3 = vpack.c.bf16 %v4511_v55, %v4509_v0  ;;  %v5675_v0 = vld [vmem:[#allocation111_spill] sm:$0xff] }
  0xea   : > { %2279 = vmatprep.subr.bf16.mxu0 %v3699_v16  ;;  %v4513_v16 = vld [vmem:[#allocation2 + $0x298] sm:$0xff]  ;;  %v4536_v41 = vsub.f32 %v5668_v37, %v657_v27  ;;  %v661_v4 = vunpack.c.l.bf16 %v5675_v0  ;;  %v665_v63 = vunpack.c.h.bf16 %v5675_v0  ;;  %v835_v37 = vsub.f32 %v4459_v50, %v707_v7 }
  0xeb   : > { %1437 = vmatmul.mubr.bf16.gmra.mrb[36].mxu1 %v902_v6  ;;  %5662 = vst [vmem:[#allocation133_spill] sm:$0xff] %v4513_v16  ;;  %v4519_v6 = vsub.f32 %v5664_v35, %v648_v17  ;;  %v5667_v35 = vld [vmem:[#allocation100_spill] sm:$0xff]  ;;  %5669 = vst [vmem:[#allocation99_spill] sm:$0xff] %v4540_v3  ;;  %v4546_v33 = vpack.c.bf16 %v4524_v12, %v4513_v16  ;;  %v911_v17 = vpack.c.bf16 %v831_v26, %v827_v60  ;;  %v5673_v27 = vld [vmem:[#allocation106_spill] sm:$0xff] }
  0xec   : > { %2006 = vmatmul.mubr.bf16.gmra.mrb[32].mxu0 %v4476_v56  ;;  %1446 = vmatprep.mubr.bf16.mxu1 %v907_v40  ;;  %v702_v40 = vunpack.c.h.bf16 %v4484_v34  ;;  %v4533_v45 = vsub.f32 %v5667_v35, %v653_v54  ;;  %v906_v34 = vpack.c.bf16 %v822_v22, %v818_v57  ;;  %v395_v54 = vld [vmem:[#allocation2 + $0x348] sm:$0xff]  ;;  %v4553_v55 = vsub.f32 %v5673_v27, %v652_v31  ;;  %v5674_v22 = vld [vmem:[#allocation107_spill] sm:$0xff]  ;;  %v4560_v12 = vld [vmem:[#allocation2 + $0x290] sm:$0xff] }
  0xed   : > { %2015 = vmatprep.mubr.bf16.mxu0 %v4480_v52  ;;  %5671 = vst [vmem:[#allocation100_spill] sm:$0xff] %v4546_v33  ;;  %v4548_v52 = vpack.c.bf16 %v390_v49, %v386_v30  ;;  %v399_v35 = vld [vmem:[#allocation2 + $0x368] sm:$0xff]  ;;  %v4556_v57 = vsub.f32 %v5674_v22, %v656_v14  ;;  %5676 = vst [vmem:[#allocation106_spill] sm:$0xff] %v4560_v12  ;;  %v4562_v60 = vld [vmem:[#allocation2 + $0x2b0] sm:$0xff]  ;;  %v826_v26 = vsub.f32 %v4449_v9, %v698_v42 }
  0xee   : > { %5677 = vst [vmem:[#allocation107_spill] sm:$0xff] %v4562_v60  ;;  %v830_v16 = vsub.f32 %v4451_v38, %v702_v40  ;;  %v839_v31 = vsub.f32 %v4461_v32, %v711_v21  ;;  %v4568_v27 = vpack.c.bf16 %v399_v35, %v395_v54  ;;  %v5679_v22 = vld [vmem:[#allocation108_spill] sm:$0xff]  ;;  %v5680_v56 = vld [vmem:[#allocation109_spill] sm:$0xff]  ;;  %v660_v9 = vunpack.c.l.bf16 %v4313_v53  ;;  %v5684_v40 = vld [vmem:[#allocation114_spill] sm:$0xff] }
  0xef   : > { %5672 = vst [vmem:[#allocation101_spill] sm:$0xff] %v4548_v52  ;;  %v4573_v0 = vsub.f32 %v5679_v22, %v661_v4  ;;  %v4576_v28 = vsub.f32 %v5680_v56, %v665_v63  ;;  %v664_v38 = vunpack.c.h.bf16 %v4313_v53  ;;  %v4584_v50 = vpack.c.bf16 %v4562_v60, %v4560_v12  ;;  %v4589_v63 = vld [vmem:[#allocation2 + $0x2d8] sm:$0xff]  ;;  %v394_v12 = vld [vmem:[#allocation2 + $0x340] sm:$0xff] }
  0xf0   : > { %5678 = vst [vmem:[#allocation134_spill] sm:$0xff] %v4568_v27  ;;  %v706_v32 = vunpack.c.l.bf16 %v4548_v52  ;;  %5681 = vst [vmem:[#allocation108_spill] sm:$0xff] %v4589_v63  ;;  %v4591_v56 = vld [vmem:[#allocation2 + $0x2f8] sm:$0xff]  ;;  %v669_v21 = vunpack.c.l.bf16 %v4317_v36  ;;  %v910_v22 = vpack.c.bf16 %v830_v16, %v826_v26  ;;  %v915_v14 = vpack.c.bf16 %v839_v31, %v835_v37  ;;  %v403_v37 = vld [vmem:[#allocation2 + $0x388] sm:$0xff] }
  0xf1   : > { %5682 = vst [vmem:[#allocation109_spill] sm:$0xff] %v4591_v56  ;;  %v4597_v7 = vsub.f32 %v5684_v40, %v664_v38  ;;  %v710_v53 = vunpack.c.h.bf16 %v4548_v52  ;;  %v715_v4 = vunpack.c.l.bf16 %v4568_v27  ;;  %v719_v60 = vunpack.c.h.bf16 %v4568_v27  ;;  %v5686_v40 = vld [vmem:[#allocation116_spill] sm:$0xff] }
  0xf2   : > { %v4614_v16 = vpack.c.bf16 %v4591_v56, %v4589_v63  ;;  %v407_v26 = vld [vmem:[#allocation2 + $0x3a8] sm:$0xff]  ;;  %v834_v31 = vsub.f32 %v386_v30, %v706_v32  ;;  %v4626_v30 = vld [vmem:[#allocation2 + $0x2d0] sm:$0xff] }
  0xf3   : > { %1447 = vmatmul.mubr.bf16.gmra.mrb[40].mxu1 %v906_v34  ;;  %v5683_v34 = vld [vmem:[#allocation113_spill] sm:$0xff]  ;;  %v838_v27 = vsub.f32 %v390_v49, %v710_v53 }
  0xf4   : > { %2016 = vmatmul.mubr.bf16.gmra.mrb[36].mxu0 %v4540_v3  ;;  %1456 = vmatprep.mubr.bf16.mxu1 %v911_v17  ;;  %v4594_v42 = vsub.f32 %v5683_v34, %v660_v9  ;;  %v673_v17 = vunpack.c.h.bf16 %v4317_v36  ;;  %v5685_v34 = vld [vmem:[#allocation115_spill] sm:$0xff]  ;;  %v4623_v9 = vpack.c.bf16 %v407_v26, %v403_v37  ;;  %v4628_v32 = vld [vmem:[#allocation2 + $0x2f0] sm:$0xff]  ;;  %v4638_v36 = vld [vmem:[#allocation2 + $0x338] sm:$0xff] }
  0xf5   : > { %2025 = vmatprep.mubr.bf16.mxu0 %v4546_v33  ;;  %v398_v33 = vld [vmem:[#allocation2 + $0x360] sm:$0xff]  ;;  %v4607_v38 = vsub.f32 %v5685_v34, %v669_v21  ;;  %v677_v21 = vunpack.c.l.bf16 %v4342_v43  ;;  %v681_v34 = vunpack.c.h.bf16 %v4342_v43  ;;  %5689 = vst [vmem:[#allocation115_spill] sm:$0xff] %v4626_v30  ;;  %5690 = vst [vmem:[#allocation116_spill] sm:$0xff] %v4628_v32 }
  0xf6   : > { %v4610_v3 = vsub.f32 %v5686_v40, %v673_v17  ;;  %v4618_v52 = vpack.c.bf16 %v398_v33, %v394_v12  ;;  %v843_v17 = vsub.f32 %v395_v54, %v715_v4  ;;  %v847_v40 = vsub.f32 %v399_v35, %v719_v60  ;;  %5688 = vst [vmem:[#allocation114_spill] sm:$0xff] %v4623_v9  ;;  %v406_v43 = vld [vmem:[#allocation2 + $0x3a0] sm:$0xff] }
  0xf7   : > { %v4631_v53 = vsub.f32 %v4300_v15, %v677_v21  ;;  %v4634_v49 = vsub.f32 %v4323_v24, %v681_v34  ;;  %5692 = vst [vmem:[#allocation136_spill] sm:$0xff] %v4638_v36  ;;  %v914_v54 = vpack.c.bf16 %v838_v27, %v834_v31  ;;  %v4646_v4 = vpack.c.bf16 %v4628_v32, %v4626_v30  ;;  %v402_v34 = vld [vmem:[#allocation2 + $0x380] sm:$0xff]  ;;  %v411_v31 = vld [vmem:[#allocation2 + $0x3c8] sm:$0xff] }
  0xf8   : > { %5687 = vst [vmem:[#allocation113_spill] sm:$0xff] %v4618_v52  ;;  %v714_v35 = vunpack.c.l.bf16 %v4618_v52  ;;  %v718_v60 = vunpack.c.h.bf16 %v4618_v52  ;;  %v919_v15 = vpack.c.bf16 %v847_v40, %v843_v17  ;;  %v723_v24 = vunpack.c.l.bf16 %v4623_v9  ;;  %v415_v52 = vld [vmem:[#allocation2 + $0x3e8] sm:$0xff] }
  0xf9   : > { %v727_v21 = vunpack.c.h.bf16 %v4623_v9  ;;  %v4654_v63 = vpack.c.bf16 %v406_v43, %v402_v34  ;;  %v4657_v32 = vpack.c.bf16 %v415_v52, %v411_v31  ;;  %v4660_v9 = vld [vmem:[#allocation2 + $0x310] sm:$0xff] }
  0xfa   : > { %v842_v56 = vsub.f32 %v394_v12, %v714_v35  ;;  %v851_v17 = vsub.f32 %v403_v37, %v723_v24  ;;  %5696 = vst [vmem:[#allocation140_spill] sm:$0xff] %v4660_v9  ;;  %v410_v24 = vld [vmem:[#allocation2 + $0x3c0] sm:$0xff] }
  0xfb   : > { %1457 = vmatmul.mubr.bf16.gmra.mrb[44].mxu1 %v910_v22  ;;  %v4636_v22 = vld [vmem:[#allocation2 + $0x318] sm:$0xff]  ;;  %5694 = vst [vmem:[#allocation138_spill] sm:$0xff] %v4654_v63  ;;  %v855_v40 = vsub.f32 %v407_v26, %v727_v21  ;;  %5695 = vst [vmem:[#allocation139_spill] sm:$0xff] %v4657_v32  ;;  %v722_v12 = vunpack.c.l.bf16 %v4654_v63  ;;  %v726_v35 = vunpack.c.h.bf16 %v4654_v63  ;;  %v414_v21 = vld [vmem:[#allocation2 + $0x3e0] sm:$0xff] }
  0xfc   : > { %2026 = vmatmul.mubr.bf16.gmra.mrb[40].mxu0 %v4584_v50  ;;  %1466 = vmatprep.mubr.bf16.mxu1 %v915_v14  ;;  %5691 = vst [vmem:[#allocation135_spill] sm:$0xff] %v4636_v22  ;;  %v4652_v27 = vpack.c.bf16 %v4638_v36, %v4636_v22  ;;  %v846_v14 = vsub.f32 %v398_v33, %v718_v60  ;;  %v4662_v36 = vld [vmem:[#allocation2 + $0x330] sm:$0xff]  ;;  %v4664_v22 = vld [vmem:[#allocation2 + $0x358] sm:$0xff]  ;;  %v731_v60 = vunpack.c.l.bf16 %v4657_v32 }
  0xfd   : > { %2035 = vmatprep.mubr.bf16.mxu0 %v4614_v16  ;;  %5697 = vst [vmem:[#allocation141_spill] sm:$0xff] %v4662_v36  ;;  %5698 = vst [vmem:[#allocation142_spill] sm:$0xff] %v4664_v22  ;;  %v4672_v37 = vpack.c.bf16 %v4662_v36, %v4660_v9  ;;  %v923_v26 = vpack.c.bf16 %v855_v40, %v851_v17  ;;  %v4684_v40 = vld [vmem:[#allocation2 + $0x350] sm:$0xff]  ;;  %v4688_v36 = vld [vmem:[#allocation2 + $0x398] sm:$0xff] }
  0xfe   : > { %5693 = vst [vmem:[#allocation137_spill] sm:$0xff] %v4652_v27  ;;  %v918_v33 = vpack.c.bf16 %v846_v14, %v842_v56  ;;  %v850_v56 = vsub.f32 %v402_v34, %v722_v12  ;;  %v854_v14 = vsub.f32 %v406_v43, %v726_v35  ;;  %v859_v63 = vsub.f32 %v411_v31, %v731_v60  ;;  %v4704_v60 = vld [vmem:[#allocation2 + $0x390] sm:$0xff]  ;;  %v5722_v9 = vld [vmem:[#allocation79_spill] sm:$0xff] }
  0xff   : > { %5702 = vst [vmem:[#allocation146_spill] sm:$0xff] %v4684_v40  ;;  %5704 = vst [vmem:[#allocation148_spill] sm:$0xff] %v4688_v36 }
 0x100   : > { %5708 = vst [vmem:[#allocation152_spill] sm:$0xff] %v4704_v60 }
 0x103   : > { %1467 = vmatmul.mubr.bf16.gmra.mrb[48].mxu1 %v914_v54  ;;  %v4666_v54 = vld [vmem:[#allocation2 + $0x378] sm:$0xff] }
 0x104   : > { %2036 = vmatmul.mubr.bf16.gmra.mrb[44].mxu0 %v4646_v4  ;;  %1476 = vmatprep.mubr.bf16.mxu1 %v919_v15  ;;  %5699 = vst [vmem:[#allocation143_spill] sm:$0xff] %v4666_v54  ;;  %v735_v15 = vunpack.c.h.bf16 %v4657_v32  ;;  %v4678_v30 = vpack.c.bf16 %v4666_v54, %v4664_v22  ;;  %v4686_v32 = vld [vmem:[#allocation2 + $0x370] sm:$0xff]  ;;  %v4690_v54 = vld [vmem:[#allocation2 + $0x3b8] sm:$0xff] }
 0x105   : > { %2045 = vmatprep.mubr.bf16.mxu0 %v4652_v27  ;;  %v4680_v27 = vpack.c.bf16 %v414_v21, %v410_v24  ;;  %5703 = vst [vmem:[#allocation147_spill] sm:$0xff] %v4686_v32  ;;  %5705 = vst [vmem:[#allocation149_spill] sm:$0xff] %v4690_v54  ;;  %v4696_v12 = vpack.c.bf16 %v4686_v32, %v4684_v40  ;;  %v4700_v31 = vpack.c.bf16 %v4690_v54, %v4688_v36  ;;  %v3276_v54 = vld [vmem:[%s3671_s26 + $0x28] sm:$0xff]  ;;  %v5720_v36 = vld [vmem:[#allocation15_spill] sm:$0xff] }
 0x106   : > { %5700 = vst [vmem:[#allocation144_spill] sm:$0xff] %v4678_v30  ;;  %v863_v17 = vsub.f32 %v415_v52, %v735_v15  ;;  %v4706_v15 = vld [vmem:[#allocation2 + $0x3b0] sm:$0xff]  ;;  %v1003_v32 = vunpack.c.l.bf16 %v5720_v36  ;;  %v3278_v40 = vld [vmem:[%s3671_s26 + $0x20] sm:$0xff]  ;;  %v3281_v22 = vld [vmem:[%s3671_s26 + $0x58] sm:$0xff] }
 0x107   : > { %5701 = vst [vmem:[#allocation145_spill] sm:$0xff] %v4680_v27  ;;  %v730_v43 = vunpack.c.l.bf16 %v4680_v27  ;;  %v734_v34 = vunpack.c.h.bf16 %v4680_v27  ;;  %5706 = vst [vmem:[#allocation150_spill] sm:$0xff] %v4696_v12 }
 0x108   : > { %v927_v52 = vpack.c.bf16 %v863_v17, %v859_v63  ;;  %5707 = vst [vmem:[#allocation151_spill] sm:$0xff] %v4700_v31  ;;  %5709 = vst [vmem:[#allocation153_spill] sm:$0xff] %v4706_v15  ;;  %v4714_v17 = vpack.c.bf16 %v4706_v15, %v4704_v60  ;;  %v4733_v15 = vld [vmem:[#allocation2 + $0x3f0] sm:$0xff] }
 0x109   : > { %v858_v35 = vsub.f32 %v410_v24, %v730_v43  ;;  %v3275_v60 = vld [vmem:[%s3671_s26 + $0x10] sm:$0xff] }
 0x10a   : > { %5712 = vst [vmem:[#allocation156_spill] sm:$0xff] %v4714_v17 }
 0x10b   : > { %1477 = vmatmul.mubr.bf16.gmra.mrb[52].mxu1 %v918_v33  ;;  %v922_v33 = vpack.c.bf16 %v854_v14, %v850_v56  ;;  %v4708_v56 = vld [vmem:[#allocation2 + $0x3d8] sm:$0xff] }
 0x10c   : > { %2046 = vmatmul.mubr.bf16.gmra.mrb[48].mxu0 %v4672_v37  ;;  %1486 = vmatprep.mubr.bf16.mxu1 %v923_v26  ;;  %v862_v26 = vsub.f32 %v414_v21, %v734_v34  ;;  %5710 = vst [vmem:[#allocation154_spill] sm:$0xff] %v4708_v56  ;;  %v4710_v14 = vld [vmem:[#allocation2 + $0x3f8] sm:$0xff]  ;;  %v5714_v21 = vld [vmem:[#allocation11_spill] sm:$0xff]  ;;  %v5715_v34 = vld [vmem:[#allocation12_spill] sm:$0xff] }
 0x10d   : > { %2055 = vmatprep.mubr.bf16.mxu0 %v4678_v30  ;;  %5711 = vst [vmem:[#allocation155_spill] sm:$0xff] %v4710_v14  ;;  %v4718_v24 = vpack.c.bf16 %v4710_v14, %v4708_v56  ;;  %v996_v43 = vunpack.c.h.bf16 %v5714_v21  ;;  %v1001_v27 = vunpack.c.h.bf16 %v5715_v34  ;;  %5719 = vst [vmem:[#allocation12_spill] sm:$0xff] %v4733_v15  ;;  %v5723_v30 = vld [vmem:[#allocation78_spill] sm:$0xff] }
 0x10e   : > { %v926_v63 = vpack.c.bf16 %v862_v26, %v858_v35  ;;  %v5716_v35 = vpack.c.bf16 %v4338_v2, %v4335_v25  ;;  %v5717_v26 = vld [vmem:[#allocation13_spill] sm:$0xff]  ;;  %v3277_v2 = vld [vmem:[%s3671_s26 + $0x38] sm:$0xff] }
 0x10f   : > { %5713 = vst [vmem:[#allocation157_spill] sm:$0xff] %v4718_v24  ;;  %v998_v14 = vunpack.c.l.bf16 %v5717_v26  ;;  %v1000_v56 = vunpack.c.h.bf16 %v5717_v26  ;;  %v1005_v26 = vunpack.c.h.bf16 %v5720_v36 }
 0x111   : > { %v1133_v36 = vsub.f32 %v3281_v22, %v1005_v26  ;;  %v3282_v22 = vld [vmem:[%s3671_s26 + $0x40] sm:$0xff] }
 0x113   : > { %1487 = vmatmul.mubr.bf16.gmra.mrb[56].mxu1 %v922_v33  ;;  %v994_v33 = vunpack.c.l.bf16 %v5714_v21  ;;  %v4731_v21 = vld [vmem:[#allocation2 + $0x3d0] sm:$0xff] }
 0x114   : > { %2056 = vmatmul.mubr.bf16.gmra.mrb[52].mxu0 %v4696_v12  ;;  %1496 = vmatprep.mubr.bf16.mxu1 %v927_v52  ;;  %v999_v52 = vunpack.c.l.bf16 %v5715_v34  ;;  %5718 = vst [vmem:[#allocation11_spill] sm:$0xff] %v4731_v21  ;;  %v3274_v34 = vld [vmem:[%s3671_s26] sm:$0xff]  ;;  %v3279_v12 = vld [vmem:[%s3671_s26 + $0x30] sm:$0xff] }
 0x115   : > { %2065 = vmatprep.mubr.bf16.mxu0 %v4700_v31  ;;  %v1126_v31 = vsub.f32 %v3278_v40, %v998_v14 }
 0x116   : > { %v1127_v25 = vsub.f32 %v3276_v54, %v999_v52  ;;  %v3280_v52 = vld [vmem:[%s3671_s26 + $0x48] sm:$0xff] }
 0x11b   : > { %1497 = vmatmul.mubr.bf16.gmra.mrb[60].mxu1 %v926_v63  ;;  %v1122_v63 = vsub.f32 %v3274_v34, %v994_v33  ;;  %v1128_v33 = vsub.f32 %v3279_v12, %v1000_v56  ;;  %v5726_v56 = vpack.c.bf16 %v4369_v23, %v4366_v62  ;;  %v5729_v62 = vld [vmem:[#allocation23_spill] sm:$0xff] }
 0x11c   : > { %2066 = vmatmul.mubr.bf16.gmra.mrb[56].mxu0 %v4714_v17  ;;  %1539 = vmatprep.mubr.bf16.mxu1 %v5716_v35  ;;  %v1124_v17 = vsub.f32 %v3275_v60, %v996_v43  ;;  %v1129_v35 = vsub.f32 %v3277_v2, %v1001_v27  ;;  %v5721_v60 = vld [vmem:[#allocation16_spill] sm:$0xff]  ;;  %v1131_v2 = vsub.f32 %v3280_v52, %v1003_v32  ;;  %v5727_v32 = vld [vmem:[#allocation69_spill] sm:$0xff]  ;;  %v1011_v23 = vunpack.c.l.bf16 %v5729_v62 }
 0x11d   : > { %2075 = vmatprep.mubr.bf16.mxu0 %v4718_v24  ;;  %v4743_v24 = vpack.c.bf16 %v4733_v15, %v4731_v21  ;;  %v1002_v43 = vunpack.c.l.bf16 %v5721_v60  ;;  %v1004_v54 = vunpack.c.h.bf16 %v5721_v60  ;;  %v5724_v15 = vpack.c.bf16 %v5722_v9, %v5723_v30  ;;  %v5725_v21 = vld [vmem:[#allocation19_spill] sm:$0xff]  ;;  %v3283_v30 = vld [vmem:[%s3671_s26 + $0x50] sm:$0xff] }
 0x11e   : > { %v1250_v34 = vpack.c.bf16 %v1124_v17, %v1122_v63  ;;  %v1253_v27 = vpack.c.bf16 %v1129_v35, %v1127_v25  ;;  %v1007_v40 = vunpack.c.l.bf16 %v5725_v21  ;;  %v1009_v12 = vunpack.c.h.bf16 %v5725_v21  ;;  %v5728_v17 = vld [vmem:[#allocation20_spill] sm:$0xff]  ;;  %v3287_v52 = vld [vmem:[%s3671_s26 + $0x70] sm:$0xff] }
 0x11f   : > { %v1252_v14 = vpack.c.bf16 %v1128_v33, %v1126_v31  ;;  %v1130_v9 = vsub.f32 %v3282_v22, %v1002_v43  ;;  %v1006_v21 = vunpack.c.l.bf16 %v5728_v17  ;;  %v1008_v63 = vunpack.c.h.bf16 %v5728_v17  ;;  %v3284_v35 = vld [vmem:[%s3671_s26 + $0x68] sm:$0xff]  ;;  %v3285_v33 = vld [vmem:[%s3671_s26 + $0x78] sm:$0xff]  ;;  %v3286_v43 = vld [vmem:[%s3671_s26 + $0x60] sm:$0xff] }
 0x120   : > { %v1255_v25 = vpack.c.bf16 %v1133_v36, %v1131_v2  ;;  %v1013_v31 = vunpack.c.h.bf16 %v5729_v62  ;;  %v1135_v26 = vsub.f32 %v3284_v35, %v1007_v40  ;;  %v3288_v22 = vld [vmem:[%s3671_s26 + $0x88] sm:$0xff]  ;;  %v5731_v40 = vpack.c.bf16 %v4395_v59, %v4392_v44 }
 0x121   : > { %v5730_v36 = vld [vmem:[#allocation24_spill] sm:$0xff] }
 0x122   : > { %v1010_v17 = vunpack.c.l.bf16 %v5730_v36  ;;  %v1012_v62 = vunpack.c.h.bf16 %v5730_v36  ;;  %v5737_v59 = vld [vmem:[#allocation28_spill] sm:$0xff] }
 0x123   : > { %1540 = vmatmul.mubr.bf16.vlgmr.msra.gmra.mrb[0].mxu1 %v5724_v15  ;;  %v1132_v15 = vsub.f32 %v3283_v30, %v1004_v54  ;;  %v1134_v54 = vsub.f32 %v3286_v43, %v1006_v21  ;;  %v1139_v30 = vsub.f32 %v3288_v22, %v1011_v23  ;;  %v5733_v21 = vld [vmem:[#allocation71_spill] sm:$0xff]  ;;  %v5736_v23 = vld [vmem:[#allocation76_spill] sm:$0xff]  ;;  %v1016_v35 = vunpack.c.h.bf16 %v5737_v59 }
 0x124   : > { %2076 = vmatmul.mubr.bf16.gmra.mrb[60].mxu0 %v4743_v24  ;;  %1549 = vmatprep.mubr.bf16.mxu1 %v5726_v56  ;;  %v1136_v56 = vsub.f32 %v3287_v52, %v1008_v63  ;;  %v5734_v63 = vpack.c.bf16 %v4401_v47, %v4398_v61  ;;  %v3291_v61 = vld [vmem:[%s3671_s26 + $0x90] sm:$0xff]  ;;  %v3292_v52 = vld [vmem:[%s3671_s26 + $0xa8] sm:$0xff] }
 0x125   : > { %2118 = vmatprep.mubr.bf16.mxu0 %v5727_v32  ;;  %1701 = vmatpush1.bf16.msra.mxu1 %v1250_v34  ;;  %v1137_v34 = vsub.f32 %v3285_v33, %v1009_v12  ;;  %v1254_v60 = vpack.c.bf16 %v1132_v15, %v1130_v9  ;;  %v1140_v47 = vsub.f32 %v3291_v61, %v1012_v62 }
 0x126   : > { %1702 = vmatprep.subr.bf16.mxu1 %v1253_v27  ;;  %v3289_v27 = vld [vmem:[%s3671_s26 + $0x98] sm:$0xff]  ;;  %v1256_v44 = vpack.c.bf16 %v1136_v56, %v1134_v54  ;;  %v5739_v54 = vld [vmem:[#allocation31_spill] sm:$0xff] }
 0x127   : > { %v1141_v2 = vsub.f32 %v3289_v27, %v1013_v31  ;;  %v1257_v12 = vpack.c.bf16 %v1137_v34, %v1135_v26  ;;  %v1014_v31 = vunpack.c.l.bf16 %v5737_v59  ;;  %v5738_v26 = vld [vmem:[#allocation17_spill] sm:$0xff]  ;;  %v3290_v34 = vld [vmem:[%s3671_s26 + $0x80] sm:$0xff]  ;;  %v3293_v27 = vld [vmem:[%s3671_s26 + $0xb8] sm:$0xff]  ;;  %v1019_v56 = vunpack.c.l.bf16 %v5739_v54 }
 0x128   : > { %v1138_v43 = vsub.f32 %v3290_v34, %v1010_v17  ;;  %v5741_v17 = vld [vmem:[#allocation32_spill] sm:$0xff]  ;;  %v5744_v34 = vpack.c.bf16 %v4424_v1, %v4413_v18  ;;  %v3298_v1 = vld [vmem:[%s3671_s26 + $0xc0] sm:$0xff] }
 0x129   : > { %1703 = vmatpush1.bf16.msra.mxu1 %v1252_v14  ;;  %v5732_v14 = vld [vmem:[#allocation27_spill] sm:$0xff]  ;;  %v1259_v33 = vpack.c.bf16 %v1141_v2, %v1139_v30  ;;  %v3295_v30 = vld [vmem:[%s3671_s26 + $0xb0] sm:$0xff]  ;;  %v1020_v62 = vunpack.c.h.bf16 %v5741_v17 }
 0x12a   : > { %1704 = vmatprep.subr.bf16.mxu1 %v1255_v25  ;;  %v1015_v9 = vunpack.c.l.bf16 %v5732_v14  ;;  %v1017_v15 = vunpack.c.h.bf16 %v5732_v14  ;;  %v5735_v25 = vld [vmem:[#allocation14_spill] sm:$0xff]  ;;  %v1144_v2 = vsub.f32 %v3295_v30, %v1016_v35  ;;  %v3296_v35 = vld [vmem:[%s3671_s26 + $0xc8] sm:$0xff] }
 0x12b   : > { %1550 = vmatmul.mubr.bf16.gmra.mrb[4].mxu1 %v5731_v40  ;;  %v1021_v40 = vunpack.c.h.bf16 %v5739_v54  ;;  %v5740_v14 = vld [vmem:[#allocation18_spill] sm:$0xff]  ;;  %v1147_v61 = vsub.f32 %v3296_v35, %v1019_v56  ;;  %v3300_v56 = vld [vmem:[%s3671_s26 + $0xe8] sm:$0xff] }
 0x12c   : > { %2119 = vmatmul.mubr.bf16.vlgmr.msra.gmra.mrb[0].mxu0 %v5733_v21  ;;  %1559 = vmatprep.mubr.bf16.mxu1 %v5734_v63  ;;  %v1143_v22 = vsub.f32 %v3292_v52, %v1015_v9  ;;  %v1145_v36 = vsub.f32 %v3293_v27, %v1017_v15  ;;  %v3294_v63 = vld [vmem:[%s3671_s26 + $0xa0] sm:$0xff]  ;;  %v1258_v9 = vpack.c.bf16 %v1140_v47, %v1138_v43  ;;  %v3297_v52 = vld [vmem:[%s3671_s26 + $0xd8] sm:$0xff]  ;;  %v5747_v47 = vld [vmem:[#allocation80_spill] sm:$0xff] }
 0x12d   : > { %2280 = vmatpush1.bf16.msra.mxu0 %v5735_v25  ;;  %2128 = vmatprep.mubr.bf16.mxu0 %v5736_v23  ;;  %v1018_v25 = vunpack.c.l.bf16 %v5741_v17  ;;  %v5743_v15 = vld [vmem:[#allocation35_spill] sm:$0xff]  ;;  %v1149_v27 = vsub.f32 %v3297_v52, %v1021_v40  ;;  %v5746_v43 = vpack.c.bf16 %v4442_v8, %v4439_v20  ;;  %v5748_v54 = vld [vmem:[#allocation22_spill] sm:$0xff]  ;;  %v5750_v17 = vld [vmem:[#allocation37_spill] sm:$0xff] }
 0x12e   : > { %2281 = vmatprep.subr.bf16.mxu0 %v5738_v26  ;;  %1705 = vmatpush1.bf16.msra.mxu1 %v1254_v60  ;;  %v1142_v60 = vsub.f32 %v3294_v63, %v1014_v31  ;;  %v1023_v59 = vunpack.c.l.bf16 %v5743_v15  ;;  %v1025_v26 = vunpack.c.h.bf16 %v5743_v15  ;;  %v1261_v31 = vpack.c.bf16 %v1145_v36, %v1143_v22  ;;  %v3299_v22 = vld [vmem:[%s3671_s26 + $0xd0] sm:$0xff]  ;;  %v3301_v63 = vld [vmem:[%s3671_s26 + $0xf8] sm:$0xff]  ;;  %v3302_v52 = vld [vmem:[%s3671_s26 + $0xe0] sm:$0xff] }
 0x12f   : > { %1706 = vmatprep.subr.bf16.mxu1 %v1257_v12  ;;  %v5742_v12 = vld [vmem:[#allocation21_spill] sm:$0xff]  ;;  %v1148_v36 = vsub.f32 %v3299_v22, %v1020_v62  ;;  %v1022_v20 = vunpack.c.l.bf16 %v5750_v17  ;;  %v1024_v8 = vunpack.c.h.bf16 %v5750_v17  ;;  %v5752_v62 = vld [vmem:[#allocation26_spill] sm:$0xff] }
 0x130   : > { %v1260_v18 = vpack.c.bf16 %v1144_v2, %v1142_v60  ;;  %v1151_v40 = vsub.f32 %v3300_v56, %v1023_v59  ;;  %v1153_v30 = vsub.f32 %v3301_v63, %v1025_v26  ;;  %v5751_v60 = vld [vmem:[#allocation39_spill] sm:$0xff]  ;;  %v5753_v15 = vld [vmem:[#allocation41_spill] sm:$0xff]  ;;  %v5759_v63 = vld [vmem:[#allocation82_spill] sm:$0xff] }
 0x131   : > { %2282 = vmatpush1.bf16.msra.mxu0 %v5740_v14  ;;  %v5749_v14 = vld [vmem:[#allocation25_spill] sm:$0xff]  ;;  %v1027_v2 = vunpack.c.l.bf16 %v5751_v60  ;;  %v1026_v59 = vunpack.c.l.bf16 %v5753_v15  ;;  %v1028_v26 = vunpack.c.h.bf16 %v5753_v15 }
 0x132   : > { %2283 = vmatprep.subr.bf16.mxu0 %v5742_v12  ;;  %1707 = vmatpush1.bf16.msra.mxu1 %v1256_v44  ;;  %v5745_v44 = vld [vmem:[#allocation77_spill] sm:$0xff]  ;;  %v1263_v12 = vpack.c.bf16 %v1149_v27, %v1147_v61  ;;  %v1265_v35 = vpack.c.bf16 %v1153_v30, %v1151_v40  ;;  %v5758_v40 = vpack.c.bf16 %v4497_v11, %v4494_v48  ;;  %v5763_v48 = vld [vmem:[#allocation47_spill] sm:$0xff] }
 0x133   : > { %1560 = vmatmul.mubr.bf16.gmra.mrb[8].mxu1 %v5744_v34  ;;  %1708 = vmatprep.subr.bf16.mxu1 %v1259_v33  ;;  %v1146_v33 = vsub.f32 %v3298_v1, %v1018_v25  ;;  %v1029_v25 = vunpack.c.h.bf16 %v5751_v60  ;;  %v5754_v34 = vld [vmem:[#allocation29_spill] sm:$0xff] }
 0x134   : > { %2129 = vmatmul.mubr.bf16.gmra.mrb[4].mxu0 %v5745_v44  ;;  %1569 = vmatprep.mubr.bf16.mxu1 %v5746_v43  ;;  %v3303_v61 = vld [vmem:[%s3671_s26 + $0xf0] sm:$0xff]  ;;  %v5755_v43 = vpack.c.bf16 %v4470_v5, %v4467_v46  ;;  %v5760_v5 = vld [vmem:[#allocation30_spill] sm:$0xff]  ;;  %v3306_v46 = vld [vmem:[%s3671_s26 + $0x100] sm:$0xff] }
 0x135   : > { %2138 = vmatprep.mubr.bf16.mxu0 %v5747_v47  ;;  %2284 = vmatpush1.bf16.msra.mxu0 %v5748_v54  ;;  %v1152_v27 = vsub.f32 %v3303_v61, %v1024_v8  ;;  %v3304_v54 = vld [vmem:[%s3671_s26 + $0x108] sm:$0xff]  ;;  %v5757_v56 = vld [vmem:[#allocation81_spill] sm:$0xff]  ;;  %v1154_v30 = vsub.f32 %v3306_v46, %v1026_v59  ;;  %v5761_v8 = vld [vmem:[#allocation46_spill] sm:$0xff] }
 0x136   : > { %2285 = vmatprep.subr.bf16.mxu0 %v5749_v14  ;;  %1709 = vmatpush1.bf16.msra.mxu1 %v1258_v9  ;;  %v1262_v9 = vpack.c.bf16 %v1148_v36, %v1146_v33  ;;  %v1155_v1 = vsub.f32 %v3304_v54, %v1027_v2  ;;  %v3305_v33 = vld [vmem:[%s3671_s26 + $0x118] sm:$0xff]  ;;  %v5756_v36 = vld [vmem:[#allocation43_spill] sm:$0xff]  ;;  %v3307_v17 = vld [vmem:[%s3671_s26 + $0x110] sm:$0xff]  ;;  %v1032_v60 = vunpack.c.h.bf16 %v5761_v8 }
 0x137   : > { %1710 = vmatprep.subr.bf16.mxu1 %v1261_v31  ;;  %v1150_v31 = vsub.f32 %v3302_v52, %v1022_v20  ;;  %v1157_v22 = vsub.f32 %v3305_v33, %v1029_v25  ;;  %v1031_v14 = vunpack.c.l.bf16 %v5756_v36  ;;  %v1156_v20 = vsub.f32 %v3307_v17, %v1028_v26  ;;  %v5762_v2 = vld [vmem:[#allocation33_spill] sm:$0xff]  ;;  %v3308_v59 = vld [vmem:[%s3671_s26 + $0x128] sm:$0xff]  ;;  %v5764_v61 = vld [vmem:[#allocation34_spill] sm:$0xff] }
 0x138   : > { %v1035_v25 = vunpack.c.l.bf16 %v5763_v48  ;;  %v3310_v54 = vld [vmem:[%s3671_s26 + $0x120] sm:$0xff]  ;;  %v5766_v46 = vld [vmem:[#allocation48_spill] sm:$0xff] }
 0x139   : > { %2286 = vmatpush1.bf16.msra.mxu0 %v5752_v62  ;;  %v1264_v11 = vpack.c.bf16 %v1152_v27, %v1150_v31  ;;  %v1037_v62 = vunpack.c.h.bf16 %v5763_v48  ;;  %v1267_v15 = vpack.c.bf16 %v1157_v22, %v1155_v1  ;;  %v1159_v26 = vsub.f32 %v3308_v59, %v1031_v14  ;;  %v5765_v31 = vld [vmem:[#allocation36_spill] sm:$0xff] }
 0x13a   : > { %2287 = vmatprep.subr.bf16.mxu0 %v5754_v34  ;;  %1711 = vmatpush1.bf16.msra.mxu1 %v1260_v18  ;;  %v1033_v18 = vunpack.c.h.bf16 %v5756_v36  ;;  %v3309_v34 = vld [vmem:[%s3671_s26 + $0x138] sm:$0xff]  ;;  %v3311_v36 = vld [vmem:[%s3671_s26 + $0x130] sm:$0xff]  ;;  %v3312_v27 = vld [vmem:[%s3671_s26 + $0x148] sm:$0xff]  ;;  %v1034_v1 = vunpack.c.l.bf16 %v5766_v46  ;;  %v1036_v22 = vunpack.c.h.bf16 %v5766_v46  ;;  %v5767_v14 = vpack.c.bf16 %v4519_v6, %v4516_v29 }
 0x13b   : > { %1570 = vmatmul.mubr.bf16.gmra.mrb[12].mxu1 %v5755_v43  ;;  %1712 = vmatprep.subr.bf16.mxu1 %v1263_v12  ;;  %v1030_v12 = vunpack.c.l.bf16 %v5761_v8  ;;  %v1266_v43 = vpack.c.bf16 %v1156_v20, %v1154_v30  ;;  %v5768_v30 = vld [vmem:[#allocation51_spill] sm:$0xff]  ;;  %v5769_v8 = vld [vmem:[#allocation84_spill] sm:$0xff]  ;;  %v5772_v29 = vld [vmem:[#allocation38_spill] sm:$0xff] }
 0x13c   : > { %2139 = vmatmul.mubr.bf16.gmra.mrb[8].mxu0 %v5757_v56  ;;  %1579 = vmatprep.mubr.bf16.mxu1 %v5758_v40  ;;  %v1161_v52 = vsub.f32 %v3309_v34, %v1033_v18  ;;  %v1163_v40 = vsub.f32 %v3312_v27, %v1035_v25  ;;  %v1039_v17 = vunpack.c.l.bf16 %v5768_v30  ;;  %v1041_v20 = vunpack.c.h.bf16 %v5768_v30  ;;  %v5774_v25 = vld [vmem:[#allocation40_spill] sm:$0xff]  ;;  %v3319_v27 = vld [vmem:[%s3671_s26 + $0x170] sm:$0xff] }
 0x13d   : > { %2148 = vmatprep.mubr.bf16.mxu0 %v5759_v63  ;;  %2288 = vmatpush1.bf16.msra.mxu0 %v5760_v5  ;;  %v1158_v33 = vsub.f32 %v3310_v54, %v1030_v12  ;;  %v3313_v5 = vld [vmem:[%s3671_s26 + $0x158] sm:$0xff]  ;;  %v5770_v12 = vpack.c.bf16 %v4536_v41, %v4533_v45  ;;  %v3315_v41 = vld [vmem:[%s3671_s26 + $0x150] sm:$0xff]  ;;  %v5775_v54 = vld [vmem:[#allocation55_spill] sm:$0xff] }
 0x13e   : > { %2289 = vmatprep.subr.bf16.mxu0 %v5762_v2  ;;  %1713 = vmatpush1.bf16.msra.mxu1 %v1262_v9  ;;  %v1160_v9 = vsub.f32 %v3311_v36, %v1032_v60  ;;  %v1269_v18 = vpack.c.bf16 %v1161_v52, %v1159_v26  ;;  %v5771_v60 = vld [vmem:[#allocation85_spill] sm:$0xff]  ;;  %v5773_v2 = vld [vmem:[#allocation52_spill] sm:$0xff]  ;;  %v1164_v45 = vsub.f32 %v3315_v41, %v1036_v22  ;;  %v3317_v52 = vld [vmem:[%s3671_s26 + $0x178] sm:$0xff]  ;;  %v1045_v36 = vunpack.c.h.bf16 %v5775_v54 }
 0x13f   : > { %1714 = vmatprep.subr.bf16.mxu1 %v1265_v35  ;;  %v1165_v35 = vsub.f32 %v3313_v5, %v1037_v62  ;;  %v1040_v48 = vunpack.c.h.bf16 %v5773_v2  ;;  %v3316_v26 = vld [vmem:[%s3671_s26 + $0x168] sm:$0xff]  ;;  %v1042_v5 = vunpack.c.l.bf16 %v5644_v19  ;;  %v1047_v22 = vunpack.c.l.bf16 %v5645_v58 }
 0x140   : > { %v1268_v6 = vpack.c.bf16 %v1160_v9, %v1158_v33  ;;  %v1167_v34 = vsub.f32 %v3316_v26, %v1039_v17  ;;  %v1043_v33 = vunpack.c.l.bf16 %v5775_v54  ;;  %v5776_v9 = vld [vmem:[#allocation42_spill] sm:$0xff]  ;;  %v3320_v17 = vld [vmem:[%s3671_s26 + $0x188] sm:$0xff]  ;;  %v1053_v54 = vunpack.c.h.bf16 %v5650_v10 }
 0x141   : > { %2290 = vmatpush1.bf16.msra.mxu0 %v5764_v61  ;;  %v1271_v62 = vpack.c.bf16 %v1165_v35, %v1163_v40  ;;  %v1169_v61 = vsub.f32 %v3317_v52, %v1041_v20  ;;  %v1168_v40 = vsub.f32 %v3319_v27, %v1040_v48  ;;  %v5777_v35 = vld [vmem:[#allocation44_spill] sm:$0xff]  ;;  %v3322_v48 = vld [vmem:[%s3671_s26 + $0x180] sm:$0xff]  ;;  %v3325_v26 = vld [vmem:[%s3671_s26 + $0x1b8] sm:$0xff] }
 0x142   : > { %2291 = vmatprep.subr.bf16.mxu0 %v5765_v31  ;;  %1715 = vmatpush1.bf16.msra.mxu1 %v1264_v11  ;;  %v1038_v11 = vunpack.c.l.bf16 %v5773_v2  ;;  %v3318_v31 = vld [vmem:[%s3671_s26 + $0x160] sm:$0xff]  ;;  %v1171_v20 = vsub.f32 %v3320_v17, %v1043_v33  ;;  %v5782_v2 = vld [vmem:[#allocation45_spill] sm:$0xff]  ;;  %v3324_v41 = vld [vmem:[%s3671_s26 + $0x1a8] sm:$0xff] }
 0x143   : > { %1580 = vmatmul.mubr.bf16.gmra.mrb[16].mxu1 %v5767_v14  ;;  %1716 = vmatprep.subr.bf16.mxu1 %v1267_v15  ;;  %v3314_v15 = vld [vmem:[%s3671_s26 + $0x140] sm:$0xff]  ;;  %v1049_v14 = vunpack.c.h.bf16 %v5645_v58  ;;  %v1273_v30 = vpack.c.bf16 %v1169_v61, %v1167_v34  ;;  %v668_v58 = vunpack.c.l.bf16 %v4321_v39  ;;  %v1051_v61 = vunpack.c.l.bf16 %v5650_v10  ;;  %v5784_v33 = vld [vmem:[#allocation117_spill] sm:$0xff]  ;;  %v3329_v17 = vld [vmem:[%s3671_s26 + $0x1d8] sm:$0xff] }
 0x144   : > { %2149 = vmatmul.mubr.bf16.gmra.mrb[12].mxu0 %v5769_v8  ;;  %1589 = vmatprep.mubr.bf16.mxu1 %v5770_v12  ;;  %v1162_v59 = vsub.f32 %v3314_v15, %v1034_v1  ;;  %v1044_v1 = vunpack.c.h.bf16 %v5644_v19  ;;  %v3321_v12 = vld [vmem:[%s3671_s26 + $0x198] sm:$0xff]  ;;  %v5780_v19 = vpack.c.bf16 %v4576_v28, %v4573_v0  ;;  %v1048_v15 = vunpack.c.h.bf16 %v5648_v13  ;;  %v3323_v28 = vld [vmem:[%s3671_s26 + $0x190] sm:$0xff] }
 0x145   : > { %2158 = vmatprep.mubr.bf16.mxu0 %v5771_v60  ;;  %2292 = vmatpush1.bf16.msra.mxu0 %v5772_v29  ;;  %v1173_v29 = vsub.f32 %v3321_v12, %v1045_v36  ;;  %v1177_v34 = vsub.f32 %v3325_v26, %v1049_v14  ;;  %v5785_v36 = vld [vmem:[#allocation118_spill] sm:$0xff]  ;;  %v1052_v10 = vunpack.c.h.bf16 %v3991_v51  ;;  %v5788_v14 = vpack.c.bf16 %v4597_v7, %v4594_v42  ;;  %v5793_v7 = vld [vmem:[#allocation127_spill] sm:$0xff]  ;;  %v3332_v26 = vld [vmem:[%s3671_s26 + $0x1e8] sm:$0xff] }
 0x146   : > { %2293 = vmatprep.subr.bf16.mxu0 %v5774_v25  ;;  %1717 = vmatpush1.bf16.msra.mxu1 %v1266_v43  ;;  %v1166_v43 = vsub.f32 %v3318_v31, %v1038_v11  ;;  %v1270_v46 = vpack.c.bf16 %v1164_v45, %v1162_v59  ;;  %v1170_v25 = vsub.f32 %v3322_v48, %v1042_v5  ;;  %v5783_v59 = vld [vmem:[#allocation49_spill] sm:$0xff]  ;;  %v5786_v31 = vld [vmem:[#allocation50_spill] sm:$0xff] }
 0x147   : > { %1718 = vmatprep.subr.bf16.mxu1 %v1269_v18  ;;  %v5778_v18 = vpack.c.bf16 %v4556_v57, %v4553_v55  ;;  %v672_v55 = vunpack.c.h.bf16 %v4321_v39  ;;  %v5781_v57 = vld [vmem:[#allocation89_spill] sm:$0xff]  ;;  %v1172_v0 = vsub.f32 %v3323_v28, %v1044_v1  ;;  %v1175_v45 = vsub.f32 %v3324_v41, %v1047_v22  ;;  %v5789_v12 = vld [vmem:[#allocation66_spill] sm:$0xff] }
 0x148   : > { %v1272_v11 = vpack.c.bf16 %v1168_v40, %v1166_v43  ;;  %v1275_v52 = vpack.c.bf16 %v1173_v29, %v1171_v20  ;;  %v3326_v43 = vld [vmem:[%s3671_s26 + $0x1a0] sm:$0xff]  ;;  %v3327_v40 = vld [vmem:[%s3671_s26 + $0x1b0] sm:$0xff]  ;;  %v1050_v22 = vunpack.c.l.bf16 %v3991_v51  ;;  %v1181_v20 = vsub.f32 %v3329_v17, %v1053_v54  ;;  %v5797_v54 = vld [vmem:[#allocation128_spill] sm:$0xff] }
 0x149   : > { %2294 = vmatpush1.bf16.msra.mxu0 %v5776_v9  ;;  %v800_v9 = vsub.f32 %v5785_v36, %v672_v55  ;;  %v1176_v5 = vsub.f32 %v3327_v40, %v1048_v15  ;;  %v1277_v1 = vpack.c.bf16 %v1177_v34, %v1175_v45  ;;  %v1055_v29 = vunpack.c.l.bf16 %v5789_v12  ;;  %v5792_v55 = vld [vmem:[#allocation93_spill] sm:$0xff]  ;;  %v5798_v36 = vld [vmem:[#allocation58_spill] sm:$0xff] }
 0x14a   : > { %2295 = vmatprep.subr.bf16.mxu0 %v5777_v35  ;;  %1719 = vmatpush1.bf16.msra.mxu1 %v1268_v6  ;;  %v5779_v6 = vld [vmem:[#allocation88_spill] sm:$0xff]  ;;  %v5787_v35 = vld [vmem:[#allocation53_spill] sm:$0xff]  ;;  %v5791_v51 = vpack.c.bf16 %v4610_v3, %v4607_v38  ;;  %v680_v41 = vunpack.c.h.bf16 %v5793_v7 }
 0x14b   : > { %1590 = vmatmul.mubr.bf16.gmra.mrb[20].mxu1 %v5778_v18  ;;  %1720 = vmatprep.subr.bf16.mxu1 %v1271_v62  ;;  %v1046_v62 = vunpack.c.l.bf16 %v5648_v13  ;;  %v796_v13 = vsub.f32 %v5784_v33, %v668_v58  ;;  %v3328_v18 = vld [vmem:[%s3671_s26 + $0x1c8] sm:$0xff]  ;;  %v1183_v34 = vsub.f32 %v3332_v26, %v1055_v29  ;;  %v685_v33 = vunpack.c.l.bf16 %v5797_v54  ;;  %v3335_v40 = vld [vmem:[%s3671_s26 + $0x1f0] sm:$0xff] }
 0x14c   : > { %2159 = vmatmul.mubr.bf16.gmra.mrb[16].mxu0 %v5779_v6  ;;  %1599 = vmatprep.mubr.bf16.mxu1 %v5780_v19  ;;  %v1057_v19 = vunpack.c.h.bf16 %v5789_v12  ;;  %v5790_v58 = vld [vmem:[#allocation92_spill] sm:$0xff]  ;;  %v5806_v29 = vld [vmem:[#allocation97_spill] sm:$0xff] }
 0x14d   : > { %2168 = vmatprep.mubr.bf16.mxu0 %v5781_v57  ;;  %2296 = vmatpush1.bf16.msra.mxu0 %v5782_v2  ;;  %v1174_v27 = vsub.f32 %v3326_v43, %v1046_v62  ;;  %v896_v42 = vpack.c.bf16 %v800_v9, %v796_v13  ;;  %v676_v2 = vunpack.c.l.bf16 %v5793_v7  ;;  %v3330_v62 = vld [vmem:[%s3671_s26 + $0x1c0] sm:$0xff]  ;;  %v689_v13 = vunpack.c.h.bf16 %v5797_v54  ;;  %v5799_v9 = vld [vmem:[#allocation60_spill] sm:$0xff]  ;;  %v5816_v26 = vld [vmem:[#allocation133_spill] sm:$0xff] }
 0x14e   : > { %2297 = vmatprep.subr.bf16.mxu0 %v5783_v59  ;;  %1721 = vmatpush1.bf16.msra.mxu1 %v1270_v46  ;;  %v1274_v46 = vpack.c.bf16 %v1172_v0, %v1170_v25  ;;  %v5795_v25 = vld [vmem:[#allocation56_spill] sm:$0xff]  ;;  %v1178_v15 = vsub.f32 %v3330_v62, %v1050_v22  ;;  %v3331_v59 = vld [vmem:[%s3671_s26 + $0x1d0] sm:$0xff]  ;;  %v5796_v0 = vld [vmem:[#allocation67_spill] sm:$0xff] }
 0x14f   : > { %1722 = vmatprep.subr.bf16.mxu1 %v1273_v30  ;;  %v1179_v30 = vsub.f32 %v3328_v18, %v1051_v61  ;;  %v1276_v48 = vpack.c.bf16 %v1176_v5, %v1174_v27  ;;  %v1180_v28 = vsub.f32 %v3331_v59, %v1052_v10  ;;  %v1054_v3 = vunpack.c.l.bf16 %v5796_v0  ;;  %v3334_v43 = vld [vmem:[%s3671_s26 + $0x1e0] sm:$0xff]  ;;  %v5811_v59 = vld [vmem:[#allocation65_spill] sm:$0xff] }
 0x150   : > { %v1056_v38 = vunpack.c.h.bf16 %v5796_v0  ;;  %v5803_v18 = vpack.c.bf16 %v4634_v49, %v4631_v53  ;;  %v5810_v49 = vld [vmem:[#allocation100_spill] sm:$0xff]  ;;  %v5813_v0 = vld [vmem:[#allocation131_spill] sm:$0xff] }
 0x151   : > { %2298 = vmatpush1.bf16.msra.mxu0 %v5786_v31  ;;  %v1279_v45 = vpack.c.bf16 %v1181_v20, %v1179_v30  ;;  %v1278_v31 = vpack.c.bf16 %v1180_v28, %v1178_v15  ;;  %v1182_v27 = vsub.f32 %v3334_v43, %v1054_v3  ;;  %v5804_v30 = vld [vmem:[#allocation125_spill] sm:$0xff]  ;;  %v5805_v20 = vld [vmem:[#allocation126_spill] sm:$0xff]  ;;  %v693_v62 = vunpack.c.l.bf16 %v5810_v49  ;;  %v5812_v28 = vld [vmem:[#allocation68_spill] sm:$0xff] }
 0x152   : > { %2299 = vmatprep.subr.bf16.mxu0 %v5787_v35  ;;  %1723 = vmatpush1.bf16.msra.mxu1 %v1272_v11  ;;  %v5794_v11 = vld [vmem:[#allocation54_spill] sm:$0xff]  ;;  %v1184_v5 = vsub.f32 %v3335_v40, %v1056_v38  ;;  %v813_v17 = vsub.f32 %v5804_v30, %v685_v33  ;;  %v817_v12 = vsub.f32 %v5805_v20, %v689_v13  ;;  %v697_v15 = vunpack.c.h.bf16 %v5810_v49  ;;  %v5814_v38 = vld [vmem:[#allocation132_spill] sm:$0xff]  ;;  %v5818_v33 = vld [vmem:[#allocation105_spill] sm:$0xff] }
 0x153   : > { %1600 = vmatmul.mubr.bf16.gmra.mrb[24].mxu1 %v5788_v14  ;;  %1724 = vmatprep.subr.bf16.mxu1 %v1275_v52  ;;  %v3333_v52 = vld [vmem:[%s3671_s26 + $0x1f8] sm:$0xff]  ;;  %v5802_v14 = vld [vmem:[#allocation96_spill] sm:$0xff]  ;;  %v696_v43 = vunpack.c.h.bf16 %v4584_v50  ;;  %v701_v40 = vunpack.c.l.bf16 %v4614_v16  ;;  %v5826_v20 = vld [vmem:[#allocation109_spill] sm:$0xff] }
 0x154   : > { %2169 = vmatmul.mubr.bf16.gmra.mrb[20].mxu0 %v5790_v58  ;;  %1609 = vmatprep.mubr.bf16.mxu1 %v5791_v51  ;;  %v1185_v61 = vsub.f32 %v3333_v52, %v1057_v19  ;;  %v5800_v35 = vld [vmem:[#allocation62_spill] sm:$0xff]  ;;  %v5807_v19 = vld [vmem:[#allocation61_spill] sm:$0xff]  ;;  %v5808_v51 = vld [vmem:[#allocation64_spill] sm:$0xff]  ;;  %v905_v53 = vpack.c.bf16 %v817_v12, %v813_v17 }
 0x155   : > { %2178 = vmatprep.mubr.bf16.mxu0 %v5792_v55  ;;  %2300 = vmatpush1.bf16.msra.mxu0 %v5794_v11  ;;  %v5809_v11 = vld [vmem:[#allocation99_spill] sm:$0xff]  ;;  %v5817_v52 = vld [vmem:[#allocation98_spill] sm:$0xff]  ;;  %v5825_v30 = vld [vmem:[#allocation108_spill] sm:$0xff] }
 0x156   : > { %2301 = vmatprep.subr.bf16.mxu0 %v5795_v25  ;;  %1725 = vmatpush1.bf16.msra.mxu1 %v1274_v46  ;;  %v804_v46 = vsub.f32 %v5800_v35, %v676_v2  ;;  %v1281_v10 = vpack.c.bf16 %v1185_v61, %v1183_v34  ;;  %v688_v25 = vunpack.c.h.bf16 %v5809_v11  ;;  %v821_v34 = vsub.f32 %v5816_v26, %v693_v62  ;;  %v5819_v13 = vld [vmem:[#allocation70_spill] sm:$0xff]  ;;  %v5821_v35 = vld [vmem:[#allocation73_spill] sm:$0xff]  ;;  %v5833_v26 = vld [vmem:[#allocation136_spill] sm:$0xff] }
 0x157   : > { %1726 = vmatprep.subr.bf16.mxu1 %v1277_v1  ;;  %v5801_v1 = vld [vmem:[#allocation63_spill] sm:$0xff]  ;;  %v825_v61 = vsub.f32 %v5817_v52, %v697_v15  ;;  %v829_v17 = vsub.f32 %v5825_v30, %v701_v40  ;;  %v5834_v52 = vld [vmem:[#allocation124_spill] sm:$0xff] }
 0x158   : > { %v808_v22 = vsub.f32 %v5801_v1, %v680_v41  ;;  %v816_v41 = vsub.f32 %v5814_v38, %v688_v25  ;;  %v5828_v25 = vld [vmem:[#allocation137_spill] sm:$0xff]  ;;  %v5829_v15 = vld [vmem:[#allocation115_spill] sm:$0xff]  ;;  %v5836_v40 = vld [vmem:[#allocation140_spill] sm:$0xff] }
 0x159   : > { %2302 = vmatpush1.bf16.msra.mxu0 %v5798_v36  ;;  %v5820_v36 = vld [vmem:[#allocation72_spill] sm:$0xff]  ;;  %v713_v62 = vunpack.c.h.bf16 %v5828_v25  ;;  %v5832_v38 = vld [vmem:[#allocation135_spill] sm:$0xff] }
 0x15a   : > { %2303 = vmatprep.subr.bf16.mxu0 %v5799_v9  ;;  %1727 = vmatpush1.bf16.msra.mxu1 %v1276_v48  ;;  %v900_v2 = vpack.c.bf16 %v808_v22, %v804_v46  ;;  %v684_v48 = vunpack.c.l.bf16 %v5809_v11  ;;  %v5822_v46 = vld [vmem:[#allocation106_spill] sm:$0xff]  ;;  %v5823_v22 = vld [vmem:[#allocation107_spill] sm:$0xff] }
 0x15b   : > { %1610 = vmatmul.mubr.bf16.gmra.mrb[28].mxu1 %v896_v42  ;;  %1728 = vmatprep.subr.bf16.mxu1 %v1279_v45  ;;  %v1280_v42 = vpack.c.bf16 %v1184_v5, %v1182_v27  ;;  %v5815_v45 = vld [vmem:[#allocation104_spill] sm:$0xff]  ;;  %v909_v27 = vpack.c.bf16 %v825_v61, %v821_v34  ;;  %v705_v5 = vunpack.c.h.bf16 %v4614_v16  ;;  %v841_v34 = vsub.f32 %v5833_v26, %v713_v62  ;;  %v5840_v30 = vld [vmem:[#allocation143_spill] sm:$0xff] }
 0x15c   : > { %2179 = vmatmul.mubr.bf16.gmra.mrb[24].mxu0 %v5802_v14  ;;  %1619 = vmatprep.mubr.bf16.mxu1 %v5803_v18  ;;  %v812_v3 = vsub.f32 %v5813_v0, %v684_v48  ;;  %v5824_v18 = vld [vmem:[#allocation112_spill] sm:$0xff] }
 0x15d   : > { %2188 = vmatprep.mubr.bf16.mxu0 %v5806_v29  ;;  %2304 = vmatpush1.bf16.msra.mxu0 %v5807_v19  ;;  %v833_v12 = vsub.f32 %v5826_v20, %v705_v5  ;;  %v5827_v19 = vld [vmem:[#allocation119_spill] sm:$0xff]  ;;  %v5847_v26 = vld [vmem:[#allocation148_spill] sm:$0xff] }
 0x15e   : > { %2305 = vmatprep.subr.bf16.mxu0 %v5808_v51  ;;  %1729 = vmatpush1.bf16.msra.mxu1 %v1278_v31  ;;  %v904_v9 = vpack.c.bf16 %v816_v41, %v812_v3  ;;  %v692_v31 = vunpack.c.l.bf16 %v4584_v50  ;;  %v5831_v3 = vld [vmem:[#allocation120_spill] sm:$0xff]  ;;  %v5841_v20 = vld [vmem:[#allocation59_spill] sm:$0xff] }
 0x15f   : > { %1730 = vmatprep.subr.bf16.mxu1 %v1281_v10  ;;  %v824_v10 = vsub.f32 %v5823_v22, %v696_v43  ;;  %v913_v48 = vpack.c.bf16 %v833_v12, %v829_v17  ;;  %v5839_v22 = vld [vmem:[#allocation142_spill] sm:$0xff] }
 0x160   : > { %v820_v1 = vsub.f32 %v5822_v46, %v692_v31  ;;  %v5835_v31 = vld [vmem:[#allocation144_spill] sm:$0xff] }
 0x161   : > { %2306 = vmatpush1.bf16.msra.mxu0 %v5811_v59  ;;  %v717_v43 = vunpack.c.l.bf16 %v5835_v31 }
 0x162   : > { %2307 = vmatprep.subr.bf16.mxu0 %v5812_v28  ;;  %1731 = vmatpush1.bf16.msra.mxu1 %v1280_v42  ;;  %v908_v51 = vpack.c.bf16 %v824_v10, %v820_v1  ;;  %v700_v42 = vunpack.c.l.bf16 %v4646_v4  ;;  %v5830_v28 = vld [vmem:[#allocation116_spill] sm:$0xff]  ;;  %v5838_v1 = vld [vmem:[#allocation57_spill] sm:$0xff] }
 0x163   : > { %1620 = vmatmul.mubr.bf16.gmra.mrb[32].mxu1 %v900_v2  ;;  %v704_v2 = vunpack.c.h.bf16 %v4646_v4  ;;  %v845_v10 = vsub.f32 %v5839_v22, %v717_v43  ;;  %v5850_v43 = vld [vmem:[#allocation156_spill] sm:$0xff] }
 0x164   : > { %2189 = vmatmul.mubr.bf16.gmra.mrb[28].mxu0 %v5815_v45  ;;  %1629 = vmatprep.mubr.bf16.mxu1 %v905_v53  ;;  %v709_v53 = vunpack.c.l.bf16 %v5828_v25  ;;  %v828_v59 = vsub.f32 %v5829_v15, %v700_v42 }
 0x165   : > { %2198 = vmatprep.mubr.bf16.mxu0 %v5818_v33  ;;  %2308 = vmatpush1.bf16.msra.mxu0 %v5819_v13  ;;  %v832_v0 = vsub.f32 %v5830_v28, %v704_v2  ;;  %v708_v13 = vunpack.c.l.bf16 %v4672_v37 }
 0x166   : > { %2309 = vmatprep.subr.bf16.mxu0 %v5820_v36  ;;  %v837_v41 = vsub.f32 %v5832_v38, %v709_v53  ;;  %v712_v36 = vunpack.c.h.bf16 %v4672_v37  ;;  %v5843_v53 = vld [vmem:[#allocation151_spill] sm:$0xff] }
 0x167   : > { %v912_v61 = vpack.c.bf16 %v832_v0, %v828_v59  ;;  %v836_v5 = vsub.f32 %v5836_v40, %v708_v13  ;;  %v725_v62 = vunpack.c.l.bf16 %v5843_v53  ;;  %v729_v15 = vunpack.c.h.bf16 %v5843_v53  ;;  %v5844_v59 = vld [vmem:[#allocation146_spill] sm:$0xff]  ;;  %v5845_v0 = vld [vmem:[#allocation147_spill] sm:$0xff] }
 0x168   : > { %v728_v40 = vunpack.c.h.bf16 %v5850_v43 }
 0x169   : > { %2310 = vmatpush1.bf16.msra.mxu0 %v5821_v35  ;;  %v5837_v35 = vld [vmem:[#allocation141_spill] sm:$0xff] }
 0x16a   : > { %v840_v46 = vsub.f32 %v5837_v35, %v712_v36  ;;  %v5849_v36 = vld [vmem:[#allocation130_spill] sm:$0xff]  ;;  %v5851_v35 = vld [vmem:[#allocation157_spill] sm:$0xff] }
 0x16b   : > { %1630 = vmatmul.mubr.bf16.gmra.mrb[36].mxu1 %v904_v9  ;;  %v917_v9 = vpack.c.bf16 %v841_v34, %v837_v41  ;;  %v5846_v41 = vld [vmem:[#allocation129_spill] sm:$0xff]  ;;  %v853_v34 = vsub.f32 %v5847_v26, %v725_v62  ;;  %v737_v22 = vunpack.c.h.bf16 %v5851_v35  ;;  %v5856_v62 = vld [vmem:[#allocation155_spill] sm:$0xff] }
 0x16c   : > { %2199 = vmatmul.mubr.bf16.gmra.mrb[32].mxu0 %v5824_v18  ;;  %1639 = vmatprep.mubr.bf16.mxu1 %v909_v27  ;;  %v721_v27 = vunpack.c.h.bf16 %v5835_v31  ;;  %v916_v12 = vpack.c.bf16 %v840_v46, %v836_v5  ;;  %v733_v46 = vunpack.c.l.bf16 %v5851_v35 }
 0x16d   : > { %2208 = vmatprep.mubr.bf16.mxu0 %v5827_v19 }
 0x16e   : > { %v849_v17 = vsub.f32 %v5840_v30, %v721_v27  ;;  %v724_v27 = vunpack.c.l.bf16 %v5850_v43 }
 0x173   : > { %1640 = vmatmul.mubr.bf16.gmra.mrb[40].mxu1 %v908_v51  ;;  %v5842_v51 = vld [vmem:[#allocation150_spill] sm:$0xff] }
 0x174   : > { %2209 = vmatmul.mubr.bf16.gmra.mrb[36].mxu0 %v5831_v3  ;;  %1649 = vmatprep.mubr.bf16.mxu1 %v913_v48  ;;  %v716_v42 = vunpack.c.l.bf16 %v5842_v51  ;;  %v720_v2 = vunpack.c.h.bf16 %v5842_v51  ;;  %v921_v48 = vpack.c.bf16 %v849_v17, %v845_v10  ;;  %v5852_v10 = vld [vmem:[#allocation152_spill] sm:$0xff]  ;;  %v5853_v17 = vld [vmem:[#allocation153_spill] sm:$0xff] }
 0x175   : > { %2218 = vmatprep.mubr.bf16.mxu0 %v5834_v52  ;;  %v852_v30 = vsub.f32 %v5852_v10, %v724_v27  ;;  %v5860_v27 = vld [vmem:[#allocation113_spill] sm:$0xff] }
 0x176   : > { %v844_v28 = vsub.f32 %v5844_v59, %v716_v42  ;;  %v848_v38 = vsub.f32 %v5845_v0, %v720_v2  ;;  %v5854_v42 = vld [vmem:[#allocation101_spill] sm:$0xff]  ;;  %v5855_v2 = vld [vmem:[#allocation154_spill] sm:$0xff]  ;;  %v732_v0 = vunpack.c.l.bf16 %v4743_v24 }
 0x177   : > { %v5857_v59 = vld [vmem:[#allocation134_spill] sm:$0xff]  ;;  %v5864_v10 = vld [vmem:[#allocation145_spill] sm:$0xff] }
 0x17b   : > { %1650 = vmatmul.mubr.bf16.gmra.mrb[44].mxu1 %v912_v61  ;;  %v5848_v61 = vld [vmem:[#allocation149_spill] sm:$0xff] }
 0x17c   : > { %2219 = vmatmul.mubr.bf16.gmra.mrb[40].mxu0 %v5838_v1  ;;  %1659 = vmatprep.mubr.bf16.mxu1 %v917_v9  ;;  %v857_v13 = vsub.f32 %v5848_v61, %v729_v15  ;;  %v920_v9 = vpack.c.bf16 %v848_v38, %v844_v28  ;;  %v865_v15 = vsub.f32 %v5856_v62, %v737_v22  ;;  %v736_v38 = vunpack.c.h.bf16 %v4743_v24  ;;  %v5863_v22 = vld [vmem:[#allocation139_spill] sm:$0xff] }
 0x17d   : > { %2228 = vmatprep.mubr.bf16.mxu0 %v5841_v20 }
 0x17e   : > { %v925_v5 = vpack.c.bf16 %v857_v13, %v853_v34  ;;  %v5858_v34 = vld [vmem:[#allocation11_spill] sm:$0xff]  ;;  %v5859_v13 = vld [vmem:[#allocation12_spill] sm:$0xff] }
 0x17f   : > { %v860_v61 = vsub.f32 %v5858_v34, %v732_v0 }
 0x183   : > { %1660 = vmatmul.mubr.bf16.gmra.mrb[48].mxu1 %v916_v12  ;;  %v856_v12 = vsub.f32 %v5853_v17, %v728_v40  ;;  %v5861_v40 = vld [vmem:[#allocation114_spill] sm:$0xff]  ;;  %v5866_v17 = vld [vmem:[#allocation75_spill] sm:$0xff] }
 0x184   : > { %2229 = vmatmul.mubr.bf16.gmra.mrb[44].mxu0 %v5846_v41  ;;  %1669 = vmatprep.mubr.bf16.mxu1 %v921_v48  ;;  %v861_v48 = vsub.f32 %v5855_v2, %v733_v46  ;;  %v5862_v46 = vld [vmem:[#allocation138_spill] sm:$0xff] }
 0x185   : > { %2238 = vmatprep.mubr.bf16.mxu0 %v5849_v36  ;;  %v924_v28 = vpack.c.bf16 %v856_v12, %v852_v30  ;;  %v5865_v30 = vld [vmem:[#allocation74_spill] sm:$0xff]  ;;  %v5867_v12 = vld [vmem:[#allocation83_spill] sm:$0xff] }
 0x186   : > { %v929_v26 = vpack.c.bf16 %v865_v15, %v861_v48 }
 0x18b   : > { %1670 = vmatmul.mubr.bf16.gmra.mrb[52].mxu1 %v920_v9  ;;  %v864_v9 = vsub.f32 %v5859_v13, %v736_v38 }
 0x18c   : > { %2239 = vmatmul.mubr.bf16.gmra.mrb[48].mxu0 %v5854_v42  ;;  %1679 = vmatprep.mubr.bf16.mxu1 %v925_v5 }
 0x18d   : > { %2248 = vmatprep.mubr.bf16.mxu0 %v5857_v59  ;;  %v928_v5 = vpack.c.bf16 %v864_v9, %v860_v61 }
 0x193   : > { %1680 = vmatmul.mubr.bf16.gmra.mrb[56].mxu1 %v924_v28 }
 0x194   : > { %2249 = vmatmul.mubr.bf16.gmra.mrb[52].mxu0 %v5860_v27  ;;  %1689 = vmatprep.mubr.bf16.mxu1 %v929_v26 }
 0x195   : > { %2258 = vmatprep.mubr.bf16.mxu0 %v5861_v40 }
 0x19b   : > { %1690 = vmatmul.mubr.bf16.gmra.mrb[60].mxu1 %v928_v5 }
 0x19c   : > { %2259 = vmatmul.mubr.bf16.gmra.mrb[56].mxu0 %v5862_v46  ;;  %1732 = vmatprep.mubr.bf16.mxu1 %v5727_v32  ;;  %v5868_v32 = vld [vmem:[#allocation86_spill] sm:$0xff] }
 0x19d   : > { %2268 = vmatprep.mubr.bf16.mxu0 %v5863_v22 }
 0x1a3   : > { %1733 = vmatmul.mubr.bf16.vlgmr.msra.gmra.mrb[0].mxu1 %v5733_v21  ;;  %v5869_v21 = vld [vmem:[#allocation87_spill] sm:$0xff] }
 0x1a4   : > { %2269 = vmatmul.mubr.bf16.gmra.mrb[60].mxu0 %v5864_v10  ;;  %1742 = vmatprep.mubr.bf16.mxu1 %v5736_v23  ;;  %v5870_v23 = vld [vmem:[#allocation90_spill] sm:$0xff] }
 0x1a5   : > { %2311 = vmatprep.mubr.bf16.mxu0 %v5865_v30 }
 0x1ab   : > { %1743 = vmatmul.mubr.bf16.gmra.mrb[4].mxu1 %v5745_v44  ;;  %v5871_v44 = vld [vmem:[#allocation91_spill] sm:$0xff] }
 0x1ac   : > { %2312 = vmatmul.mubr.bf16.vlgmr.msra.gmra.mrb[0].mxu0 %v5866_v17  ;;  %1752 = vmatprep.mubr.bf16.mxu1 %v5747_v47  ;;  %v5872_v47 = vld [vmem:[#allocation94_spill] sm:$0xff] }
 0x1ad   : > { %2321 = vmatprep.mubr.bf16.mxu0 %v5867_v12 }
 0x1b3   : > { %1753 = vmatmul.mubr.bf16.gmra.mrb[8].mxu1 %v5757_v56  ;;  %v5873_v56 = vld [vmem:[#allocation95_spill] sm:$0xff] }
 0x1b4   : > { %2322 = vmatmul.mubr.bf16.gmra.mrb[4].mxu0 %v5868_v32  ;;  %1762 = vmatprep.mubr.bf16.mxu1 %v5759_v63  ;;  %v5874_v63 = vld [vmem:[#allocation102_spill] sm:$0xff] }
 0x1b5   : > { %2331 = vmatprep.mubr.bf16.mxu0 %v5869_v21 }
 0x1bb   : > { %1763 = vmatmul.mubr.bf16.gmra.mrb[12].mxu1 %v5769_v8  ;;  %v5875_v8 = vld [vmem:[#allocation103_spill] sm:$0xff] }
 0x1bc   : > { %2332 = vmatmul.mubr.bf16.gmra.mrb[8].mxu0 %v5870_v23  ;;  %1772 = vmatprep.mubr.bf16.mxu1 %v5771_v60  ;;  %v5876_v60 = vld [vmem:[#allocation110_spill] sm:$0xff] }
 0x1bd   : > { %2341 = vmatprep.mubr.bf16.mxu0 %v5871_v44 }
 0x1c3   : > { %1773 = vmatmul.mubr.bf16.gmra.mrb[16].mxu1 %v5779_v6  ;;  %v5877_v6 = vld [vmem:[#allocation111_spill] sm:$0xff] }
 0x1c4   : > { %2342 = vmatmul.mubr.bf16.gmra.mrb[12].mxu0 %v5872_v47  ;;  %1782 = vmatprep.mubr.bf16.mxu1 %v5781_v57  ;;  %v5878_v57 = vld [vmem:[#allocation121_spill] sm:$0xff] }
 0x1c5   : > { %2351 = vmatprep.mubr.bf16.mxu0 %v5873_v56 }
 0x1cb   : > { %1783 = vmatmul.mubr.bf16.gmra.mrb[20].mxu1 %v5790_v58  ;;  %v5879_v58 = vld [vmem:[#allocation122_spill] sm:$0xff] }
 0x1cc   : > { %2352 = vmatmul.mubr.bf16.gmra.mrb[16].mxu0 %v5874_v63  ;;  %1792 = vmatprep.mubr.bf16.mxu1 %v5792_v55  ;;  %v5880_v55 = vld [vmem:[#allocation123_spill] sm:$0xff] }
 0x1cd   : > { %2361 = vmatprep.mubr.bf16.mxu0 %v5875_v8 }
 0x1d3   : > { %1793 = vmatmul.mubr.bf16.gmra.mrb[24].mxu1 %v5802_v14 }
 0x1d4   : > { %2362 = vmatmul.mubr.bf16.gmra.mrb[20].mxu0 %v5876_v60  ;;  %1802 = vmatprep.mubr.bf16.mxu1 %v5806_v29 }
 0x1d5   : > { %2371 = vmatprep.mubr.bf16.mxu0 %v5877_v6 }
 0x1db   : > { %1803 = vmatmul.mubr.bf16.gmra.mrb[28].mxu1 %v5815_v45 }
 0x1dc   : > { %2372 = vmatmul.mubr.bf16.gmra.mrb[24].mxu0 %v5878_v57  ;;  %1812 = vmatprep.mubr.bf16.mxu1 %v5818_v33 }
 0x1dd   : > { %2381 = vmatprep.mubr.bf16.mxu0 %v5879_v58 }
 0x1e3   : > { %1813 = vmatmul.mubr.bf16.gmra.mrb[32].mxu1 %v5824_v18 }
 0x1e4   : > { %2382 = vmatmul.mubr.bf16.gmra.mrb[28].mxu0 %v4321_v39  ;;  %1822 = vmatprep.mubr.bf16.mxu1 %v5827_v19 }
 0x1e5   : > { %2391 = vmatprep.mubr.bf16.mxu0 %v5880_v55 }
 0x1eb   : > { %1823 = vmatmul.mubr.bf16.gmra.mrb[36].mxu1 %v5831_v3 }
 0x1ec   : > { %2392 = vmatmul.mubr.bf16.gmra.mrb[32].mxu0 %v5793_v7  ;;  %1832 = vmatprep.mubr.bf16.mxu1 %v5834_v52 }
 0x1ed   : > { %2401 = vmatprep.mubr.bf16.mxu0 %v5797_v54 }
 0x1f3   : > { %1833 = vmatmul.mubr.bf16.gmra.mrb[40].mxu1 %v5838_v1 }
 0x1f4   : > { %2402 = vmatmul.mubr.bf16.gmra.mrb[36].mxu0 %v5809_v11  ;;  %1842 = vmatprep.mubr.bf16.mxu1 %v5841_v20 }
 0x1f5   : > { %2411 = vmatprep.mubr.bf16.mxu0 %v5810_v49 }
 0x1fb   : > { %1843 = vmatmul.mubr.bf16.gmra.mrb[44].mxu1 %v5846_v41 }
 0x1fc   : > { %2412 = vmatmul.mubr.bf16.gmra.mrb[40].mxu0 %v4584_v50  ;;  %1852 = vmatprep.mubr.bf16.mxu1 %v5849_v36 }
 0x1fd   : > { %2421 = vmatprep.mubr.bf16.mxu0 %v4614_v16 }
 0x203   : > { %1853 = vmatmul.mubr.bf16.gmra.mrb[48].mxu1 %v5854_v42 }
 0x204   : > { %2422 = vmatmul.mubr.bf16.gmra.mrb[44].mxu0 %v4646_v4  ;;  %1862 = vmatprep.mubr.bf16.mxu1 %v5857_v59 }
 0x205   : > { %2431 = vmatprep.mubr.bf16.mxu0 %v5828_v25 }
 0x20b   : > { %1863 = vmatmul.mubr.bf16.gmra.mrb[52].mxu1 %v5860_v27 }
 0x20c   : > { %2432 = vmatmul.mubr.bf16.gmra.mrb[48].mxu0 %v4672_v37  ;;  %1872 = vmatprep.mubr.bf16.mxu1 %v5861_v40 }
 0x20d   : > { %2441 = vmatprep.mubr.bf16.mxu0 %v5835_v31 }
 0x213   : > { %1873 = vmatmul.mubr.bf16.gmra.mrb[56].mxu1 %v5862_v46 }
 0x214   : > { %2442 = vmatmul.mubr.bf16.gmra.mrb[52].mxu0 %v5842_v51  ;;  %1882 = vmatprep.mubr.bf16.mxu1 %v5863_v22 }
 0x215   : > { %2451 = vmatprep.mubr.bf16.mxu0 %v5843_v53 }
 0x21b   : > { %1883 = vmatmul.mubr.bf16.gmra.mrb[60].mxu1 %v5864_v10 }
 0x21c   : > { %2452 = vmatmul.mubr.bf16.gmra.mrb[56].mxu0 %v5850_v43 }
 0x21d   : > { %2461 = vmatprep.mubr.bf16.mxu0 %v5851_v35 }
 0x224   : > { %2462 = vmatmul.mubr.bf16.gmra.mrb[60].mxu0 %v4743_v24 }
 0x276   : > { %v1734_v39 = vpop.f32.mrb[0].mxu1 }
 0x277   : > { %v1736_v50 = vpop.f32.mrb[1].mxu1 }
 0x278   : > { %v1738_v16 = vpop.f32.mrb[2].mxu1 }
 0x279   : > { %v1740_v4 = vpop.f32.mrb[3].mxu1 }
 0x27e   : > { %v1744_v37 = vpop.f32.mrb[4].mxu1 }
 0x27f   : > { %v2313_v7 = vpop.f32.mrb[0].mxu0  ;;  %v1746_v54 = vpop.f32.mrb[5].mxu1 }
 0x280   : > { %v2871_v14 = vadd.f32 %v2313_v7, %v1734_v39  ;;  %v2315_v29 = vpop.f32.mrb[1].mxu0  ;;  %v1748_v11 = vpop.f32.mrb[6].mxu1 }
 0x281   : > { %v2872_v49 = vadd.f32 %v2315_v29, %v1736_v50  ;;  %v2317_v45 = vpop.f32.mrb[2].mxu0  ;;  %v1750_v33 = vpop.f32.mrb[7].mxu1 }
 0x282   : > { %v2873_v18 = vadd.f32 %v2317_v45, %v1738_v16  ;;  %v2319_v19 = vpop.f32.mrb[3].mxu0  ;;  %2664 = vst [vmem:[%s5095_s19] sm:$0xff] %v2871_v14 }
 0x283   : > { %v2874_v25 = vadd.f32 %v2319_v19, %v1740_v4  ;;  %2665 = vst [vmem:[%s5095_s19 + $0x8] sm:$0xff] %v2872_v49 }
 0x284   : > { %2666 = vst [vmem:[%s5095_s19 + $0x10] sm:$0xff] %v2873_v18 }
 0x285   : > { %2667 = vst [vmem:[%s5095_s19 + $0x18] sm:$0xff] %v2874_v25 }
 0x286   : > { %v1754_v24 = vpop.f32.mrb[8].mxu1 }
 0x287   : > { %v2323_v3 = vpop.f32.mrb[4].mxu0  ;;  %v1756_v52 = vpop.f32.mrb[9].mxu1 }
 0x288   : > { %v2875_v31 = vadd.f32 %v2323_v3, %v1744_v37  ;;  %v2325_v1 = vpop.f32.mrb[5].mxu0  ;;  %v1758_v20 = vpop.f32.mrb[10].mxu1 }
 0x289   : > { %v2876_v51 = vadd.f32 %v2325_v1, %v1746_v54  ;;  %v2327_v53 = vpop.f32.mrb[6].mxu0  ;;  %v1760_v41 = vpop.f32.mrb[11].mxu1 }
 0x28a   : > { %v2877_v36 = vadd.f32 %v2327_v53, %v1748_v11  ;;  %v2329_v43 = vpop.f32.mrb[7].mxu0  ;;  %2668 = vst [vmem:[%s5095_s19 + $0x20] sm:$0xff] %v2875_v31 }
 0x28b   : > { %v2878_v35 = vadd.f32 %v2329_v43, %v1750_v33  ;;  %2669 = vst [vmem:[%s5095_s19 + $0x28] sm:$0xff] %v2876_v51 }
 0x28c   : > { %2670 = vst [vmem:[%s5095_s19 + $0x30] sm:$0xff] %v2877_v36 }
 0x28d   : > { %2671 = vst [vmem:[%s5095_s19 + $0x38] sm:$0xff] %v2878_v35 }
 0x28e   : > { %v1764_v42 = vpop.f32.mrb[12].mxu1 }
 0x28f   : > { %v2333_v2 = vpop.f32.mrb[8].mxu0  ;;  %v1766_v48 = vpop.f32.mrb[13].mxu1 }
 0x290   : > { %v2879_v62 = vadd.f32 %v2333_v2, %v1754_v24  ;;  %v2335_v15 = vpop.f32.mrb[9].mxu0  ;;  %v1768_v59 = vpop.f32.mrb[14].mxu1 }
 0x291   : > { %v2880_v28 = vadd.f32 %v2335_v15, %v1756_v52  ;;  %v2337_v0 = vpop.f32.mrb[10].mxu0  ;;  %v1770_v38 = vpop.f32.mrb[15].mxu1 }
 0x292   : > { %v2881_v26 = vadd.f32 %v2337_v0, %v1758_v20  ;;  %v2339_v34 = vpop.f32.mrb[11].mxu0  ;;  %2672 = vst [vmem:[%s5095_s19 + $0x40] sm:$0xff] %v2879_v62 }
 0x293   : > { %v2882_v61 = vadd.f32 %v2339_v34, %v1760_v41  ;;  %2673 = vst [vmem:[%s5095_s19 + $0x48] sm:$0xff] %v2880_v28 }
 0x294   : > { %2674 = vst [vmem:[%s5095_s19 + $0x50] sm:$0xff] %v2881_v26 }
 0x295   : > { %2675 = vst [vmem:[%s5095_s19 + $0x58] sm:$0xff] %v2882_v61 }
 0x296   : > { %v1774_v13 = vpop.f32.mrb[16].mxu1 }
 0x297   : > { %v2343_v9 = vpop.f32.mrb[12].mxu0  ;;  %v1776_v27 = vpop.f32.mrb[17].mxu1 }
 0x298   : > { %v2883_v40 = vadd.f32 %v2343_v9, %v1764_v42  ;;  %v2345_v5 = vpop.f32.mrb[13].mxu0  ;;  %v1778_v46 = vpop.f32.mrb[18].mxu1 }
 0x299   : > { %v2884_v22 = vadd.f32 %v2345_v5, %v1766_v48  ;;  %v2347_v10 = vpop.f32.mrb[14].mxu0  ;;  %v1780_v30 = vpop.f32.mrb[19].mxu1 }
 0x29a   : > { %v2885_v17 = vadd.f32 %v2347_v10, %v1768_v59  ;;  %v2349_v12 = vpop.f32.mrb[15].mxu0  ;;  %2676 = vst [vmem:[%s5095_s19 + $0x60] sm:$0xff] %v2883_v40 }
 0x29b   : > { %v2886_v32 = vadd.f32 %v2349_v12, %v1770_v38  ;;  %2677 = vst [vmem:[%s5095_s19 + $0x68] sm:$0xff] %v2884_v22 }
 0x29c   : > { %2678 = vst [vmem:[%s5095_s19 + $0x70] sm:$0xff] %v2885_v17 }
 0x29d   : > { %2679 = vst [vmem:[%s5095_s19 + $0x78] sm:$0xff] %v2886_v32 }
 0x29e   : > { %v1784_v21 = vpop.f32.mrb[20].mxu1 }
 0x29f   : > { %v2353_v23 = vpop.f32.mrb[16].mxu0  ;;  %v1786_v44 = vpop.f32.mrb[21].mxu1 }
 0x2a0   : > { %v2887_v47 = vadd.f32 %v2353_v23, %v1774_v13  ;;  %v2355_v56 = vpop.f32.mrb[17].mxu0  ;;  %v1788_v63 = vpop.f32.mrb[22].mxu1 }
 0x2a1   : > { %v2888_v8 = vadd.f32 %v2355_v56, %v1776_v27  ;;  %v2357_v60 = vpop.f32.mrb[18].mxu0  ;;  %v1790_v6 = vpop.f32.mrb[23].mxu1 }
 0x2a2   : > { %v2889_v57 = vadd.f32 %v2357_v60, %v1778_v46  ;;  %v2359_v58 = vpop.f32.mrb[19].mxu0  ;;  %2680 = vst [vmem:[%s5095_s19 + $0x80] sm:$0xff] %v2887_v47 }
 0x2a3   : > { %v2890_v55 = vadd.f32 %v2359_v58, %v1780_v30  ;;  %2681 = vst [vmem:[%s5095_s19 + $0x88] sm:$0xff] %v2888_v8 }
 0x2a4   : > { %2682 = vst [vmem:[%s5095_s19 + $0x90] sm:$0xff] %v2889_v57 }
 0x2a5   : > { %2683 = vst [vmem:[%s5095_s19 + $0x98] sm:$0xff] %v2890_v55 }
 0x2a6   : > { %v1794_v39 = vpop.f32.mrb[24].mxu1 }
 0x2a7   : > { %v2363_v50 = vpop.f32.mrb[20].mxu0  ;;  %v1796_v16 = vpop.f32.mrb[25].mxu1 }
 0x2a8   : > { %v2891_v4 = vadd.f32 %v2363_v50, %v1784_v21  ;;  %v2365_v37 = vpop.f32.mrb[21].mxu0  ;;  %v1798_v7 = vpop.f32.mrb[26].mxu1 }
 0x2a9   : > { %v2892_v54 = vadd.f32 %v2365_v37, %v1786_v44  ;;  %v2367_v14 = vpop.f32.mrb[22].mxu0  ;;  %v1800_v29 = vpop.f32.mrb[27].mxu1 }
 0x2aa   : > { %v2893_v11 = vadd.f32 %v2367_v14, %v1788_v63  ;;  %v2369_v49 = vpop.f32.mrb[23].mxu0  ;;  %2684 = vst [vmem:[%s5095_s19 + $0xa0] sm:$0xff] %v2891_v4 }
 0x2ab   : > { %v2894_v45 = vadd.f32 %v2369_v49, %v1790_v6  ;;  %2685 = vst [vmem:[%s5095_s19 + $0xa8] sm:$0xff] %v2892_v54 }
 0x2ac   : > { %2686 = vst [vmem:[%s5095_s19 + $0xb0] sm:$0xff] %v2893_v11 }
 0x2ad   : > { %2687 = vst [vmem:[%s5095_s19 + $0xb8] sm:$0xff] %v2894_v45 }
 0x2ae   : > { %v1804_v33 = vpop.f32.mrb[28].mxu1 }
 0x2af   : > { %v2373_v18 = vpop.f32.mrb[24].mxu0  ;;  %v1806_v19 = vpop.f32.mrb[29].mxu1 }
 0x2b0   : > { %v2895_v25 = vadd.f32 %v2373_v18, %v1794_v39  ;;  %v2375_v24 = vpop.f32.mrb[25].mxu0  ;;  %v1808_v3 = vpop.f32.mrb[30].mxu1 }
 0x2b1   : > { %v2896_v52 = vadd.f32 %v2375_v24, %v1796_v16  ;;  %v2377_v31 = vpop.f32.mrb[26].mxu0  ;;  %v1810_v1 = vpop.f32.mrb[31].mxu1 }
 0x2b2   : > { %v2897_v20 = vadd.f32 %v2377_v31, %v1798_v7  ;;  %v2379_v51 = vpop.f32.mrb[27].mxu0  ;;  %2688 = vst [vmem:[%s5095_s19 + $0xc0] sm:$0xff] %v2895_v25 }
 0x2b3   : > { %v2898_v53 = vadd.f32 %v2379_v51, %v1800_v29  ;;  %2689 = vst [vmem:[%s5095_s19 + $0xc8] sm:$0xff] %v2896_v52 }
 0x2b4   : > { %2690 = vst [vmem:[%s5095_s19 + $0xd0] sm:$0xff] %v2897_v20 }
 0x2b5   : > { %2691 = vst [vmem:[%s5095_s19 + $0xd8] sm:$0xff] %v2898_v53 }
 0x2b6   : > { %v1814_v41 = vpop.f32.mrb[32].mxu1 }
 0x2b7   : > { %v2383_v36 = vpop.f32.mrb[28].mxu0  ;;  %v1816_v43 = vpop.f32.mrb[33].mxu1 }
 0x2b8   : > { %v2899_v35 = vadd.f32 %v2383_v36, %v1804_v33  ;;  %v2385_v42 = vpop.f32.mrb[29].mxu0  ;;  %v1818_v2 = vpop.f32.mrb[34].mxu1 }
 0x2b9   : > { %v2900_v48 = vadd.f32 %v2385_v42, %v1806_v19  ;;  %v2387_v62 = vpop.f32.mrb[30].mxu0  ;;  %v1820_v15 = vpop.f32.mrb[35].mxu1 }
 0x2ba   : > { %v2901_v59 = vadd.f32 %v2387_v62, %v1808_v3  ;;  %v2389_v28 = vpop.f32.mrb[31].mxu0  ;;  %2692 = vst [vmem:[%s5095_s19 + $0xe0] sm:$0xff] %v2899_v35 }
 0x2bb   : > { %v2902_v0 = vadd.f32 %v2389_v28, %v1810_v1  ;;  %2693 = vst [vmem:[%s5095_s19 + $0xe8] sm:$0xff] %v2900_v48 }
 0x2bc   : > { %2694 = vst [vmem:[%s5095_s19 + $0xf0] sm:$0xff] %v2901_v59 }
 0x2bd   : > { %2695 = vst [vmem:[%s5095_s19 + $0xf8] sm:$0xff] %v2902_v0 }
 0x2be   : > { %v1824_v38 = vpop.f32.mrb[36].mxu1 }
 0x2bf   : > { %v2393_v26 = vpop.f32.mrb[32].mxu0  ;;  %v1826_v34 = vpop.f32.mrb[37].mxu1 }
 0x2c0   : > { %v2903_v61 = vadd.f32 %v2393_v26, %v1814_v41  ;;  %v2395_v13 = vpop.f32.mrb[33].mxu0  ;;  %v1828_v9 = vpop.f32.mrb[38].mxu1 }
 0x2c1   : > { %v2904_v27 = vadd.f32 %v2395_v13, %v1816_v43  ;;  %v2397_v40 = vpop.f32.mrb[34].mxu0  ;;  %v1830_v5 = vpop.f32.mrb[39].mxu1 }
 0x2c2   : > { %v2905_v46 = vadd.f32 %v2397_v40, %v1818_v2  ;;  %v2399_v22 = vpop.f32.mrb[35].mxu0  ;;  %2696 = vst [vmem:[%s5095_s19 + $0x100] sm:$0xff] %v2903_v61 }
 0x2c3   : > { %v2906_v10 = vadd.f32 %v2399_v22, %v1820_v15  ;;  %2697 = vst [vmem:[%s5095_s19 + $0x108] sm:$0xff] %v2904_v27 }
 0x2c4   : > { %2698 = vst [vmem:[%s5095_s19 + $0x110] sm:$0xff] %v2905_v46 }
 0x2c5   : > { %2699 = vst [vmem:[%s5095_s19 + $0x118] sm:$0xff] %v2906_v10 }
 0x2c6   : > { %v1834_v30 = vpop.f32.mrb[40].mxu1 }
 0x2c7   : > { %v2403_v17 = vpop.f32.mrb[36].mxu0  ;;  %v1836_v12 = vpop.f32.mrb[41].mxu1 }
 0x2c8   : > { %v2907_v32 = vadd.f32 %v2403_v17, %v1824_v38  ;;  %v2405_v21 = vpop.f32.mrb[37].mxu0  ;;  %v1838_v23 = vpop.f32.mrb[42].mxu1 }
 0x2c9   : > { %v2908_v44 = vadd.f32 %v2405_v21, %v1826_v34  ;;  %v2407_v47 = vpop.f32.mrb[38].mxu0  ;;  %v1840_v56 = vpop.f32.mrb[43].mxu1 }
 0x2ca   : > { %v2909_v63 = vadd.f32 %v2407_v47, %v1828_v9  ;;  %v2409_v8 = vpop.f32.mrb[39].mxu0  ;;  %2700 = vst [vmem:[%s5095_s19 + $0x120] sm:$0xff] %v2907_v32 }
 0x2cb   : > { %v2910_v60 = vadd.f32 %v2409_v8, %v1830_v5  ;;  %2701 = vst [vmem:[%s5095_s19 + $0x128] sm:$0xff] %v2908_v44 }
 0x2cc   : > { %2702 = vst [vmem:[%s5095_s19 + $0x130] sm:$0xff] %v2909_v63 }
 0x2cd   : > { %2703 = vst [vmem:[%s5095_s19 + $0x138] sm:$0xff] %v2910_v60 }
 0x2ce   : > { %v1844_v6 = vpop.f32.mrb[44].mxu1 }
 0x2cf   : > { %v2413_v57 = vpop.f32.mrb[40].mxu0  ;;  %v1846_v58 = vpop.f32.mrb[45].mxu1 }
 0x2d0   : > { %v2911_v55 = vadd.f32 %v2413_v57, %v1834_v30  ;;  %v2415_v39 = vpop.f32.mrb[41].mxu0  ;;  %v1848_v50 = vpop.f32.mrb[46].mxu1 }
 0x2d1   : > { %v2912_v16 = vadd.f32 %v2415_v39, %v1836_v12  ;;  %v2417_v4 = vpop.f32.mrb[42].mxu0  ;;  %v1850_v37 = vpop.f32.mrb[47].mxu1 }
 0x2d2   : > { %v2913_v7 = vadd.f32 %v2417_v4, %v1838_v23  ;;  %v2419_v54 = vpop.f32.mrb[43].mxu0  ;;  %2704 = vst [vmem:[%s5095_s19 + $0x140] sm:$0xff] %v2911_v55 }
 0x2d3   : > { %v2914_v14 = vadd.f32 %v2419_v54, %v1840_v56  ;;  %2705 = vst [vmem:[%s5095_s19 + $0x148] sm:$0xff] %v2912_v16 }
 0x2d4   : > { %2706 = vst [vmem:[%s5095_s19 + $0x150] sm:$0xff] %v2913_v7 }
 0x2d5   : > { %2707 = vst [vmem:[%s5095_s19 + $0x158] sm:$0xff] %v2914_v14 }
 0x2d6   : > { %v1854_v29 = vpop.f32.mrb[48].mxu1 }
 0x2d7   : > { %v2423_v11 = vpop.f32.mrb[44].mxu0  ;;  %v1856_v49 = vpop.f32.mrb[49].mxu1 }
 0x2d8   : > { %v2915_v45 = vadd.f32 %v2423_v11, %v1844_v6  ;;  %v2425_v33 = vpop.f32.mrb[45].mxu0  ;;  %v1858_v18 = vpop.f32.mrb[50].mxu1 }
 0x2d9   : > { %v2916_v19 = vadd.f32 %v2425_v33, %v1846_v58  ;;  %v2427_v25 = vpop.f32.mrb[46].mxu0  ;;  %v1860_v24 = vpop.f32.mrb[51].mxu1 }
 0x2da   : > { %v2917_v3 = vadd.f32 %v2427_v25, %v1848_v50  ;;  %v2429_v52 = vpop.f32.mrb[47].mxu0  ;;  %2708 = vst [vmem:[%s5095_s19 + $0x160] sm:$0xff] %v2915_v45 }
 0x2db   : > { %v2918_v31 = vadd.f32 %v2429_v52, %v1850_v37  ;;  %2709 = vst [vmem:[%s5095_s19 + $0x168] sm:$0xff] %v2916_v19 }
 0x2dc   : > { %2710 = vst [vmem:[%s5095_s19 + $0x170] sm:$0xff] %v2917_v3 }
 0x2dd   : > { %2711 = vst [vmem:[%s5095_s19 + $0x178] sm:$0xff] %v2918_v31 }
 0x2de   : > { %v1864_v1 = vpop.f32.mrb[52].mxu1 }
 0x2df   : > { %v2433_v20 = vpop.f32.mrb[48].mxu0  ;;  %v1866_v51 = vpop.f32.mrb[53].mxu1 }
 0x2e0   : > { %v2919_v53 = vadd.f32 %v2433_v20, %v1854_v29  ;;  %v2435_v41 = vpop.f32.mrb[49].mxu0  ;;  %v1868_v36 = vpop.f32.mrb[54].mxu1 }
 0x2e1   : > { %v2920_v43 = vadd.f32 %v2435_v41, %v1856_v49  ;;  %v2437_v35 = vpop.f32.mrb[50].mxu0  ;;  %v1870_v42 = vpop.f32.mrb[55].mxu1 }
 0x2e2   : > { %v2921_v2 = vadd.f32 %v2437_v35, %v1858_v18  ;;  %v2439_v48 = vpop.f32.mrb[51].mxu0  ;;  %2712 = vst [vmem:[%s5095_s19 + $0x180] sm:$0xff] %v2919_v53 }
 0x2e3   : > { %v2922_v62 = vadd.f32 %v2439_v48, %v1860_v24  ;;  %2713 = vst [vmem:[%s5095_s19 + $0x188] sm:$0xff] %v2920_v43 }
 0x2e4   : > { %2714 = vst [vmem:[%s5095_s19 + $0x190] sm:$0xff] %v2921_v2 }
 0x2e5   : > { %2715 = vst [vmem:[%s5095_s19 + $0x198] sm:$0xff] %v2922_v62 }
 0x2e6   : > { %v1874_v15 = vpop.f32.mrb[56].mxu1 }
 0x2e7   : > { %v2443_v59 = vpop.f32.mrb[52].mxu0  ;;  %v1876_v28 = vpop.f32.mrb[57].mxu1 }
 0x2e8   : > { %v2923_v0 = vadd.f32 %v2443_v59, %v1864_v1  ;;  %v2445_v38 = vpop.f32.mrb[53].mxu0  ;;  %v1878_v26 = vpop.f32.mrb[58].mxu1 }
 0x2e9   : > { %v2924_v34 = vadd.f32 %v2445_v38, %v1866_v51  ;;  %v2447_v61 = vpop.f32.mrb[54].mxu0  ;;  %v1880_v13 = vpop.f32.mrb[59].mxu1 }
 0x2ea   : > { %v2925_v9 = vadd.f32 %v2447_v61, %v1868_v36  ;;  %v2449_v27 = vpop.f32.mrb[55].mxu0  ;;  %2716 = vst [vmem:[%s5095_s19 + $0x1a0] sm:$0xff] %v2923_v0 }
 0x2eb   : > { %v2926_v40 = vadd.f32 %v2449_v27, %v1870_v42  ;;  %2717 = vst [vmem:[%s5095_s19 + $0x1a8] sm:$0xff] %v2924_v34 }
 0x2ec   : > { %2718 = vst [vmem:[%s5095_s19 + $0x1b0] sm:$0xff] %v2925_v9 }
 0x2ed   : > { %2719 = vst [vmem:[%s5095_s19 + $0x1b8] sm:$0xff] %v2926_v40 }
 0x2ee   : > { %v1884_v5 = vpop.f32.mrb[60].mxu1 }
 0x2ef   : > { %v2453_v46 = vpop.f32.mrb[56].mxu0  ;;  %v1886_v22 = vpop.f32.mrb[61].mxu1 }
 0x2f0   : > { %v2927_v10 = vadd.f32 %v2453_v46, %v1874_v15  ;;  %v2455_v30 = vpop.f32.mrb[57].mxu0  ;;  %v1888_v17 = vpop.f32.mrb[62].mxu1 }
 0x2f1   : > { %v2928_v12 = vadd.f32 %v2455_v30, %v1876_v28  ;;  %v2457_v32 = vpop.f32.mrb[58].mxu0  ;;  %v1890_v21 = vpop.f32.mrb[63].mxu1 }
 0x2f2   : > { %v2929_v23 = vadd.f32 %v2457_v32, %v1878_v26  ;;  %v2459_v44 = vpop.f32.mrb[59].mxu0  ;;  %2720 = vst [vmem:[%s5095_s19 + $0x1c0] sm:$0xff] %v2927_v10 }
 0x2f3   : > { %v2930_v47 = vadd.f32 %v2459_v44, %v1880_v13  ;;  %2721 = vst [vmem:[%s5095_s19 + $0x1c8] sm:$0xff] %v2928_v12 }
 0x2f4   : > { %2722 = vst [vmem:[%s5095_s19 + $0x1d0] sm:$0xff] %v2929_v23 }
 0x2f5   : > { %2723 = vst [vmem:[%s5095_s19 + $0x1d8] sm:$0xff] %v2930_v47 }
 0x2f7   : > { %v2463_v56 = vpop.f32.mrb[60].mxu0 }
 0x2f8   : > { %v2931_v63 = vadd.f32 %v2463_v56, %v1884_v5  ;;  %v2465_v8 = vpop.f32.mrb[61].mxu0 }
 0x2f9   : > { %v2932_v60 = vadd.f32 %v2465_v8, %v1886_v22  ;;  %v2467_v6 = vpop.f32.mrb[62].mxu0 }
 0x2fa   : > { %v2933_v57 = vadd.f32 %v2467_v6, %v1888_v17  ;;  %v2469_v58 = vpop.f32.mrb[63].mxu0  ;;  %2724 = vst [vmem:[%s5095_s19 + $0x1e0] sm:$0xff] %v2931_v63 }
 0x2fb   : > { %v2934_v55 = vadd.f32 %v2469_v58, %v1890_v21  ;;  %2725 = vst [vmem:[%s5095_s19 + $0x1e8] sm:$0xff] %v2932_v60 }
 0x2fc   : > { %2726 = vst [vmem:[%s5095_s19 + $0x1f0] sm:$0xff] %v2933_v57 }
 0x2fd   : > { %2727 = vst [vmem:[%s5095_s19 + $0x1f8] sm:$0xff] %v2934_v55 }
 0x2fe   : > { %3407 = shalt.err (!%p3404_p6)
}
 0x2ff   : > { %s3408_s24 = scalar_lea.hbm %s5162_s15, 8192  ;;  %s3412_s3 = scalar_lea.hbm %s5219_s2, 16384 }
 0x300   : > { %p3409_p0 = scmp.ne.s32.totalorder %s5162_s15, %s3408_s24  ;;  %p3413_p12 = scmp.lt.u32.totalorder %s5162_s15, %s5219_s2 }
 0x301   : > { %p3414_p5 = scmp.lt.u32.totalorder %s3412_s3, %s3408_s24  ;;  %p3416_p9 = scmp.lt.u32.totalorder %s3408_s24, %s5162_s15 }
 0x302   : > { %p3410_p2 = pnand %p3409_p0, %p5881_p11 }
 0x303   : > { %p3415_p8 = por %p3414_p5, %p3413_p12 }
 0x304   : > { %p3411_p7 = pneg %p3410_p2 }
 0x305   : > { %p3417_p13 = por %p3416_p9, %p3415_p8 }
 0x307   : > { %p3418_p4 = pnand %p3417_p13, %p3411_p7 }
 0x309   : > { %3421 = shalt.err (!%p3418_p4)
}
 0x30a   : > { %s3489_s17 = smov 256   ;;  %s3490_s19 = smov 512  }
 0x30b   : > { %s3491_s22 = smov 16  }
 0x30c   : > { %3197 = dma.vmem_to_hbm [thread:$0]  (%p5881_p11), %s5165_s8, 8192, %s5162_s15, %s2729_s12, %s3489_s17, %s3490_s19, %s3491_s22  }
 0x30d PF: > { %s2760_s5 = sand.u32 1, %s3460_s9   ;;  %p5882_p1 = scmp.ne.s32.totalorder %s5491_s21, 0 }
 0x30e   : > { %p5883_p10 = scmp.ge.s32.totalorder %s3480_s14, 2  ;;  %s2761_s6 = scalar_lea.sflag [#allocation4], %s2760_s5 }
 0x310   : > { %p3208_p3 = pnand %p5883_p10, %p5882_p1 }
 0x312   : > { %3455 = dma.done.wait (!%p3208_p3), %s2761_s6, 8192  }
 0x313   : > { %3457 = vsyncadd (!%p3208_p3), %s2761_s6, 4294959104  ;;  %s19_s14 = sadd.s32 1, %s3480_s14   ;;  %s5884_s9 = smov %s3464_s10 }
 0x314   : > { %p16_p6 = scmp.ge.s32.totalorder %s19_s14, 4   ;;  %s5885_s10 = smov %s3468_s11 }
 0x315   : > { %s5886_s11 = smov %s3627_s7  ;;  %s5887_s12 = smov %s3476_s13 }
 0x316   : > { %s5888_s13 = smov %s5890_s27  ;;  %18 = sbr.rel (!%p16_p6) target bundleno = 7 (0x7), region = 83 }
 0x31d   :  { %2766 = vsyncpa [#allocation3], 1 }
 0x31e   :  { %2768 = vsyncpa [#allocation3 + $0x1], 1 }
 0x31f   :  { %2769 = vsyncpa [#allocation6], 1 }
 0x320   :  { %2771 = vsyncpa [#allocation6 + $0x1], 1 }
 0x321   :  { %2772 = vsyncpa [#allocation4], 1 }
 0x322   :  { %2774 = vsyncpa [#allocation4 + $0x1], 1 }

</bundles_post_ra>
